<compile_context>
chip_gen: v7x
topology: tpu7x:2x2x1
jax: 0.10.0
libtpu: 0.0.40
codegen_flags: <defaults>
</compile_context>

<pallas_src>
import math
from functools import partial

import jax
import jax.numpy as jnp
from jax.experimental import pallas as pl
from jax.experimental.pallas import tpu as pltpu


# ----------------------------------------------------------------------------
# Pallas kernel: entire stacked-LSTM recurrence + FC head in one invocation.
# ----------------------------------------------------------------------------
def _pm_lstm_kernel(x_ref,                      # (T*Bp, D)        bf16, time-major
                    wi1_ref, wh1_ref, b1_ref,   # (D,4H1P) bf16, (H1P,4H1P) bf16, (1,4H1P) f32
                    w2_ref, b2_ref,             # (H1P+H2P,4H2P) bf16, (1,4H2P) f32
                    wfc_ref, bfc_ref,           # (1,H2P) f32, (1,1) f32
                    y_ref,                      # (Bp, 1) f32
                    gx1_ref,                    # VMEM scratch (T*Bp, 4H1P) f32
                    *, T, Bp, H1P, H2P):
    f32 = jnp.float32
    bf16 = jnp.bfloat16

    def activate(g, H):
        # Gate column order is [i, f, o, g]: one sigmoid over the contiguous
        # (Bp, 3H) slab + one tanh, instead of 3 + 1 separate EUP pushes.
        s = jax.nn.sigmoid(g[:, 0:3 * H])
        gg = jnp.tanh(g[:, 3 * H:4 * H])
        return s[:, 0:H], s[:, H:2 * H], s[:, 2 * H:3 * H], gg

    # Hoisted layer-1 input projection for ALL timesteps: one big MXU matmul
    # (M = T*Bp), bias folded in, result parked in VMEM scratch (not vregs).
    gx1_ref[...] = (jnp.dot(x_ref[...], wi1_ref[...], preferred_element_type=f32)
                    + b1_ref[...])

    # Only small per-step values live in vregs; the layer-2 bias broadcast is
    # hoisted once (JAX does not CSE broadcast_in_dim inside the loop).
    b2 = jnp.broadcast_to(b2_ref[...], (Bp, 4 * H2P))

    h1 = jnp.zeros((Bp, H1P), f32)
    c1 = jnp.zeros((Bp, H1P), f32)
    h2 = jnp.zeros((Bp, H2P), f32)
    c2 = jnp.zeros((Bp, H2P), f32)

    # Fully unrolled recurrence (T is small and static).  For long sequences
    # this would become a lax.fori_loop over a (h1, c1, h2, c2) carry instead.
    for t in range(T):
        # ---- layer 1: only the recurrent projection is on the critical path.
        g1 = (gx1_ref[pl.ds(t * Bp, Bp), :]
              + jnp.dot(h1.astype(bf16), wh1_ref[...], preferred_element_type=f32))
        i1, f1, o1, g1c = activate(g1, H1P)
        c1 = f1 * c1 + i1 * g1c
        h1 = o1 * jnp.tanh(c1)

        # ---- layer 2: input + recurrent projections fused into ONE K=256
        # matmul on concat(h1, h2); inter-layer dropout is identity at inference.
        h12 = jnp.concatenate([h1, h2], axis=-1).astype(bf16)  # lane-aligned concat
        g2 = jnp.dot(h12, w2_ref[...], preferred_element_type=f32) + b2
        i2, f2, o2, g2c = activate(g2, H2P)
        c2 = f2 * c2 + i2 * g2c
        h2 = o2 * jnp.tanh(c2)

    # Final FC on the last hidden state.  N=1, so a VPU broadcast-multiply +
    # lane reduction beats a 1-column MXU matmul.
    y_ref[...] = (jnp.sum(h2 * wfc_ref[...], axis=-1, keepdims=True)
                  + bfc_ref[...])


# ----------------------------------------------------------------------------
# Wrapper: padding / gate-reorder / layout plumbing + pallas_call.
# ----------------------------------------------------------------------------
def _round_up(x, m):
    return ((x + m - 1) // m) * m


def _prep_gates(w, H, HP):
    """Zero-pad each of the 4 gate blocks (trailing axis) from H to HP lanes and
    reorder columns from PyTorch [i, f, g, o] to kernel [i, f, o, g]."""
    pad = [(0, 0)] * (w.ndim - 1) + [(0, HP - H)]
    blk = [jnp.pad(w[..., k * H:(k + 1) * H], pad) for k in range(4)]
    return jnp.concatenate([blk[0], blk[1], blk[3], blk[2]], axis=-1)


def _pad_rows(w, R, RP):
    return w if R == RP else jnp.pad(w, ((0, RP - R), (0, 0)))


def predictive_maintenance_forward(x, params):
    """x: (B, T, D) float32 -> (B,) float32 (matches fc(o[:, -1, :]).squeeze()).

    NOTE: for B == 1 PyTorch's .squeeze() returns a 0-d scalar; this wrapper
    always returns shape (B,)."""
    B, T, D = x.shape
    wi1, wh1, b1 = params["wi1"], params["wh1"], params["b1"]
    wi2, wh2, b2 = params["wi2"], params["wh2"], params["b2"]
    wfc, bfc = params["wfc"], params["bfc"]
    H1, H2 = wh1.shape[0], wh2.shape[0]

    # Lane-align every gate slot (128 lanes) and sublane-align the batch (>=8).
    H1P = _round_up(H1, 128)
    H2P = _round_up(H2, 128)
    Bp = _round_up(max(B, 8), 8)

    bf16 = jnp.bfloat16

    # Time-major, batch-padded, flattened to (T*Bp, D) so the layer-1 input
    # projection is a single MXU matmul; bf16 halves DMA + vreg footprint.
    x_p = jnp.pad(x, ((0, Bp - B), (0, 0), (0, 0)))
    x_flat = jnp.transpose(x_p, (1, 0, 2)).reshape(T * Bp, D).astype(bf16)

    # Zero-pad / reorder weights so every gate boundary lands on a 128-lane
    # multiple and the sigmoid gates [i,f,o] are contiguous.
    wi1_p = _prep_gates(wi1, H1, H1P).astype(bf16)                      # (D,   4H1P)
    wh1_p = _pad_rows(_prep_gates(wh1, H1, H1P), H1, H1P).astype(bf16)  # (H1P, 4H1P)
    b1_p = _prep_gates(b1, H1, H1P)                                     # (1,   4H1P)
    # Layer-2 fused weight: rows [wi2 (H1P) ; wh2 (H2P)] so that
    # g2 = concat(h1, h2) @ w2 does both projections in one K=256 MXU pass.
    wi2_p = _pad_rows(_prep_gates(wi2, H2, H2P), H1, H1P)               # (H1P, 4H2P)
    wh2_p = _pad_rows(_prep_gates(wh2, H2, H2P), H2, H2P)               # (H2P, 4H2P)
    w2_p = jnp.concatenate([wi2_p, wh2_p], axis=0).astype(bf16)         # (H1P+H2P, 4H2P)
    b2_p = _prep_gates(b2, H2, H2P)                                     # (1,   4H2P)
    wfc_row = jnp.pad(wfc[:, 0][None, :], ((0, 0), (0, H2P - H2)))      # (1,   H2P)

    vmem = pl.BlockSpec(memory_space=pltpu.MemorySpace.VMEM)

    y = pl.pallas_call(
        partial(_pm_lstm_kernel, T=T, Bp=Bp, H1P=H1P, H2P=H2P),
        out_shape=jax.ShapeDtypeStruct((Bp, 1), jnp.float32),
        in_specs=[vmem] * 8,
        out_specs=vmem,
        # Layer-1 input-projection results live in VMEM scratch, not vregs.
        scratch_shapes=[pltpu.VMEM((T * Bp, 4 * H1P), jnp.float32)],
    )(x_flat, wi1_p, wh1_p, b1_p, w2_p, b2_p, wfc_row, bfc)

    return y[:B, 0]


# ----------------------------------------------------------------------------
# Deterministic parameter init (Xavier-uniform weights, zero biases),
# mirroring the shapes from the PyTorch module's __init__.
# NOTE: PyTorch nn.LSTM has b_ih + b_hh per layer; a real-weight loader must
#       sum them into b1/b2 (here both are zero-initialized, matching __init__).
# ----------------------------------------------------------------------------
def init_params(key, input_size, h1=128, h2=48):
    def xavier(k, out_f, in_f):
        bound = math.sqrt(6.0 / (in_f + out_f))
        return jax.random.uniform(k, (out_f, in_f), jnp.float32, -bound, bound)

    ks = jax.random.split(key, 5)
    w_ih1 = xavier(ks[0], 4 * h1, input_size)   # lstm1.weight_ih_l0
    w_hh1 = xavier(ks[1], 4 * h1, h1)           # lstm1.weight_hh_l0
    w_ih2 = xavier(ks[2], 4 * h2, h1)           # lstm2.weight_ih_l0
    w_hh2 = xavier(ks[3], 4 * h2, h2)           # lstm2.weight_hh_l0
    w_fc = xavier(ks[4], 1, h2)                 # fc.weight
    return {
        "wi1": jnp.transpose(w_ih1),                 # (D, 4H1)
        "wh1": jnp.transpose(w_hh1),                 # (H1, 4H1)
        "b1": jnp.zeros((1, 4 * h1), jnp.float32),
        "wi2": jnp.transpose(w_ih2),                 # (H1, 4H2)
        "wh2": jnp.transpose(w_hh2),                 # (H2, 4H2)
        "b2": jnp.zeros((1, 4 * h2), jnp.float32),
        "wfc": jnp.transpose(w_fc),                  # (H2, 1)
        "bfc": jnp.zeros((1, 1), jnp.float32),
    }


# ----------------------------------------------------------------------------
# Pure-JAX reference (lax.scan) mirroring the kernel's bf16-input / f32-accumulate
# matmul precision, for a correctness sanity check.  (Error vs the true f32
# PyTorch model will be larger, ~1e-2 relative — acceptable for inference.)
# ----------------------------------------------------------------------------
def reference_forward(x, params):
    q = lambda a: a.astype(jnp.bfloat16).astype(jnp.float32)

    def cell(wi, wh, b, H):
        wi_q, wh_q = q(wi), q(wh)

        def step(carry, x_t):
            h, c = carry
            g = q(x_t) @ wi_q + q(h) @ wh_q + b
            i = jax.nn.sigmoid(g[:, 0 * H:1 * H])
            f = jax.nn.sigmoid(g[:, 1 * H:2 * H])
            gg = jnp.tanh(g[:, 2 * H:3 * H])
            o = jax.nn.sigmoid(g[:, 3 * H:4 * H])
            c_n = f * c + i * gg
            h_n = o * jnp.tanh(c_n)
            return (h_n, c_n), h_n

        return step

    B, T, D = x.shape
    H1 = params["wh1"].shape[0]
    H2 = params["wh2"].shape[0]
    x_tm = jnp.transpose(x, (1, 0, 2))

    (_, _), o1 = jax.lax.scan(
        cell(params["wi1"], params["wh1"], params["b1"], H1),
        (jnp.zeros((B, H1)), jnp.zeros((B, H1))), x_tm)
    (_, _), o2 = jax.lax.scan(
        cell(params["wi2"], params["wh2"], params["b2"], H2),
        (jnp.zeros((B, H2)), jnp.zeros((B, H2))), o1)
    last = o2[-1]                                   # (B, H2)
    return (last @ params["wfc"] + params["bfc"])[:, 0]


if __name__ == "__main__":
    key = jax.random.PRNGKey(0)
    B, T, D = 2, 8, 16
    H1, H2 = 128, 48

    k_x, k_p = jax.random.split(key)
    x = jax.random.normal(k_x, (B, T, D), jnp.float32)
    params = init_params(k_p, input_size=D, h1=H1, h2=H2)

    y = jax.block_until_ready(predictive_maintenance_forward(x, params))
    y_ref = jax.block_until_ready(reference_forward(x, params))

    assert y.shape == (B,)
    assert jnp.allclose(y, y_ref, atol=2e-3, rtol=2e-3), (y, y_ref)

    print("KERNEL_OK")
</pallas_src>

<mosaic_0001>
module attributes {stable_mosaic.version = 11 : i64} {
  func.func @_pm_lstm_kernel(%arg0: memref<64x16xbf16, #tpu.memory_space<vmem>>, %arg1: memref<16x512xbf16, #tpu.memory_space<vmem>>, %arg2: memref<128x512xbf16, #tpu.memory_space<vmem>>, %arg3: memref<1x512xf32, #tpu.memory_space<vmem>>, %arg4: memref<256x512xbf16, #tpu.memory_space<vmem>>, %arg5: memref<1x512xf32, #tpu.memory_space<vmem>>, %arg6: memref<1x128xf32, #tpu.memory_space<vmem>>, %arg7: memref<1x1xf32, #tpu.memory_space<vmem>>, %arg8: memref<8x1xf32, #tpu.memory_space<vmem>>, %arg9: memref<64x512xf32, #tpu.memory_space<vmem>>) attributes {dimension_semantics = [], scalar_prefetch = 0 : i64, scratch_operands = 1 : i64, tpu.core_type = #tpu.core_type<tc>} {
    %c0 = arith.constant 0 : index
    %c0_0 = arith.constant 0 : index
    %0 = vector.load %arg0[%c0, %c0_0] : memref<64x16xbf16, #tpu.memory_space<vmem>>, vector<64x16xbf16>
    %c0_1 = arith.constant 0 : index
    %c0_2 = arith.constant 0 : index
    %1 = vector.load %arg1[%c0_1, %c0_2] : memref<16x512xbf16, #tpu.memory_space<vmem>>, vector<16x512xbf16>
    %cst = arith.constant dense<0.000000e+00> : vector<64x512xf32>
    %2 = tpu.matmul %0, %1, %cst {dimension_numbers = #tpu.dot_dimension_numbers<[1], [0], [0], [1], [0, 0, 1, 1], [], []>} : vector<64x16xbf16>, vector<16x512xbf16>, vector<64x512xf32> -> vector<64x512xf32>
    %c0_3 = arith.constant 0 : index
    %c0_4 = arith.constant 0 : index
    %3 = vector.load %arg3[%c0_3, %c0_4] : memref<1x512xf32, #tpu.memory_space<vmem>>, vector<1x512xf32>
    %4 = vector.broadcast %3 : vector<1x512xf32> to vector<64x512xf32>
    %5 = arith.addf %2, %4 : vector<64x512xf32>
    %c0_5 = arith.constant 0 : index
    %c0_6 = arith.constant 0 : index
    %6 = vector.load %arg9[%c0_5, %c0_6] : memref<64x512xf32, #tpu.memory_space<vmem>>, vector<64x512xf32>
    tpu.vector_store %arg9[%c0_5, %c0_6], %5 {strides = array<i32>} : memref<64x512xf32, #tpu.memory_space<vmem>>, vector<64x512xf32>,
    %c0_7 = arith.constant 0 : index
    %c0_8 = arith.constant 0 : index
    %7 = vector.load %arg5[%c0_7, %c0_8] : memref<1x512xf32, #tpu.memory_space<vmem>>, vector<1x512xf32>
    %8 = vector.shape_cast %7 : vector<1x512xf32> to vector<1x512xf32>
    %9 = vector.broadcast %8 : vector<1x512xf32> to vector<8x512xf32>
    %cst_9 = arith.constant 0.000000e+00 : f32
    %10 = vector.broadcast %cst_9 : f32 to vector<8x128xf32>
    %cst_10 = arith.constant 0.000000e+00 : f32
    %11 = vector.broadcast %cst_10 : f32 to vector<8x128xf32>
    %cst_11 = arith.constant 0.000000e+00 : f32
    %12 = vector.broadcast %cst_11 : f32 to vector<8x128xf32>
    %cst_12 = arith.constant 0.000000e+00 : f32
    %13 = vector.broadcast %cst_12 : f32 to vector<8x128xf32>
    %c0_13 = arith.constant 0 : index
    %c0_14 = arith.constant 0 : index
    %14 = vector.load %arg9[%c0_13, %c0_14] : memref<64x512xf32, #tpu.memory_space<vmem>>, vector<8x512xf32>
    %15 = arith.truncf %10 : vector<8x128xf32> to vector<8x128xbf16>
    %c0_15 = arith.constant 0 : index
    %c0_16 = arith.constant 0 : index
    %16 = vector.load %arg2[%c0_15, %c0_16] : memref<128x512xbf16, #tpu.memory_space<vmem>>, vector<128x512xbf16>
    %cst_17 = arith.constant dense<0.000000e+00> : vector<8x512xf32>
    %17 = tpu.matmul %15, %16, %cst_17 {dimension_numbers = #tpu.dot_dimension_numbers<[1], [0], [0], [1], [0, 0, 1, 1], [], []>} : vector<8x128xbf16>, vector<128x512xbf16>, vector<8x512xf32> -> vector<8x512xf32>
    %18 = arith.addf %14, %17 : vector<8x512xf32>
    %19 = vector.extract_strided_slice %18 {offsets = [0, 0], sizes = [8, 384], strides = [1, 1]} : vector<8x512xf32> to vector<8x384xf32>
    %20 = arith.negf %19 : vector<8x384xf32>
    %21 = math.exp %20 : vector<8x384xf32>
    %cst_18 = arith.constant 1.000000e+00 : f32
    %22 = vector.broadcast %cst_18 : f32 to vector<8x384xf32>
    %23 = arith.addf %22, %21 : vector<8x384xf32>
    %24 = arith.divf %22, %23 : vector<8x384xf32>
    %25 = vector.extract_strided_slice %18 {offsets = [0, 384], sizes = [8, 128], strides = [1, 1]} : vector<8x512xf32> to vector<8x128xf32>
    %26 = math.tanh %25 : vector<8x128xf32>
    %27 = vector.extract_strided_slice %24 {offsets = [0, 0], sizes = [8, 128], strides = [1, 1]} : vector<8x384xf32> to vector<8x128xf32>
    %28 = vector.extract_strided_slice %24 {offsets = [0, 128], sizes = [8, 128], strides = [1, 1]} : vector<8x384xf32> to vector<8x128xf32>
    %29 = vector.extract_strided_slice %24 {offsets = [0, 256], sizes = [8, 128], strides = [1, 1]} : vector<8x384xf32> to vector<8x128xf32>
    %30 = arith.mulf %28, %11 : vector<8x128xf32>
    %31 = arith.mulf %27, %26 : vector<8x128xf32>
    %32 = arith.addf %30, %31 : vector<8x128xf32>
    %33 = math.tanh %32 : vector<8x128xf32>
    %34 = arith.mulf %29, %33 : vector<8x128xf32>
    %35 = tpu.concatenate %34, %12 in 1 : vector<8x128xf32>, vector<8x128xf32> -> vector<8x256xf32>
    %36 = arith.truncf %35 : vector<8x256xf32> to vector<8x256xbf16>
    %c0_19 = arith.constant 0 : index
    %c0_20 = arith.constant 0 : index
    %37 = vector.load %arg4[%c0_19, %c0_20] : memref<256x512xbf16, #tpu.memory_space<vmem>>, vector<256x512xbf16>
    %cst_21 = arith.constant dense<0.000000e+00> : vector<8x512xf32>
    %38 = tpu.matmul %36, %37, %cst_21 {dimension_numbers = #tpu.dot_dimension_numbers<[1], [0], [0], [1], [0, 0, 1, 1], [], []>} : vector<8x256xbf16>, vector<256x512xbf16>, vector<8x512xf32> -> vector<8x512xf32>
    %39 = arith.addf %38, %9 : vector<8x512xf32>
    %40 = vector.extract_strided_slice %39 {offsets = [0, 0], sizes = [8, 384], strides = [1, 1]} : vector<8x512xf32> to vector<8x384xf32>
    %41 = arith.negf %40 : vector<8x384xf32>
    %42 = math.exp %41 : vector<8x384xf32>
    %cst_22 = arith.constant 1.000000e+00 : f32
    %43 = vector.broadcast %cst_22 : f32 to vector<8x384xf32>
    %44 = arith.addf %43, %42 : vector<8x384xf32>
    %45 = arith.divf %43, %44 : vector<8x384xf32>
    %46 = vector.extract_strided_slice %39 {offsets = [0, 384], sizes = [8, 128], strides = [1, 1]} : vector<8x512xf32> to vector<8x128xf32>
    %47 = math.tanh %46 : vector<8x128xf32>
    %48 = vector.extract_strided_slice %45 {offsets = [0, 0], sizes = [8, 128], strides = [1, 1]} : vector<8x384xf32> to vector<8x128xf32>
    %49 = vector.extract_strided_slice %45 {offsets = [0, 128], sizes = [8, 128], strides = [1, 1]} : vector<8x384xf32> to vector<8x128xf32>
    %50 = vector.extract_strided_slice %45 {offsets = [0, 256], sizes = [8, 128], strides = [1, 1]} : vector<8x384xf32> to vector<8x128xf32>
    %51 = arith.mulf %49, %13 : vector<8x128xf32>
    %52 = arith.mulf %48, %47 : vector<8x128xf32>
    %53 = arith.addf %51, %52 : vector<8x128xf32>
    %54 = math.tanh %53 : vector<8x128xf32>
    %55 = arith.mulf %50, %54 : vector<8x128xf32>
    %c8 = arith.constant 8 : index
    %c0_23 = arith.constant 0 : index
    %56 = vector.load %arg9[%c8, %c0_23] : memref<64x512xf32, #tpu.memory_space<vmem>>, vector<8x512xf32>
    %57 = arith.truncf %34 : vector<8x128xf32> to vector<8x128xbf16>
    %c0_24 = arith.constant 0 : index
    %c0_25 = arith.constant 0 : index
    %58 = vector.load %arg2[%c0_24, %c0_25] : memref<128x512xbf16, #tpu.memory_space<vmem>>, vector<128x512xbf16>
    %cst_26 = arith.constant dense<0.000000e+00> : vector<8x512xf32>
    %59 = tpu.matmul %57, %58, %cst_26 {dimension_numbers = #tpu.dot_dimension_numbers<[1], [0], [0], [1], [0, 0, 1, 1], [], []>} : vector<8x128xbf16>, vector<128x512xbf16>, vector<8x512xf32> -> vector<8x512xf32>
    %60 = arith.addf %56, %59 : vector<8x512xf32>
    %61 = vector.extract_strided_slice %60 {offsets = [0, 0], sizes = [8, 384], strides = [1, 1]} : vector<8x512xf32> to vector<8x384xf32>
    %62 = arith.negf %61 : vector<8x384xf32>
    %63 = math.exp %62 : vector<8x384xf32>
    %cst_27 = arith.constant 1.000000e+00 : f32
    %64 = vector.broadcast %cst_27 : f32 to vector<8x384xf32>
    %65 = arith.addf %64, %63 : vector<8x384xf32>
    %66 = arith.divf %64, %65 : vector<8x384xf32>
    %67 = vector.extract_strided_slice %60 {offsets = [0, 384], sizes = [8, 128], strides = [1, 1]} : vector<8x512xf32> to vector<8x128xf32>
    %68 = math.tanh %67 : vector<8x128xf32>
    %69 = vector.extract_strided_slice %66 {offsets = [0, 0], sizes = [8, 128], strides = [1, 1]} : vector<8x384xf32> to vector<8x128xf32>
    %70 = vector.extract_strided_slice %66 {offsets = [0, 128], sizes = [8, 128], strides = [1, 1]} : vector<8x384xf32> to vector<8x128xf32>
    %71 = vector.extract_strided_slice %66 {offsets = [0, 256], sizes = [8, 128], strides = [1, 1]} : vector<8x384xf32> to vector<8x128xf32>
    %72 = arith.mulf %70, %32 : vector<8x128xf32>
    %73 = arith.mulf %69, %68 : vector<8x128xf32>
    %74 = arith.addf %72, %73 : vector<8x128xf32>
    %75 = math.tanh %74 : vector<8x128xf32>
    %76 = arith.mulf %71, %75 : vector<8x128xf32>
    %77 = tpu.concatenate %76, %55 in 1 : vector<8x128xf32>, vector<8x128xf32> -> vector<8x256xf32>
    %78 = arith.truncf %77 : vector<8x256xf32> to vector<8x256xbf16>
    %c0_28 = arith.constant 0 : index
    %c0_29 = arith.constant 0 : index
    %79 = vector.load %arg4[%c0_28, %c0_29] : memref<256x512xbf16, #tpu.memory_space<vmem>>, vector<256x512xbf16>
    %cst_30 = arith.constant dense<0.000000e+00> : vector<8x512xf32>
    %80 = tpu.matmul %78, %79, %cst_30 {dimension_numbers = #tpu.dot_dimension_numbers<[1], [0], [0], [1], [0, 0, 1, 1], [], []>} : vector<8x256xbf16>, vector<256x512xbf16>, vector<8x512xf32> -> vector<8x512xf32>
    %81 = arith.addf %80, %9 : vector<8x512xf32>
    %82 = vector.extract_strided_slice %81 {offsets = [0, 0], sizes = [8, 384], strides = [1, 1]} : vector<8x512xf32> to vector<8x384xf32>
    %83 = arith.negf %82 : vector<8x384xf32>
    %84 = math.exp %83 : vector<8x384xf32>
    %cst_31 = arith.constant 1.000000e+00 : f32
    %85 = vector.broadcast %cst_31 : f32 to vector<8x384xf32>
    %86 = arith.addf %85, %84 : vector<8x384xf32>
    %87 = arith.divf %85, %86 : vector<8x384xf32>
    %88 = vector.extract_strided_slice %81 {offsets = [0, 384], sizes = [8, 128], strides = [1, 1]} : vector<8x512xf32> to vector<8x128xf32>
    %89 = math.tanh %88 : vector<8x128xf32>
    %90 = vector.extract_strided_slice %87 {offsets = [0, 0], sizes = [8, 128], strides = [1, 1]} : vector<8x384xf32> to vector<8x128xf32>
    %91 = vector.extract_strided_slice %87 {offsets = [0, 128], sizes = [8, 128], strides = [1, 1]} : vector<8x384xf32> to vector<8x128xf32>
    %92 = vector.extract_strided_slice %87 {offsets = [0, 256], sizes = [8, 128], strides = [1, 1]} : vector<8x384xf32> to vector<8x128xf32>
    %93 = arith.mulf %91, %53 : vector<8x128xf32>
    %94 = arith.mulf %90, %89 : vector<8x128xf32>
    %95 = arith.addf %93, %94 : vector<8x128xf32>
    %96 = math.tanh %95 : vector<8x128xf32>
    %97 = arith.mulf %92, %96 : vector<8x128xf32>
    %c16 = arith.constant 16 : index
    %c0_32 = arith.constant 0 : index
    %98 = vector.load %arg9[%c16, %c0_32] : memref<64x512xf32, #tpu.memory_space<vmem>>, vector<8x512xf32>
    %99 = arith.truncf %76 : vector<8x128xf32> to vector<8x128xbf16>
    %c0_33 = arith.constant 0 : index
    %c0_34 = arith.constant 0 : index
    %100 = vector.load %arg2[%c0_33, %c0_34] : memref<128x512xbf16, #tpu.memory_space<vmem>>, vector<128x512xbf16>
    %cst_35 = arith.constant dense<0.000000e+00> : vector<8x512xf32>
    %101 = tpu.matmul %99, %100, %cst_35 {dimension_numbers = #tpu.dot_dimension_numbers<[1], [0], [0], [1], [0, 0, 1, 1], [], []>} : vector<8x128xbf16>, vector<128x512xbf16>, vector<8x512xf32> -> vector<8x512xf32>
    %102 = arith.addf %98, %101 : vector<8x512xf32>
    %103 = vector.extract_strided_slice %102 {offsets = [0, 0], sizes = [8, 384], strides = [1, 1]} : vector<8x512xf32> to vector<8x384xf32>
    %104 = arith.negf %103 : vector<8x384xf32>
    %105 = math.exp %104 : vector<8x384xf32>
    %cst_36 = arith.constant 1.000000e+00 : f32
    %106 = vector.broadcast %cst_36 : f32 to vector<8x384xf32>
    %107 = arith.addf %106, %105 : vector<8x384xf32>
    %108 = arith.divf %106, %107 : vector<8x384xf32>
    %109 = vector.extract_strided_slice %102 {offsets = [0, 384], sizes = [8, 128], strides = [1, 1]} : vector<8x512xf32> to vector<8x128xf32>
    %110 = math.tanh %109 : vector<8x128xf32>
    %111 = vector.extract_strided_slice %108 {offsets = [0, 0], sizes = [8, 128], strides = [1, 1]} : vector<8x384xf32> to vector<8x128xf32>
    %112 = vector.extract_strided_slice %108 {offsets = [0, 128], sizes = [8, 128], strides = [1, 1]} : vector<8x384xf32> to vector<8x128xf32>
    %113 = vector.extract_strided_slice %108 {offsets = [0, 256], sizes = [8, 128], strides = [1, 1]} : vector<8x384xf32> to vector<8x128xf32>
    %114 = arith.mulf %112, %74 : vector<8x128xf32>
    %115 = arith.mulf %111, %110 : vector<8x128xf32>
    %116 = arith.addf %114, %115 : vector<8x128xf32>
    %117 = math.tanh %116 : vector<8x128xf32>
    %118 = arith.mulf %113, %117 : vector<8x128xf32>
    %119 = tpu.concatenate %118, %97 in 1 : vector<8x128xf32>, vector<8x128xf32> -> vector<8x256xf32>
    %120 = arith.truncf %119 : vector<8x256xf32> to vector<8x256xbf16>
    %c0_37 = arith.constant 0 : index
    %c0_38 = arith.constant 0 : index
    %121 = vector.load %arg4[%c0_37, %c0_38] : memref<256x512xbf16, #tpu.memory_space<vmem>>, vector<256x512xbf16>
    %cst_39 = arith.constant dense<0.000000e+00> : vector<8x512xf32>
    %122 = tpu.matmul %120, %121, %cst_39 {dimension_numbers = #tpu.dot_dimension_numbers<[1], [0], [0], [1], [0, 0, 1, 1], [], []>} : vector<8x256xbf16>, vector<256x512xbf16>, vector<8x512xf32> -> vector<8x512xf32>
    %123 = arith.addf %122, %9 : vector<8x512xf32>
    %124 = vector.extract_strided_slice %123 {offsets = [0, 0], sizes = [8, 384], strides = [1, 1]} : vector<8x512xf32> to vector<8x384xf32>
    %125 = arith.negf %124 : vector<8x384xf32>
    %126 = math.exp %125 : vector<8x384xf32>
    %cst_40 = arith.constant 1.000000e+00 : f32
    %127 = vector.broadcast %cst_40 : f32 to vector<8x384xf32>
    %128 = arith.addf %127, %126 : vector<8x384xf32>
    %129 = arith.divf %127, %128 : vector<8x384xf32>
    %130 = vector.extract_strided_slice %123 {offsets = [0, 384], sizes = [8, 128], strides = [1, 1]} : vector<8x512xf32> to vector<8x128xf32>
    %131 = math.tanh %130 : vector<8x128xf32>
    %132 = vector.extract_strided_slice %129 {offsets = [0, 0], sizes = [8, 128], strides = [1, 1]} : vector<8x384xf32> to vector<8x128xf32>
    %133 = vector.extract_strided_slice %129 {offsets = [0, 128], sizes = [8, 128], strides = [1, 1]} : vector<8x384xf32> to vector<8x128xf32>
    %134 = vector.extract_strided_slice %129 {offsets = [0, 256], sizes = [8, 128], strides = [1, 1]} : vector<8x384xf32> to vector<8x128xf32>
    %135 = arith.mulf %133, %95 : vector<8x128xf32>
    %136 = arith.mulf %132, %131 : vector<8x128xf32>
    %137 = arith.addf %135, %136 : vector<8x128xf32>
    %138 = math.tanh %137 : vector<8x128xf32>
    %139 = arith.mulf %134, %138 : vector<8x128xf32>
    %c24 = arith.constant 24 : index
    %c0_41 = arith.constant 0 : index
    %140 = vector.load %arg9[%c24, %c0_41] : memref<64x512xf32, #tpu.memory_space<vmem>>, vector<8x512xf32>
    %141 = arith.truncf %118 : vector<8x128xf32> to vector<8x128xbf16>
    %c0_42 = arith.constant 0 : index
    %c0_43 = arith.constant 0 : index
    %142 = vector.load %arg2[%c0_42, %c0_43] : memref<128x512xbf16, #tpu.memory_space<vmem>>, vector<128x512xbf16>
    %cst_44 = arith.constant dense<0.000000e+00> : vector<8x512xf32>
    %143 = tpu.matmul %141, %142, %cst_44 {dimension_numbers = #tpu.dot_dimension_numbers<[1], [0], [0], [1], [0, 0, 1, 1], [], []>} : vector<8x128xbf16>, vector<128x512xbf16>, vector<8x512xf32> -> vector<8x512xf32>
    %144 = arith.addf %140, %143 : vector<8x512xf32>
    %145 = vector.extract_strided_slice %144 {offsets = [0, 0], sizes = [8, 384], strides = [1, 1]} : vector<8x512xf32> to vector<8x384xf32>
    %146 = arith.negf %145 : vector<8x384xf32>
    %147 = math.exp %146 : vector<8x384xf32>
    %cst_45 = arith.constant 1.000000e+00 : f32
    %148 = vector.broadcast %cst_45 : f32 to vector<8x384xf32>
    %149 = arith.addf %148, %147 : vector<8x384xf32>
    %150 = arith.divf %148, %149 : vector<8x384xf32>
    %151 = vector.extract_strided_slice %144 {offsets = [0, 384], sizes = [8, 128], strides = [1, 1]} : vector<8x512xf32> to vector<8x128xf32>
    %152 = math.tanh %151 : vector<8x128xf32>
    %153 = vector.extract_strided_slice %150 {offsets = [0, 0], sizes = [8, 128], strides = [1, 1]} : vector<8x384xf32> to vector<8x128xf32>
    %154 = vector.extract_strided_slice %150 {offsets = [0, 128], sizes = [8, 128], strides = [1, 1]} : vector<8x384xf32> to vector<8x128xf32>
    %155 = vector.extract_strided_slice %150 {offsets = [0, 256], sizes = [8, 128], strides = [1, 1]} : vector<8x384xf32> to vector<8x128xf32>
    %156 = arith.mulf %154, %116 : vector<8x128xf32>
    %157 = arith.mulf %153, %152 : vector<8x128xf32>
    %158 = arith.addf %156, %157 : vector<8x128xf32>
    %159 = math.tanh %158 : vector<8x128xf32>
    %160 = arith.mulf %155, %159 : vector<8x128xf32>
    %161 = tpu.concatenate %160, %139 in 1 : vector<8x128xf32>, vector<8x128xf32> -> vector<8x256xf32>
    %162 = arith.truncf %161 : vector<8x256xf32> to vector<8x256xbf16>
    %c0_46 = arith.constant 0 : index
    %c0_47 = arith.constant 0 : index
    %163 = vector.load %arg4[%c0_46, %c0_47] : memref<256x512xbf16, #tpu.memory_space<vmem>>, vector<256x512xbf16>
    %cst_48 = arith.constant dense<0.000000e+00> : vector<8x512xf32>
    %164 = tpu.matmul %162, %163, %cst_48 {dimension_numbers = #tpu.dot_dimension_numbers<[1], [0], [0], [1], [0, 0, 1, 1], [], []>} : vector<8x256xbf16>, vector<256x512xbf16>, vector<8x512xf32> -> vector<8x512xf32>
    %165 = arith.addf %164, %9 : vector<8x512xf32>
    %166 = vector.extract_strided_slice %165 {offsets = [0, 0], sizes = [8, 384], strides = [1, 1]} : vector<8x512xf32> to vector<8x384xf32>
    %167 = arith.negf %166 : vector<8x384xf32>
    %168 = math.exp %167 : vector<8x384xf32>
    %cst_49 = arith.constant 1.000000e+00 : f32
    %169 = vector.broadcast %cst_49 : f32 to vector<8x384xf32>
    %170 = arith.addf %169, %168 : vector<8x384xf32>
    %171 = arith.divf %169, %170 : vector<8x384xf32>
    %172 = vector.extract_strided_slice %165 {offsets = [0, 384], sizes = [8, 128], strides = [1, 1]} : vector<8x512xf32> to vector<8x128xf32>
    %173 = math.tanh %172 : vector<8x128xf32>
    %174 = vector.extract_strided_slice %171 {offsets = [0, 0], sizes = [8, 128], strides = [1, 1]} : vector<8x384xf32> to vector<8x128xf32>
    %175 = vector.extract_strided_slice %171 {offsets = [0, 128], sizes = [8, 128], strides = [1, 1]} : vector<8x384xf32> to vector<8x128xf32>
    %176 = vector.extract_strided_slice %171 {offsets = [0, 256], sizes = [8, 128], strides = [1, 1]} : vector<8x384xf32> to vector<8x128xf32>
    %177 = arith.mulf %175, %137 : vector<8x128xf32>
    %178 = arith.mulf %174, %173 : vector<8x128xf32>
    %179 = arith.addf %177, %178 : vector<8x128xf32>
    %180 = math.tanh %179 : vector<8x128xf32>
    %181 = arith.mulf %176, %180 : vector<8x128xf32>
    %c32 = arith.constant 32 : index
    %c0_50 = arith.constant 0 : index
    %182 = vector.load %arg9[%c32, %c0_50] : memref<64x512xf32, #tpu.memory_space<vmem>>, vector<8x512xf32>
    %183 = arith.truncf %160 : vector<8x128xf32> to vector<8x128xbf16>
    %c0_51 = arith.constant 0 : index
    %c0_52 = arith.constant 0 : index
    %184 = vector.load %arg2[%c0_51, %c0_52] : memref<128x512xbf16, #tpu.memory_space<vmem>>, vector<128x512xbf16>
    %cst_53 = arith.constant dense<0.000000e+00> : vector<8x512xf32>
    %185 = tpu.matmul %183, %184, %cst_53 {dimension_numbers = #tpu.dot_dimension_numbers<[1], [0], [0], [1], [0, 0, 1, 1], [], []>} : vector<8x128xbf16>, vector<128x512xbf16>, vector<8x512xf32> -> vector<8x512xf32>
    %186 = arith.addf %182, %185 : vector<8x512xf32>
    %187 = vector.extract_strided_slice %186 {offsets = [0, 0], sizes = [8, 384], strides = [1, 1]} : vector<8x512xf32> to vector<8x384xf32>
    %188 = arith.negf %187 : vector<8x384xf32>
    %189 = math.exp %188 : vector<8x384xf32>
    %cst_54 = arith.constant 1.000000e+00 : f32
    %190 = vector.broadcast %cst_54 : f32 to vector<8x384xf32>
    %191 = arith.addf %190, %189 : vector<8x384xf32>
    %192 = arith.divf %190, %191 : vector<8x384xf32>
    %193 = vector.extract_strided_slice %186 {offsets = [0, 384], sizes = [8, 128], strides = [1, 1]} : vector<8x512xf32> to vector<8x128xf32>
    %194 = math.tanh %193 : vector<8x128xf32>
    %195 = vector.extract_strided_slice %192 {offsets = [0, 0], sizes = [8, 128], strides = [1, 1]} : vector<8x384xf32> to vector<8x128xf32>
    %196 = vector.extract_strided_slice %192 {offsets = [0, 128], sizes = [8, 128], strides = [1, 1]} : vector<8x384xf32> to vector<8x128xf32>
    %197 = vector.extract_strided_slice %192 {offsets = [0, 256], sizes = [8, 128], strides = [1, 1]} : vector<8x384xf32> to vector<8x128xf32>
    %198 = arith.mulf %196, %158 : vector<8x128xf32>
    %199 = arith.mulf %195, %194 : vector<8x128xf32>
    %200 = arith.addf %198, %199 : vector<8x128xf32>
    %201 = math.tanh %200 : vector<8x128xf32>
    %202 = arith.mulf %197, %201 : vector<8x128xf32>
    %203 = tpu.concatenate %202, %181 in 1 : vector<8x128xf32>, vector<8x128xf32> -> vector<8x256xf32>
    %204 = arith.truncf %203 : vector<8x256xf32> to vector<8x256xbf16>
    %c0_55 = arith.constant 0 : index
    %c0_56 = arith.constant 0 : index
    %205 = vector.load %arg4[%c0_55, %c0_56] : memref<256x512xbf16, #tpu.memory_space<vmem>>, vector<256x512xbf16>
    %cst_57 = arith.constant dense<0.000000e+00> : vector<8x512xf32>
    %206 = tpu.matmul %204, %205, %cst_57 {dimension_numbers = #tpu.dot_dimension_numbers<[1], [0], [0], [1], [0, 0, 1, 1], [], []>} : vector<8x256xbf16>, vector<256x512xbf16>, vector<8x512xf32> -> vector<8x512xf32>
    %207 = arith.addf %206, %9 : vector<8x512xf32>
    %208 = vector.extract_strided_slice %207 {offsets = [0, 0], sizes = [8, 384], strides = [1, 1]} : vector<8x512xf32> to vector<8x384xf32>
    %209 = arith.negf %208 : vector<8x384xf32>
    %210 = math.exp %209 : vector<8x384xf32>
    %cst_58 = arith.constant 1.000000e+00 : f32
    %211 = vector.broadcast %cst_58 : f32 to vector<8x384xf32>
    %212 = arith.addf %211, %210 : vector<8x384xf32>
    %213 = arith.divf %211, %212 : vector<8x384xf32>
    %214 = vector.extract_strided_slice %207 {offsets = [0, 384], sizes = [8, 128], strides = [1, 1]} : vector<8x512xf32> to vector<8x128xf32>
    %215 = math.tanh %214 : vector<8x128xf32>
    %216 = vector.extract_strided_slice %213 {offsets = [0, 0], sizes = [8, 128], strides = [1, 1]} : vector<8x384xf32> to vector<8x128xf32>
    %217 = vector.extract_strided_slice %213 {offsets = [0, 128], sizes = [8, 128], strides = [1, 1]} : vector<8x384xf32> to vector<8x128xf32>
    %218 = vector.extract_strided_slice %213 {offsets = [0, 256], sizes = [8, 128], strides = [1, 1]} : vector<8x384xf32> to vector<8x128xf32>
    %219 = arith.mulf %217, %179 : vector<8x128xf32>
    %220 = arith.mulf %216, %215 : vector<8x128xf32>
    %221 = arith.addf %219, %220 : vector<8x128xf32>
    %222 = math.tanh %221 : vector<8x128xf32>
    %223 = arith.mulf %218, %222 : vector<8x128xf32>
    %c40 = arith.constant 40 : index
    %c0_59 = arith.constant 0 : index
    %224 = vector.load %arg9[%c40, %c0_59] : memref<64x512xf32, #tpu.memory_space<vmem>>, vector<8x512xf32>
    %225 = arith.truncf %202 : vector<8x128xf32> to vector<8x128xbf16>
    %c0_60 = arith.constant 0 : index
    %c0_61 = arith.constant 0 : index
    %226 = vector.load %arg2[%c0_60, %c0_61] : memref<128x512xbf16, #tpu.memory_space<vmem>>, vector<128x512xbf16>
    %cst_62 = arith.constant dense<0.000000e+00> : vector<8x512xf32>
    %227 = tpu.matmul %225, %226, %cst_62 {dimension_numbers = #tpu.dot_dimension_numbers<[1], [0], [0], [1], [0, 0, 1, 1], [], []>} : vector<8x128xbf16>, vector<128x512xbf16>, vector<8x512xf32> -> vector<8x512xf32>
    %228 = arith.addf %224, %227 : vector<8x512xf32>
    %229 = vector.extract_strided_slice %228 {offsets = [0, 0], sizes = [8, 384], strides = [1, 1]} : vector<8x512xf32> to vector<8x384xf32>
    %230 = arith.negf %229 : vector<8x384xf32>
    %231 = math.exp %230 : vector<8x384xf32>
    %cst_63 = arith.constant 1.000000e+00 : f32
    %232 = vector.broadcast %cst_63 : f32 to vector<8x384xf32>
    %233 = arith.addf %232, %231 : vector<8x384xf32>
    %234 = arith.divf %232, %233 : vector<8x384xf32>
    %235 = vector.extract_strided_slice %228 {offsets = [0, 384], sizes = [8, 128], strides = [1, 1]} : vector<8x512xf32> to vector<8x128xf32>
    %236 = math.tanh %235 : vector<8x128xf32>
    %237 = vector.extract_strided_slice %234 {offsets = [0, 0], sizes = [8, 128], strides = [1, 1]} : vector<8x384xf32> to vector<8x128xf32>
    %238 = vector.extract_strided_slice %234 {offsets = [0, 128], sizes = [8, 128], strides = [1, 1]} : vector<8x384xf32> to vector<8x128xf32>
    %239 = vector.extract_strided_slice %234 {offsets = [0, 256], sizes = [8, 128], strides = [1, 1]} : vector<8x384xf32> to vector<8x128xf32>
    %240 = arith.mulf %238, %200 : vector<8x128xf32>
    %241 = arith.mulf %237, %236 : vector<8x128xf32>
    %242 = arith.addf %240, %241 : vector<8x128xf32>
    %243 = math.tanh %242 : vector<8x128xf32>
    %244 = arith.mulf %239, %243 : vector<8x128xf32>
    %245 = tpu.concatenate %244, %223 in 1 : vector<8x128xf32>, vector<8x128xf32> -> vector<8x256xf32>
    %246 = arith.truncf %245 : vector<8x256xf32> to vector<8x256xbf16>
    %c0_64 = arith.constant 0 : index
    %c0_65 = arith.constant 0 : index
    %247 = vector.load %arg4[%c0_64, %c0_65] : memref<256x512xbf16, #tpu.memory_space<vmem>>, vector<256x512xbf16>
    %cst_66 = arith.constant dense<0.000000e+00> : vector<8x512xf32>
    %248 = tpu.matmul %246, %247, %cst_66 {dimension_numbers = #tpu.dot_dimension_numbers<[1], [0], [0], [1], [0, 0, 1, 1], [], []>} : vector<8x256xbf16>, vector<256x512xbf16>, vector<8x512xf32> -> vector<8x512xf32>
    %249 = arith.addf %248, %9 : vector<8x512xf32>
    %250 = vector.extract_strided_slice %249 {offsets = [0, 0], sizes = [8, 384], strides = [1, 1]} : vector<8x512xf32> to vector<8x384xf32>
    %251 = arith.negf %250 : vector<8x384xf32>
    %252 = math.exp %251 : vector<8x384xf32>
    %cst_67 = arith.constant 1.000000e+00 : f32
    %253 = vector.broadcast %cst_67 : f32 to vector<8x384xf32>
    %254 = arith.addf %253, %252 : vector<8x384xf32>
    %255 = arith.divf %253, %254 : vector<8x384xf32>
    %256 = vector.extract_strided_slice %249 {offsets = [0, 384], sizes = [8, 128], strides = [1, 1]} : vector<8x512xf32> to vector<8x128xf32>
    %257 = math.tanh %256 : vector<8x128xf32>
    %258 = vector.extract_strided_slice %255 {offsets = [0, 0], sizes = [8, 128], strides = [1, 1]} : vector<8x384xf32> to vector<8x128xf32>
    %259 = vector.extract_strided_slice %255 {offsets = [0, 128], sizes = [8, 128], strides = [1, 1]} : vector<8x384xf32> to vector<8x128xf32>
    %260 = vector.extract_strided_slice %255 {offsets = [0, 256], sizes = [8, 128], strides = [1, 1]} : vector<8x384xf32> to vector<8x128xf32>
    %261 = arith.mulf %259, %221 : vector<8x128xf32>
    %262 = arith.mulf %258, %257 : vector<8x128xf32>
    %263 = arith.addf %261, %262 : vector<8x128xf32>
    %264 = math.tanh %263 : vector<8x128xf32>
    %265 = arith.mulf %260, %264 : vector<8x128xf32>
    %c48 = arith.constant 48 : index
    %c0_68 = arith.constant 0 : index
    %266 = vector.load %arg9[%c48, %c0_68] : memref<64x512xf32, #tpu.memory_space<vmem>>, vector<8x512xf32>
    %267 = arith.truncf %244 : vector<8x128xf32> to vector<8x128xbf16>
    %c0_69 = arith.constant 0 : index
    %c0_70 = arith.constant 0 : index
    %268 = vector.load %arg2[%c0_69, %c0_70] : memref<128x512xbf16, #tpu.memory_space<vmem>>, vector<128x512xbf16>
    %cst_71 = arith.constant dense<0.000000e+00> : vector<8x512xf32>
    %269 = tpu.matmul %267, %268, %cst_71 {dimension_numbers = #tpu.dot_dimension_numbers<[1], [0], [0], [1], [0, 0, 1, 1], [], []>} : vector<8x128xbf16>, vector<128x512xbf16>, vector<8x512xf32> -> vector<8x512xf32>
    %270 = arith.addf %266, %269 : vector<8x512xf32>
    %271 = vector.extract_strided_slice %270 {offsets = [0, 0], sizes = [8, 384], strides = [1, 1]} : vector<8x512xf32> to vector<8x384xf32>
    %272 = arith.negf %271 : vector<8x384xf32>
    %273 = math.exp %272 : vector<8x384xf32>
    %cst_72 = arith.constant 1.000000e+00 : f32
    %274 = vector.broadcast %cst_72 : f32 to vector<8x384xf32>
    %275 = arith.addf %274, %273 : vector<8x384xf32>
    %276 = arith.divf %274, %275 : vector<8x384xf32>
    %277 = vector.extract_strided_slice %270 {offsets = [0, 384], sizes = [8, 128], strides = [1, 1]} : vector<8x512xf32> to vector<8x128xf32>
    %278 = math.tanh %277 : vector<8x128xf32>
    %279 = vector.extract_strided_slice %276 {offsets = [0, 0], sizes = [8, 128], strides = [1, 1]} : vector<8x384xf32> to vector<8x128xf32>
    %280 = vector.extract_strided_slice %276 {offsets = [0, 128], sizes = [8, 128], strides = [1, 1]} : vector<8x384xf32> to vector<8x128xf32>
    %281 = vector.extract_strided_slice %276 {offsets = [0, 256], sizes = [8, 128], strides = [1, 1]} : vector<8x384xf32> to vector<8x128xf32>
    %282 = arith.mulf %280, %242 : vector<8x128xf32>
    %283 = arith.mulf %279, %278 : vector<8x128xf32>
    %284 = arith.addf %282, %283 : vector<8x128xf32>
    %285 = math.tanh %284 : vector<8x128xf32>
    %286 = arith.mulf %281, %285 : vector<8x128xf32>
    %287 = tpu.concatenate %286, %265 in 1 : vector<8x128xf32>, vector<8x128xf32> -> vector<8x256xf32>
    %288 = arith.truncf %287 : vector<8x256xf32> to vector<8x256xbf16>
    %c0_73 = arith.constant 0 : index
    %c0_74 = arith.constant 0 : index
    %289 = vector.load %arg4[%c0_73, %c0_74] : memref<256x512xbf16, #tpu.memory_space<vmem>>, vector<256x512xbf16>
    %cst_75 = arith.constant dense<0.000000e+00> : vector<8x512xf32>
    %290 = tpu.matmul %288, %289, %cst_75 {dimension_numbers = #tpu.dot_dimension_numbers<[1], [0], [0], [1], [0, 0, 1, 1], [], []>} : vector<8x256xbf16>, vector<256x512xbf16>, vector<8x512xf32> -> vector<8x512xf32>
    %291 = arith.addf %290, %9 : vector<8x512xf32>
    %292 = vector.extract_strided_slice %291 {offsets = [0, 0], sizes = [8, 384], strides = [1, 1]} : vector<8x512xf32> to vector<8x384xf32>
    %293 = arith.negf %292 : vector<8x384xf32>
    %294 = math.exp %293 : vector<8x384xf32>
    %cst_76 = arith.constant 1.000000e+00 : f32
    %295 = vector.broadcast %cst_76 : f32 to vector<8x384xf32>
    %296 = arith.addf %295, %294 : vector<8x384xf32>
    %297 = arith.divf %295, %296 : vector<8x384xf32>
    %298 = vector.extract_strided_slice %291 {offsets = [0, 384], sizes = [8, 128], strides = [1, 1]} : vector<8x512xf32> to vector<8x128xf32>
    %299 = math.tanh %298 : vector<8x128xf32>
    %300 = vector.extract_strided_slice %297 {offsets = [0, 0], sizes = [8, 128], strides = [1, 1]} : vector<8x384xf32> to vector<8x128xf32>
    %301 = vector.extract_strided_slice %297 {offsets = [0, 128], sizes = [8, 128], strides = [1, 1]} : vector<8x384xf32> to vector<8x128xf32>
    %302 = vector.extract_strided_slice %297 {offsets = [0, 256], sizes = [8, 128], strides = [1, 1]} : vector<8x384xf32> to vector<8x128xf32>
    %303 = arith.mulf %301, %263 : vector<8x128xf32>
    %304 = arith.mulf %300, %299 : vector<8x128xf32>
    %305 = arith.addf %303, %304 : vector<8x128xf32>
    %306 = math.tanh %305 : vector<8x128xf32>
    %307 = arith.mulf %302, %306 : vector<8x128xf32>
    %c56 = arith.constant 56 : index
    %c0_77 = arith.constant 0 : index
    %308 = vector.load %arg9[%c56, %c0_77] : memref<64x512xf32, #tpu.memory_space<vmem>>, vector<8x512xf32>
    %309 = arith.truncf %286 : vector<8x128xf32> to vector<8x128xbf16>
    %c0_78 = arith.constant 0 : index
    %c0_79 = arith.constant 0 : index
    %310 = vector.load %arg2[%c0_78, %c0_79] : memref<128x512xbf16, #tpu.memory_space<vmem>>, vector<128x512xbf16>
    %cst_80 = arith.constant dense<0.000000e+00> : vector<8x512xf32>
    %311 = tpu.matmul %309, %310, %cst_80 {dimension_numbers = #tpu.dot_dimension_numbers<[1], [0], [0], [1], [0, 0, 1, 1], [], []>} : vector<8x128xbf16>, vector<128x512xbf16>, vector<8x512xf32> -> vector<8x512xf32>
    %312 = arith.addf %308, %311 : vector<8x512xf32>
    %313 = vector.extract_strided_slice %312 {offsets = [0, 0], sizes = [8, 384], strides = [1, 1]} : vector<8x512xf32> to vector<8x384xf32>
    %314 = arith.negf %313 : vector<8x384xf32>
    %315 = math.exp %314 : vector<8x384xf32>
    %cst_81 = arith.constant 1.000000e+00 : f32
    %316 = vector.broadcast %cst_81 : f32 to vector<8x384xf32>
    %317 = arith.addf %316, %315 : vector<8x384xf32>
    %318 = arith.divf %316, %317 : vector<8x384xf32>
    %319 = vector.extract_strided_slice %312 {offsets = [0, 384], sizes = [8, 128], strides = [1, 1]} : vector<8x512xf32> to vector<8x128xf32>
    %320 = math.tanh %319 : vector<8x128xf32>
    %321 = vector.extract_strided_slice %318 {offsets = [0, 0], sizes = [8, 128], strides = [1, 1]} : vector<8x384xf32> to vector<8x128xf32>
    %322 = vector.extract_strided_slice %318 {offsets = [0, 128], sizes = [8, 128], strides = [1, 1]} : vector<8x384xf32> to vector<8x128xf32>
    %323 = vector.extract_strided_slice %318 {offsets = [0, 256], sizes = [8, 128], strides = [1, 1]} : vector<8x384xf32> to vector<8x128xf32>
    %324 = arith.mulf %322, %284 : vector<8x128xf32>
    %325 = arith.mulf %321, %320 : vector<8x128xf32>
    %326 = arith.addf %324, %325 : vector<8x128xf32>
    %327 = math.tanh %326 : vector<8x128xf32>
    %328 = arith.mulf %323, %327 : vector<8x128xf32>
    %329 = tpu.concatenate %328, %307 in 1 : vector<8x128xf32>, vector<8x128xf32> -> vector<8x256xf32>
    %330 = arith.truncf %329 : vector<8x256xf32> to vector<8x256xbf16>
    %c0_82 = arith.constant 0 : index
    %c0_83 = arith.constant 0 : index
    %331 = vector.load %arg4[%c0_82, %c0_83] : memref<256x512xbf16, #tpu.memory_space<vmem>>, vector<256x512xbf16>
    %cst_84 = arith.constant dense<0.000000e+00> : vector<8x512xf32>
    %332 = tpu.matmul %330, %331, %cst_84 {dimension_numbers = #tpu.dot_dimension_numbers<[1], [0], [0], [1], [0, 0, 1, 1], [], []>} : vector<8x256xbf16>, vector<256x512xbf16>, vector<8x512xf32> -> vector<8x512xf32>
    %333 = arith.addf %332, %9 : vector<8x512xf32>
    %334 = vector.extract_strided_slice %333 {offsets = [0, 0], sizes = [8, 384], strides = [1, 1]} : vector<8x512xf32> to vector<8x384xf32>
    %335 = arith.negf %334 : vector<8x384xf32>
    %336 = math.exp %335 : vector<8x384xf32>
    %cst_85 = arith.constant 1.000000e+00 : f32
    %337 = vector.broadcast %cst_85 : f32 to vector<8x384xf32>
    %338 = arith.addf %337, %336 : vector<8x384xf32>
    %339 = arith.divf %337, %338 : vector<8x384xf32>
    %340 = vector.extract_strided_slice %333 {offsets = [0, 384], sizes = [8, 128], strides = [1, 1]} : vector<8x512xf32> to vector<8x128xf32>
    %341 = math.tanh %340 : vector<8x128xf32>
    %342 = vector.extract_strided_slice %339 {offsets = [0, 0], sizes = [8, 128], strides = [1, 1]} : vector<8x384xf32> to vector<8x128xf32>
    %343 = vector.extract_strided_slice %339 {offsets = [0, 128], sizes = [8, 128], strides = [1, 1]} : vector<8x384xf32> to vector<8x128xf32>
    %344 = vector.extract_strided_slice %339 {offsets = [0, 256], sizes = [8, 128], strides = [1, 1]} : vector<8x384xf32> to vector<8x128xf32>
    %345 = arith.mulf %343, %305 : vector<8x128xf32>
    %346 = arith.mulf %342, %341 : vector<8x128xf32>
    %347 = arith.addf %345, %346 : vector<8x128xf32>
    %348 = math.tanh %347 : vector<8x128xf32>
    %349 = arith.mulf %344, %348 : vector<8x128xf32>
    %c0_86 = arith.constant 0 : index
    %c0_87 = arith.constant 0 : index
    %350 = vector.load %arg6[%c0_86, %c0_87] : memref<1x128xf32, #tpu.memory_space<vmem>>, vector<1x128xf32>
    %351 = vector.broadcast %350 : vector<1x128xf32> to vector<8x128xf32>
    %352 = arith.mulf %349, %351 : vector<8x128xf32>
    %cst_88 = arith.constant dense<0.000000e+00> : vector<8xf32>
    %353 = vector.multi_reduction <add>, %352, %cst_88 [1] : vector<8x128xf32> to vector<8xf32>
    %354 = vector.shape_cast %353 : vector<8xf32> to vector<8x1xf32>
    %c0_89 = arith.constant 0 : index
    %c0_90 = arith.constant 0 : index
    %355 = vector.load %arg7[%c0_89, %c0_90] : memref<1x1xf32, #tpu.memory_space<vmem>>, vector<1x1xf32>
    %356 = vector.broadcast %355 : vector<1x1xf32> to vector<8x1xf32>
    %357 = arith.addf %354, %356 : vector<8x1xf32>
    %c0_91 = arith.constant 0 : index
    %c0_92 = arith.constant 0 : index
    %358 = vector.load %arg8[%c0_91, %c0_92] : memref<8x1xf32, #tpu.memory_space<vmem>>, vector<8x1xf32>
    tpu.vector_store %arg8[%c0_91, %c0_92], %357 {strides = array<i32>} : memref<8x1xf32, #tpu.memory_space<vmem>>, vector<8x1xf32>,
    return
  }
}

</mosaic_0001>

<bundles_post_ra>
// kernel: tpu_custom_call.1
= control target key start
LH: loop header
LB: loop body
LE: loop exit
PB: predicated region body
PF: predicated region fallthrough
CT: control target
= control target key end

     0   :  { %s5275_s0 = inlined_call_operand.vmem [shape: bf16[64,16], index: 0, kind: input, shape index: {}]   ;;  %s5276_s1 = inlined_call_operand.vmem [shape: bf16[16,512], index: 1, kind: input, shape index: {}]   ;;  %s5277_s2 = inlined_call_operand.hbm [shape: bf16[128,512], index: 2, kind: input, shape index: {}]   ;;  %s5278_s3 = inlined_call_operand.vmem [shape: f32[1,512], index: 3, kind: input, shape index: {}]   ;;  %s5279_s4 = inlined_call_operand.hbm [shape: bf16[256,512], index: 4, kind: input, shape index: {}]   ;;  %s5280_s5 = inlined_call_operand.vmem [shape: f32[1,512], index: 5, kind: input, shape index: {}]   ;;  %s5281_s6 = inlined_call_operand.vmem [shape: f32[1,128], index: 6, kind: input, shape index: {}]   ;;  %s5282_s7 = inlined_call_operand.<no memory space> [shape: f32[1,1], index: 7, kind: input, shape index: {}]   ;;  %s5283_s8 = inlined_call_operand.vmem [shape: f32[8,1], index: 8, kind: output, shape index: {}]  }
   0x1   :  { %v13_v0 = vstv %s5282_s7 }
   0x2   :  { %14 = vst [vmem:[#allocation3] sm:$0x1] %v13_v0 }
   0x3   :  { %15 = vsyncpa [#allocation5], 0 }
   0x4   :  { %16 = vsyncpa [#allocation7], 0  ;;  %s3543_s29 = smov [#allocation4]   ;;  %s3495_s11 = scalar_lea.hbm %s5277_s2, 4096 }
   0x5   :  { %s26_s30 = sshll.u32 %s3543_s29, 4  ;;  %p3496_p0 = scmp.ne.s32.totalorder %s5277_s2, %s3495_s11  ;;  %s27_s30 = int_to_ptr.vmem [resolvable:$true] %s26_s30 }
   0x6   :  { %p3499_p1 = scmp.lt.u32.totalorder %s3495_s11, %s5277_s2 }
   0x8   :  { %p3501_p2 = pnand %p3499_p1, %p3496_p0 }
   0xa   :  { %3504 = shalt.err (!%p3501_p2)
}
   0xb   :  { %s3505_s7 = scalar_lea.vmem %s27_s30, 4096  ;;  %p3510_p4 = scmp.lt.s32.totalorder %s27_s30, %s27_s30 }
   0xc   :  { %p3506_p3 = scmp.ne.s32.totalorder %s27_s30, %s3505_s7  ;;  %p3511_p5 = scmp.lt.s32.totalorder %s3505_s7, %s3505_s7 }
   0xe   :  { %p3512_p6 = por %p3511_p5, %p3510_p4 }
  0x10   :  { %p3513_p7 = pnand %p3512_p6, %p3506_p3 }
  0x12   :  { %3516 = shalt.err (!%p3513_p7)
}
  0x13   :  { %s3544_s16 = smov 256   ;;  %s3545_s17 = smov 16  }
  0x14   :  { %32 = dma.hbm_to_vmem [thread:$0]  %s5277_s2, 4096, %s27_s30, [#allocation5], %s3544_s16, %s3544_s16, %s3545_s17  }
  0x15   :  { %s3546_s20 = smov [#allocation6]   ;;  %s3517_s24 = scalar_lea.hbm %s5279_s4, 8192 }
  0x16   :  { %s40_s21 = sshll.u32 %s3546_s20, 4  ;;  %p3518_p8 = scmp.ne.s32.totalorder %s5279_s4, %s3517_s24  ;;  %s41_s21 = int_to_ptr.vmem [resolvable:$true] %s40_s21 }
  0x17   :  { %p3521_p9 = scmp.lt.u32.totalorder %s3517_s24, %s5279_s4 }
  0x19   :  { %p3523_p10 = pnand %p3521_p9, %p3518_p8 }
  0x1b   :  { %3526 = shalt.err (!%p3523_p10)
}
  0x1c   :  { %s3527_s29 = scalar_lea.vmem %s41_s21, 8192  ;;  %p3532_p12 = scmp.lt.s32.totalorder %s41_s21, %s41_s21 }
  0x1d   :  { %p3528_p11 = scmp.ne.s32.totalorder %s41_s21, %s3527_s29  ;;  %p3533_p13 = scmp.lt.s32.totalorder %s3527_s29, %s3527_s29 }
  0x1f   :  { %p3534_p0 = por %p3533_p13, %p3532_p12 }
  0x21   :  { %p3535_p1 = pnand %p3534_p0, %p3528_p11 }
  0x23   :  { %3538 = shalt.err (!%p3535_p1)
}
  0x24   :  { %46 = dma.hbm_to_vmem [thread:$0]  %s5279_s4, 8192, %s41_s21, [#allocation7], %s3544_s16, %s3544_s16, %s3545_s17  }
  0x25   :  { %3539 = dma.done.wait [#allocation5], 4096  }
  0x26   :  { %3540 = vsyncadd [#allocation5], 4294963200 }
  0x27   :  { %3541 = dma.done.wait [#allocation7], 8192  }
  0x28   :  { %3542 = vsyncadd [#allocation7], 4294959104  ;;  %v5284_v1 = vmov 0   ;;  %v2893_v2 = vld [vmem:[%s5276_s1 + $0x4] ss:$16 sps:$4 sm:$0xff]   ;;  %vm134_vm0 = vcmask 130048  }
  0x29   :  { %179 = vmatprep.mubr.bf16.mxu0 %v5284_v1  ;;  %252 = vmatprep.mubr.bf16.mxu1 %v5284_v1  ;;  %v2895_v3 = vld [vmem:[%s5276_s1 + $0xc] ss:$16 sps:$4 sm:$0xff]   ;;  %v2897_v4 = vld [vmem:[%s5276_s1] ss:$16 sps:$4 sm:$0xff]   ;;  %v2898_v5 = vld [vmem:[%s5276_s1 + $0x8] ss:$16 sps:$4 sm:$0xff]  }
  0x2a   :  { %147 = vmatprep.subr.bf16.mxu0 %v2893_v2  ;;  %220 = vmatprep.subr.bf16.mxu1 %v2895_v3  ;;  %v2899_v6 = vld [vmem:[%s5275_s0] sm:$0xff]   ;;  %v3645_v10 = vld [vmem:[#allocation4 + $0x8] ss:$16 sps:$4 sm:$0xff]   ;;  %v2925_v26 = vld [vmem:[%s5275_s0 + $0x10] sm:$0xff]   ;;  %vm2717_vm1 = vcmask 7168  }
  0x2b   :  { %148 = vmatpush1.bf16.msra.mxu0 %v2897_v4  ;;  %221 = vmatpush1.bf16.msra.mxu1 %v2898_v5  ;;  %v3638_v7 = vld [vmem:[#allocation4 + $0x4] ss:$16 sps:$4 sm:$0xff]   ;;  %v3640_v8 = vld [vmem:[#allocation4 + $0xc] ss:$16 sps:$4 sm:$0xff]   ;;  %v3642_v9 = vld [vmem:[#allocation4] ss:$16 sps:$4 sm:$0xff]  }
  0x2c   :  { %543 = vmatprep.subr.bf16.mxu0 %v3638_v7  ;;  %v3649_v11 = vld [vmem:[#allocation4 + $0x24] ss:$16 sps:$4 sm:$0xff]   ;;  %584 = vmatprep.subr.bf16.mxu1 %v3640_v8  ;;  %v3653_v12 = vld [vmem:[#allocation4 + $0x2c] ss:$16 sps:$4 sm:$0xff]   ;;  %v3655_v13 = vld [vmem:[#allocation4 + $0x20] ss:$16 sps:$4 sm:$0xff]  }
  0x2d   :  { %v3657_v14 = vld [vmem:[#allocation4 + $0x28] ss:$16 sps:$4 sm:$0xff]   ;;  %v3666_v16 = vld [vmem:[#allocation4 + $0x44] ss:$16 sps:$4 sm:$0xff]   ;;  %v3669_v17 = vld [vmem:[#allocation4 + $0x4c] ss:$16 sps:$4 sm:$0xff]  }
  0x2e   :  { %2733 = vmatmul.mubr.msk.bf16.vlgmr.msra.gmra.mrb[0].mxu0 %vm134_vm0, %v2899_v6  ;;  %2737 = vmatmul.mubr.msk.bf16.vlgmr.msra.gmra.mrb[0].mxu1 %vm134_vm0, %v2899_v6  ;;  %v2912_v15 = vld [vmem:[%s5275_s0 + $0x8] sm:$0xff]   ;;  %v3672_v18 = vld [vmem:[#allocation4 + $0x40] ss:$16 sps:$4 sm:$0xff]   ;;  %v2938_v33 = vld [vmem:[%s5275_s0 + $0x18] sm:$0xff]  }
  0x2f   :  { %544 = vmatpush1.bf16.msra.mxu0 %v3642_v9  ;;  %585 = vmatpush1.bf16.msra.mxu1 %v3645_v10  ;;  %v3674_v19 = vld [vmem:[#allocation4 + $0x48] ss:$16 sps:$4 sm:$0xff]   ;;  %v3678_v20 = vld [vmem:[#allocation4 + $0x64] ss:$16 sps:$4 sm:$0xff]   ;;  %v3681_v21 = vld [vmem:[#allocation4 + $0x6c] ss:$16 sps:$4 sm:$0xff]  }
  0x30   :  { %545 = vmatprep.subr.bf16.mxu0 %v3649_v11  ;;  %586 = vmatprep.subr.bf16.mxu1 %v3653_v12  ;;  %v3685_v22 = vld [vmem:[#allocation4 + $0x60] ss:$16 sps:$4 sm:$0xff]   ;;  %v3688_v23 = vld [vmem:[#allocation4 + $0x68] ss:$16 sps:$4 sm:$0xff]   ;;  %v3693_v24 = vld [vmem:[#allocation4 + $0x84] ss:$16 sps:$4 sm:$0xff]  }
  0x31   :  { %189 = vmatprep.mubr.bf16.mxu0 %v5284_v1  ;;  %262 = vmatprep.mubr.bf16.mxu1 %v5284_v1  ;;  %v3697_v25 = vld [vmem:[#allocation4 + $0x8c] ss:$16 sps:$4 sm:$0xff]   ;;  %v3703_v27 = vld [vmem:[#allocation4 + $0x80] ss:$16 sps:$4 sm:$0xff]   ;;  %v3707_v28 = vld [vmem:[#allocation4 + $0x88] ss:$16 sps:$4 sm:$0xff]  }
  0x32   :  { %v3709_v29 = vld [vmem:[#allocation4 + $0xa4] ss:$16 sps:$4 sm:$0xff]   ;;  %v3712_v30 = vld [vmem:[#allocation4 + $0xac] ss:$16 sps:$4 sm:$0xff]   ;;  %v3717_v31 = vld [vmem:[#allocation4 + $0xa0] ss:$16 sps:$4 sm:$0xff]  }
  0x33   :  { %546 = vmatpush1.bf16.msra.mxu0 %v3655_v13  ;;  %587 = vmatpush1.bf16.msra.mxu1 %v3657_v14  ;;  %v3719_v32 = vld [vmem:[#allocation4 + $0xa8] ss:$16 sps:$4 sm:$0xff]   ;;  %v3727_v34 = vld [vmem:[#allocation4 + $0xc4] ss:$16 sps:$4 sm:$0xff]   ;;  %v3731_v35 = vld [vmem:[#allocation4 + $0xcc] ss:$16 sps:$4 sm:$0xff]  }
  0x34   :  { %547 = vmatprep.subr.bf16.mxu0 %v3666_v16  ;;  %588 = vmatprep.subr.bf16.mxu1 %v3669_v17  ;;  %v3733_v36 = vld [vmem:[#allocation4 + $0xc0] ss:$16 sps:$4 sm:$0xff]   ;;  %v3735_v37 = vld [vmem:[#allocation4 + $0xc8] ss:$16 sps:$4 sm:$0xff]   ;;  %v3737_v38 = vld [vmem:[#allocation4 + $0xe4] ss:$16 sps:$4 sm:$0xff]  }
  0x35   :  { %v3740_v39 = vld [vmem:[#allocation4 + $0xec] ss:$16 sps:$4 sm:$0xff]   ;;  %v3745_v40 = vld [vmem:[#allocation4 + $0xe0] ss:$16 sps:$4 sm:$0xff]   ;;  %v3749_v41 = vld [vmem:[#allocation4 + $0xe8] ss:$16 sps:$4 sm:$0xff]  }
  0x36   :  { %2734 = vmatmul.mubr.msk.bf16.gmra.mrb[4].mxu0 %vm134_vm0, %v2912_v15  ;;  %2738 = vmatmul.mubr.msk.bf16.gmra.mrb[4].mxu1 %vm134_vm0, %v2912_v15  ;;  %v3761_v42 = vld [vmem:[#allocation6 + $0x4] ss:$16 sps:$4 sm:$0xff]   ;;  %v3763_v43 = vld [vmem:[#allocation6 + $0xc] ss:$16 sps:$4 sm:$0xff]   ;;  %v3765_v44 = vld [vmem:[#allocation6] ss:$16 sps:$4 sm:$0xff]  }
  0x37   :  { %548 = vmatpush1.bf16.msra.mxu0 %v3672_v18  ;;  %199 = vmatprep.mubr.bf16.mxu0 %v5284_v1  ;;  %v3767_v45 = vld [vmem:[#allocation6 + $0x8] ss:$16 sps:$4 sm:$0xff]   ;;  %v3773_v46 = vld [vmem:[#allocation6 + $0x24] ss:$16 sps:$4 sm:$0xff]   ;;  %v3775_v47 = vld [vmem:[#allocation6 + $0x2c] ss:$16 sps:$4 sm:$0xff]  }
  0x38   :  { %589 = vmatpush1.bf16.msra.mxu1 %v3674_v19  ;;  %549 = vmatprep.subr.bf16.mxu0 %v3678_v20  ;;  %v3777_v48 = vld [vmem:[#allocation6 + $0x20] ss:$16 sps:$4 sm:$0xff]   ;;  %v3779_v49 = vld [vmem:[#allocation6 + $0x28] ss:$16 sps:$4 sm:$0xff]   ;;  %v3785_v50 = vld [vmem:[#allocation6 + $0x44] ss:$16 sps:$4 sm:$0xff]  }
  0x39   :  { %590 = vmatprep.subr.bf16.mxu1 %v3681_v21  ;;  %272 = vmatprep.mubr.bf16.mxu1 %v5284_v1  ;;  %v3787_v51 = vld [vmem:[#allocation6 + $0x4c] ss:$16 sps:$4 sm:$0xff]   ;;  %v3789_v52 = vld [vmem:[#allocation6 + $0x40] ss:$16 sps:$4 sm:$0xff]   ;;  %v3791_v53 = vld [vmem:[#allocation6 + $0x48] ss:$16 sps:$4 sm:$0xff]  }
  0x3a   :  { %5630 = vst [vmem:[#allocation10_spill] sm:$0xff] %v3787_v51  ;;  %5631 = vst [vmem:[#allocation11_spill] sm:$0xff] %v3789_v52  ;;  %v3797_v54 = vld [vmem:[#allocation6 + $0x64] ss:$16 sps:$4 sm:$0xff]   ;;  %v3799_v55 = vld [vmem:[#allocation6 + $0x6c] ss:$16 sps:$4 sm:$0xff]  }
  0x3b   :  { %550 = vmatpush1.bf16.msra.mxu0 %v3685_v22  ;;  %5632 = vst [vmem:[#allocation12_spill] sm:$0xff] %v3791_v53  ;;  %5633 = vst [vmem:[#allocation13_spill] sm:$0xff] %v3797_v54  ;;  %v3801_v56 = vld [vmem:[#allocation6 + $0x60] ss:$16 sps:$4 sm:$0xff]   ;;  %v3803_v57 = vld [vmem:[#allocation6 + $0x68] ss:$16 sps:$4 sm:$0xff]  }
  0x3c   :  { %591 = vmatpush1.bf16.msra.mxu1 %v3688_v23  ;;  %551 = vmatprep.subr.bf16.mxu0 %v3693_v24  ;;  %5634 = vst [vmem:[#allocation14_spill] sm:$0xff] %v3799_v55  ;;  %5635 = vst [vmem:[#allocation15_spill] sm:$0xff] %v3801_v56  ;;  %v3809_v58 = vld [vmem:[#allocation6 + $0x84] ss:$16 sps:$4 sm:$0xff]   ;;  %v3811_v59 = vld [vmem:[#allocation6 + $0x8c] ss:$16 sps:$4 sm:$0xff]  }
  0x3d   :  { %592 = vmatprep.subr.bf16.mxu1 %v3697_v25  ;;  %5636 = vst [vmem:[#allocation16_spill] sm:$0xff] %v3803_v57  ;;  %5637 = vst [vmem:[#allocation17_spill] sm:$0xff] %v3809_v58  ;;  %v3815_v60 = vld [vmem:[#allocation6 + $0x80] ss:$16 sps:$4 sm:$0xff]   ;;  %v3817_v61 = vld [vmem:[#allocation6 + $0x88] ss:$16 sps:$4 sm:$0xff]  }
  0x3e   :  { %2735 = vmatmul.mubr.msk.bf16.gmra.mrb[8].mxu0 %vm134_vm0, %v2925_v26  ;;  %2739 = vmatmul.mubr.msk.bf16.gmra.mrb[8].mxu1 %vm134_vm0, %v2925_v26  ;;  %5638 = vst [vmem:[#allocation18_spill] sm:$0xff] %v3811_v59  ;;  %5639 = vst [vmem:[#allocation19_spill] sm:$0xff] %v3815_v60  ;;  %v3821_v62 = vld [vmem:[#allocation6 + $0xa4] ss:$16 sps:$4 sm:$0xff]   ;;  %v3823_v63 = vld [vmem:[#allocation6 + $0xac] ss:$16 sps:$4 sm:$0xff]  }
  0x3f   :  { %552 = vmatpush1.bf16.msra.mxu0 %v3703_v27  ;;  %209 = vmatprep.mubr.bf16.mxu0 %v5284_v1  ;;  %5640 = vst [vmem:[#allocation20_spill] sm:$0xff] %v3817_v61  ;;  %5641 = vst [vmem:[#allocation21_spill] sm:$0xff] %v3821_v62  ;;  %v3825_v0 = vld [vmem:[#allocation6 + $0xa0] ss:$16 sps:$4 sm:$0xff]   ;;  %v3827_v2 = vld [vmem:[#allocation6 + $0xa8] ss:$16 sps:$4 sm:$0xff]  }
  0x40   :  { %593 = vmatpush1.bf16.msra.mxu1 %v3707_v28  ;;  %553 = vmatprep.subr.bf16.mxu0 %v3709_v29  ;;  %5642 = vst [vmem:[#allocation22_spill] sm:$0xff] %v3823_v63  ;;  %5643 = vst [vmem:[#allocation23_spill] sm:$0xff] %v3825_v0  ;;  %v3833_v3 = vld [vmem:[#allocation6 + $0xc4] ss:$16 sps:$4 sm:$0xff]   ;;  %v3835_v4 = vld [vmem:[#allocation6 + $0xcc] ss:$16 sps:$4 sm:$0xff]  }
  0x41   :  { %594 = vmatprep.subr.bf16.mxu1 %v3712_v30  ;;  %282 = vmatprep.mubr.bf16.mxu1 %v5284_v1  ;;  %5644 = vst [vmem:[#allocation24_spill] sm:$0xff] %v3827_v2  ;;  %5645 = vst [vmem:[#allocation25_spill] sm:$0xff] %v3833_v3  ;;  %v3837_v5 = vld [vmem:[#allocation6 + $0xc0] ss:$16 sps:$4 sm:$0xff]   ;;  %v3839_v6 = vld [vmem:[#allocation6 + $0xc8] ss:$16 sps:$4 sm:$0xff]  }
  0x42   :  { %5646 = vst [vmem:[#allocation26_spill] sm:$0xff] %v3835_v4  ;;  %5647 = vst [vmem:[#allocation27_spill] sm:$0xff] %v3837_v5  ;;  %v3845_v15 = vld [vmem:[#allocation6 + $0xe4] ss:$16 sps:$4 sm:$0xff]   ;;  %v3847_v26 = vld [vmem:[#allocation6 + $0xec] ss:$16 sps:$4 sm:$0xff]  }
  0x43   :  { %554 = vmatpush1.bf16.msra.mxu0 %v3717_v31  ;;  %5648 = vst [vmem:[#allocation28_spill] sm:$0xff] %v3839_v6  ;;  %5649 = vst [vmem:[#allocation29_spill] sm:$0xff] %v3845_v15 }
  0x44   :  { %595 = vmatpush1.bf16.msra.mxu1 %v3719_v32  ;;  %555 = vmatprep.subr.bf16.mxu0 %v3727_v34  ;;  %5650 = vst [vmem:[#allocation30_spill] sm:$0xff] %v3847_v26 }
  0x45   :  { %596 = vmatprep.subr.bf16.mxu1 %v3731_v35 }
  0x46   :  { %2736 = vmatmul.mubr.msk.bf16.gmra.mrb[12].mxu0 %vm134_vm0, %v2938_v33  ;;  %2740 = vmatmul.mubr.msk.bf16.gmra.mrb[12].mxu1 %vm134_vm0, %v2938_v33  ;;  %v3849_v33 = vld [vmem:[#allocation6 + $0xe0] ss:$16 sps:$4 sm:$0xff]  }
  0x47   :  { %556 = vmatpush1.bf16.msra.mxu0 %v3733_v36  ;;  %575 = vmatprep.mubr.bf16.mxu0 %v5284_v1  ;;  %5651 = vst [vmem:[#allocation31_spill] sm:$0xff] %v3849_v33 }
  0x48   :  { %597 = vmatpush1.bf16.msra.mxu1 %v3735_v37  ;;  %557 = vmatprep.subr.bf16.mxu0 %v3737_v38 }
  0x49   :  { %598 = vmatprep.subr.bf16.mxu1 %v3740_v39  ;;  %616 = vmatprep.mubr.bf16.mxu1 %v5284_v1 }
  0x4b   :  { %558 = vmatpush1.bf16.msra.mxu0 %v3745_v40 }
  0x4c   :  { %599 = vmatpush1.bf16.msra.mxu1 %v3749_v41  ;;  %1039 = vmatprep.subr.bf16.mxu0 %v3761_v42 }
  0x4d   :  { %1080 = vmatprep.subr.bf16.mxu1 %v3763_v43 }
  0x4e   :  { %576 = vmatmul.mubr.bf16.vlgmr.msra.gmra.mrb[16].mxu0 %v5284_v1 }
  0x4f   :  { %617 = vmatmul.mubr.bf16.vlgmr.msra.gmra.mrb[16].mxu1 %v5284_v1  ;;  %1040 = vmatpush1.bf16.msra.mxu0 %v3765_v44  ;;  %v3851_v1 = vld [vmem:[#allocation6 + $0xe8] ss:$16 sps:$4 sm:$0xff]  }
  0x50   :  { %1081 = vmatpush1.bf16.msra.mxu1 %v3767_v45  ;;  %1041 = vmatprep.subr.bf16.mxu0 %v3773_v46  ;;  %5652 = vst [vmem:[#allocation32_spill] sm:$0xff] %v3851_v1 }
  0x51   :  { %1082 = vmatprep.subr.bf16.mxu1 %v3775_v47 }
  0x53   :  { %1042 = vmatpush1.bf16.msra.mxu0 %v3777_v48 }
  0x54   :  { %1083 = vmatpush1.bf16.msra.mxu1 %v3779_v49  ;;  %1043 = vmatprep.subr.bf16.mxu0 %v3785_v50 }
  0x55   :  { %1084 = vmatprep.subr.bf16.mxu1 %v3787_v51 }
  0x57   :  { %1044 = vmatpush1.bf16.msra.mxu0 %v3789_v52 }
  0x58   :  { %1085 = vmatpush1.bf16.msra.mxu1 %v3791_v53  ;;  %1045 = vmatprep.subr.bf16.mxu0 %v3797_v54 }
  0x59   :  { %1086 = vmatprep.subr.bf16.mxu1 %v3799_v55 }
  0x5b   :  { %1046 = vmatpush1.bf16.msra.mxu0 %v3801_v56 }
  0x5c   :  { %1087 = vmatpush1.bf16.msra.mxu1 %v3803_v57  ;;  %1047 = vmatprep.subr.bf16.mxu0 %v3809_v58 }
  0x5d   :  { %1088 = vmatprep.subr.bf16.mxu1 %v3811_v59 }
  0x5f   :  { %1048 = vmatpush1.bf16.msra.mxu0 %v3815_v60 }
  0x60   :  { %1089 = vmatpush1.bf16.msra.mxu1 %v3817_v61  ;;  %1049 = vmatprep.subr.bf16.mxu0 %v3821_v62 }
  0x61   :  { %1090 = vmatprep.subr.bf16.mxu1 %v3823_v63 }
  0x63   :  { %1050 = vmatpush1.bf16.msra.mxu0 %v3825_v0  ;;  %v3929_v0 = vld [vmem:[#allocation6 + $0x1cc] ss:$16 sps:$4 sm:$0xff]  }
  0x64   :  { %1091 = vmatpush1.bf16.msra.mxu1 %v3827_v2  ;;  %1051 = vmatprep.subr.bf16.mxu0 %v3833_v3  ;;  %v3863_v3 = vld [vmem:[#allocation6 + $0x108] ss:$16 sps:$4 sm:$0xff]   ;;  %v3913_v2 = vld [vmem:[#allocation6 + $0x1a4] ss:$16 sps:$4 sm:$0xff]   ;;  %5678 = vst [vmem:[#allocation58_spill] sm:$0xff] %v3929_v0 }
  0x65   :  { %1092 = vmatprep.subr.bf16.mxu1 %v3835_v4  ;;  %v3857_v4 = vld [vmem:[#allocation6 + $0x104] ss:$16 sps:$4 sm:$0xff]   ;;  %5656 = vst [vmem:[#allocation36_spill] sm:$0xff] %v3863_v3  ;;  %5673 = vst [vmem:[#allocation53_spill] sm:$0xff] %v3913_v2 }
  0x66   :  { %5653 = vst [vmem:[#allocation33_spill] sm:$0xff] %v3857_v4 }
  0x67   :  { %1052 = vmatpush1.bf16.msra.mxu0 %v3837_v5  ;;  %v3859_v5 = vld [vmem:[#allocation6 + $0x10c] ss:$16 sps:$4 sm:$0xff]  }
  0x68   :  { %1093 = vmatpush1.bf16.msra.mxu1 %v3839_v6  ;;  %1053 = vmatprep.subr.bf16.mxu0 %v3845_v15  ;;  %5654 = vst [vmem:[#allocation34_spill] sm:$0xff] %v3859_v5  ;;  %v3861_v6 = vld [vmem:[#allocation6 + $0x100] ss:$16 sps:$4 sm:$0xff]   ;;  %v3875_v15 = vld [vmem:[#allocation6 + $0x128] ss:$16 sps:$4 sm:$0xff]  }
  0x69   :  { %1094 = vmatprep.subr.bf16.mxu1 %v3847_v26  ;;  %5655 = vst [vmem:[#allocation35_spill] sm:$0xff] %v3861_v6  ;;  %v3869_v26 = vld [vmem:[#allocation6 + $0x124] ss:$16 sps:$4 sm:$0xff]   ;;  %5660 = vst [vmem:[#allocation40_spill] sm:$0xff] %v3875_v15 }
  0x6a   :  { %5657 = vst [vmem:[#allocation37_spill] sm:$0xff] %v3869_v26 }
  0x6b   :  { %1054 = vmatpush1.bf16.msra.mxu0 %v3849_v33  ;;  %v3871_v33 = vld [vmem:[#allocation6 + $0x12c] ss:$16 sps:$4 sm:$0xff]  }
  0x6c   :  { %1095 = vmatpush1.bf16.msra.mxu1 %v3851_v1  ;;  %1055 = vmatprep.subr.bf16.mxu0 %v3857_v4  ;;  %5658 = vst [vmem:[#allocation38_spill] sm:$0xff] %v3871_v33  ;;  %v3873_v1 = vld [vmem:[#allocation6 + $0x120] ss:$16 sps:$4 sm:$0xff]   ;;  %v3887_v4 = vld [vmem:[#allocation6 + $0x148] ss:$16 sps:$4 sm:$0xff]  }
  0x6d   :  { %1096 = vmatprep.subr.bf16.mxu1 %v3859_v5  ;;  %5659 = vst [vmem:[#allocation39_spill] sm:$0xff] %v3873_v1  ;;  %v3881_v5 = vld [vmem:[#allocation6 + $0x144] ss:$16 sps:$4 sm:$0xff]   ;;  %5664 = vst [vmem:[#allocation44_spill] sm:$0xff] %v3887_v4 }
  0x6e   :  { %5661 = vst [vmem:[#allocation41_spill] sm:$0xff] %v3881_v5 }
  0x6f   :  { %1056 = vmatpush1.bf16.msra.mxu0 %v3861_v6  ;;  %v3883_v6 = vld [vmem:[#allocation6 + $0x14c] ss:$16 sps:$4 sm:$0xff]  }
  0x70   :  { %1097 = vmatpush1.bf16.msra.mxu1 %v3863_v3  ;;  %1057 = vmatprep.subr.bf16.mxu0 %v3869_v26  ;;  %5662 = vst [vmem:[#allocation42_spill] sm:$0xff] %v3883_v6  ;;  %v3885_v3 = vld [vmem:[#allocation6 + $0x140] ss:$16 sps:$4 sm:$0xff]   ;;  %v3899_v26 = vld [vmem:[#allocation6 + $0x168] ss:$16 sps:$4 sm:$0xff]  }
  0x71   :  { %1098 = vmatprep.subr.bf16.mxu1 %v3871_v33  ;;  %5663 = vst [vmem:[#allocation43_spill] sm:$0xff] %v3885_v3  ;;  %v3893_v33 = vld [vmem:[#allocation6 + $0x164] ss:$16 sps:$4 sm:$0xff]   ;;  %5668 = vst [vmem:[#allocation48_spill] sm:$0xff] %v3899_v26 }
  0x72   :  { %5665 = vst [vmem:[#allocation45_spill] sm:$0xff] %v3893_v33 }
  0x73   :  { %1058 = vmatpush1.bf16.msra.mxu0 %v3873_v1  ;;  %v3895_v1 = vld [vmem:[#allocation6 + $0x16c] ss:$16 sps:$4 sm:$0xff]  }
  0x74   :  { %1099 = vmatpush1.bf16.msra.mxu1 %v3875_v15  ;;  %1059 = vmatprep.subr.bf16.mxu0 %v3881_v5  ;;  %5666 = vst [vmem:[#allocation46_spill] sm:$0xff] %v3895_v1  ;;  %v3897_v15 = vld [vmem:[#allocation6 + $0x160] ss:$16 sps:$4 sm:$0xff]   ;;  %v3911_v5 = vld [vmem:[#allocation6 + $0x188] ss:$16 sps:$4 sm:$0xff]  }
  0x75   :  { %1100 = vmatprep.subr.bf16.mxu1 %v3883_v6  ;;  %5667 = vst [vmem:[#allocation47_spill] sm:$0xff] %v3897_v15  ;;  %v3905_v6 = vld [vmem:[#allocation6 + $0x184] ss:$16 sps:$4 sm:$0xff]   ;;  %5672 = vst [vmem:[#allocation52_spill] sm:$0xff] %v3911_v5 }
  0x76   :  { %5669 = vst [vmem:[#allocation49_spill] sm:$0xff] %v3905_v6 }
  0x77   :  { %1060 = vmatpush1.bf16.msra.mxu0 %v3885_v3  ;;  %v3907_v3 = vld [vmem:[#allocation6 + $0x18c] ss:$16 sps:$4 sm:$0xff]  }
  0x78   :  { %1101 = vmatpush1.bf16.msra.mxu1 %v3887_v4  ;;  %1061 = vmatprep.subr.bf16.mxu0 %v3893_v33  ;;  %5670 = vst [vmem:[#allocation50_spill] sm:$0xff] %v3907_v3  ;;  %v3909_v4 = vld [vmem:[#allocation6 + $0x180] ss:$16 sps:$4 sm:$0xff]   ;;  %v3917_v33 = vld [vmem:[#allocation6 + $0x1ac] ss:$16 sps:$4 sm:$0xff]  }
  0x79   :  { %1102 = vmatprep.subr.bf16.mxu1 %v3895_v1  ;;  %5671 = vst [vmem:[#allocation51_spill] sm:$0xff] %v3909_v4  ;;  %5674 = vst [vmem:[#allocation54_spill] sm:$0xff] %v3917_v33  ;;  %v3927_v1 = vld [vmem:[#allocation6 + $0x1c4] ss:$16 sps:$4 sm:$0xff]  }
  0x7a   :  { %5677 = vst [vmem:[#allocation57_spill] sm:$0xff] %v3927_v1 }
  0x7b   :  { %1062 = vmatpush1.bf16.msra.mxu0 %v3897_v15  ;;  %v3923_v15 = vld [vmem:[#allocation6 + $0x1a8] ss:$16 sps:$4 sm:$0xff]  }
  0x7c   :  { %1103 = vmatpush1.bf16.msra.mxu1 %v3899_v26  ;;  %1063 = vmatprep.subr.bf16.mxu0 %v3905_v6  ;;  %v3921_v26 = vld [vmem:[#allocation6 + $0x1a0] ss:$16 sps:$4 sm:$0xff]   ;;  %5676 = vst [vmem:[#allocation56_spill] sm:$0xff] %v3923_v15  ;;  %v3548_v6 = vmov 0.0|0.0  }
  0x7d   :  { %1104 = vmatprep.subr.bf16.mxu1 %v3907_v3  ;;  %5675 = vst [vmem:[#allocation55_spill] sm:$0xff] %v3921_v26  ;;  %1071 = vmatprep.mubr.bf16.mxu0 %v3548_v6 }
  0x7e   :  { %1112 = vmatprep.mubr.bf16.mxu1 %v3548_v6  ;;  %v3945_v6 = vld [vmem:[#allocation6 + $0x1e0] ss:$16 sps:$4 sm:$0xff]  }
  0x7f   :  { %1064 = vmatpush1.bf16.msra.mxu0 %v3909_v4  ;;  %v3935_v4 = vld [vmem:[#allocation6 + $0x1c8] ss:$16 sps:$4 sm:$0xff]   ;;  %5683 = vst [vmem:[#allocation63_spill] sm:$0xff] %v3945_v6 }
  0x80   :  { %1105 = vmatpush1.bf16.msra.mxu1 %v3911_v5  ;;  %1065 = vmatprep.subr.bf16.mxu0 %v3913_v2  ;;  %v3933_v5 = vld [vmem:[#allocation6 + $0x1c0] ss:$16 sps:$4 sm:$0xff]   ;;  %5680 = vst [vmem:[#allocation60_spill] sm:$0xff] %v3935_v4  ;;  %v3941_v2 = vld [vmem:[#allocation6 + $0x1ec] ss:$16 sps:$4 sm:$0xff]  }
  0x81   :  { %1106 = vmatprep.subr.bf16.mxu1 %v3917_v33  ;;  %5679 = vst [vmem:[#allocation59_spill] sm:$0xff] %v3933_v5  ;;  %v3939_v33 = vld [vmem:[#allocation6 + $0x1e4] ss:$16 sps:$4 sm:$0xff]   ;;  %5682 = vst [vmem:[#allocation62_spill] sm:$0xff] %v3941_v2 }
  0x82   :  { %5681 = vst [vmem:[#allocation61_spill] sm:$0xff] %v3939_v33 }
  0x83   :  { %1066 = vmatpush1.bf16.msra.mxu0 %v3921_v26  ;;  %v3947_v26 = vld [vmem:[#allocation6 + $0x1e8] ss:$16 sps:$4 sm:$0xff]  }
  0x84   :  { %1107 = vmatpush1.bf16.msra.mxu1 %v3923_v15  ;;  %1067 = vmatprep.subr.bf16.mxu0 %v3927_v1  ;;  %5684 = vst [vmem:[#allocation64_spill] sm:$0xff] %v3947_v26 }
  0x85   :  { %1108 = vmatprep.subr.bf16.mxu1 %v3929_v0  ;;  %v74_v0 = vlaneseq }
  0x87   :  { %1068 = vmatpush1.bf16.msra.mxu0 %v3933_v5  ;;  %v3955_v5 = vshrl.u32 %v74_v0, 7 }
  0x88   :  { %1109 = vmatpush1.bf16.msra.mxu1 %v3935_v4  ;;  %1069 = vmatprep.subr.bf16.mxu0 %v3939_v33 }
  0x89   :  { %1110 = vmatprep.subr.bf16.mxu1 %v3941_v2  ;;  %5685 = vst [vmem:[#allocation65_spill] sm:$0xff] %v3955_v5  ;;  %v5378_v4 = vsub.s32 2, %v3955_v5  ;;  %v5387_v1 = vsub.s32 3, %v3955_v5  ;;  %v5388_v15 = vsub.s32 0, %v3955_v5  ;;  %v72_v2 = vld [vmem:[%s5278_s3] sm:$0xf] }
  0x8b   :  { %1070 = vmatpush1.bf16.msra.mxu0 %v3945_v6  ;;  %v5395_v6 = vsub.s32 1, %v3955_v5  ;;  %v77_v33 = vrot.slane %v72_v2, %v5388_v15 }
  0x8c   :  { %1111 = vmatpush1.bf16.msra.mxu1 %v3947_v26  ;;  %1149 = vmatprep.subr.bf16.mxu0 %v3638_v7  ;;  %v3966_v7 = vrot.slane %v72_v2, %v5378_v4  ;;  %v3974_v26 = vrot.slane %v72_v2, %v5387_v1 }
  0x8d   :  { %1190 = vmatprep.subr.bf16.mxu1 %v3640_v8  ;;  %v81_v62 = vrot.slane %v72_v2, %v5395_v6 }
 0x101   :  { %v3968_v8 = vpop.f32.mrb[0].mxu0  ;;  %v3970_v0 = vpop.f32.mrb[0].mxu1 }
 0x102   :  { %v183_v3 = vpop.f32.mrb[1].mxu0  ;;  %v256_v63 = vpop.f32.mrb[1].mxu1 }
 0x103   :  { %v185_v61 = vpop.f32.mrb[2].mxu0  ;;  %v258_v60 = vpop.f32.mrb[2].mxu1 }
 0x104   :  { %v3980_v4 = vadd.f32 %v185_v61, %v77_v33  ;;  %v187_v59 = vpop.f32.mrb[3].mxu0  ;;  %v3983_v58 = vadd.f32 %v258_v60, %v3966_v7  ;;  %v260_v57 = vpop.f32.mrb[3].mxu1 }
 0x105   :  { %v3985_v56 = vadd.f32 %v187_v59, %v81_v62  ;;  %v3988_v1 = vadd.f32 %v260_v57, %v3974_v26 }
 0x106   :  { %5686 = vst [vmem:[#allocation66_spill] sm:$0xff] %v3980_v4  ;;  %5687 = vst [vmem:[#allocation67_spill] sm:$0xff] %v3983_v58 }
 0x107   :  { %5688 = vst [vmem:[#allocation68_spill] sm:$0xff] %v3985_v56  ;;  %5689 = vst [vmem:[#allocation69_spill] sm:$0xff] %v3988_v1 }
 0x109   :  { %v191_v15 = vpop.f32.mrb[4].mxu0  ;;  %v264_v55 = vpop.f32.mrb[4].mxu1 }
 0x10a   :  { %v3990_v54 = vadd.f32 %v191_v15, %v77_v33  ;;  %v193_v5 = vpop.f32.mrb[5].mxu0  ;;  %v3993_v2 = vadd.f32 %v264_v55, %v3966_v7  ;;  %v266_v61 = vpop.f32.mrb[5].mxu1 }
 0x10b   :  { %v3995_v6 = vadd.f32 %v193_v5, %v81_v62  ;;  %v195_v4 = vpop.f32.mrb[6].mxu0  ;;  %v3998_v60 = vadd.f32 %v266_v61, %v3974_v26  ;;  %v268_v59 = vpop.f32.mrb[6].mxu1 }
 0x10c   :  { %5690 = vst [vmem:[#allocation70_spill] sm:$0xff] %v3990_v54  ;;  %5691 = vst [vmem:[#allocation71_spill] sm:$0xff] %v3993_v2  ;;  %v4000_v56 = vadd.f32 %v195_v4, %v77_v33  ;;  %v197_v57 = vpop.f32.mrb[7].mxu0  ;;  %v4003_v1 = vadd.f32 %v268_v59, %v3966_v7  ;;  %v270_v15 = vpop.f32.mrb[7].mxu1 }
 0x10d   :  { %5692 = vst [vmem:[#allocation72_spill] sm:$0xff] %v3995_v6  ;;  %5693 = vst [vmem:[#allocation73_spill] sm:$0xff] %v3998_v60  ;;  %v4005_v54 = vadd.f32 %v197_v57, %v81_v62  ;;  %v4008_v55 = vadd.f32 %v270_v15, %v3974_v26 }
 0x10e   :  { %5694 = vst [vmem:[#allocation74_spill] sm:$0xff] %v4000_v56  ;;  %5695 = vst [vmem:[#allocation75_spill] sm:$0xff] %v4003_v1 }
 0x10f   :  { %5696 = vst [vmem:[#allocation76_spill] sm:$0xff] %v4005_v54  ;;  %5697 = vst [vmem:[#allocation77_spill] sm:$0xff] %v4008_v55 }
 0x111   :  { %v201_v2 = vpop.f32.mrb[8].mxu0  ;;  %v274_v5 = vpop.f32.mrb[8].mxu1 }
 0x112   :  { %v4010_v6 = vadd.f32 %v201_v2, %v77_v33  ;;  %v203_v58 = vpop.f32.mrb[9].mxu0  ;;  %v4013_v61 = vadd.f32 %v274_v5, %v3966_v7  ;;  %v276_v4 = vpop.f32.mrb[9].mxu1 }
 0x113   :  { %v4015_v56 = vadd.f32 %v203_v58, %v81_v62  ;;  %v205_v60 = vpop.f32.mrb[10].mxu0  ;;  %v4018_v59 = vadd.f32 %v276_v4, %v3974_v26  ;;  %v278_v57 = vpop.f32.mrb[10].mxu1 }
 0x114   :  { %5698 = vst [vmem:[#allocation78_spill] sm:$0xff] %v4010_v6  ;;  %5699 = vst [vmem:[#allocation79_spill] sm:$0xff] %v4013_v61  ;;  %v4020_v54 = vadd.f32 %v205_v60, %v77_v33  ;;  %v207_v15 = vpop.f32.mrb[11].mxu0  ;;  %v4023_v55 = vadd.f32 %v278_v57, %v3966_v7  ;;  %v280_v2 = vpop.f32.mrb[11].mxu1 }
 0x115   :  { %5700 = vst [vmem:[#allocation80_spill] sm:$0xff] %v4015_v56  ;;  %5701 = vst [vmem:[#allocation81_spill] sm:$0xff] %v4018_v59  ;;  %v4025_v6 = vadd.f32 %v207_v15, %v81_v62  ;;  %v4028_v5 = vadd.f32 %v280_v2, %v3974_v26 }
 0x116   :  { %5702 = vst [vmem:[#allocation82_spill] sm:$0xff] %v4020_v54  ;;  %5703 = vst [vmem:[#allocation83_spill] sm:$0xff] %v4023_v55 }
 0x117   :  { %5704 = vst [vmem:[#allocation84_spill] sm:$0xff] %v4025_v6  ;;  %5705 = vst [vmem:[#allocation85_spill] sm:$0xff] %v4028_v5 }
 0x119   :  { %v211_v61 = vpop.f32.mrb[12].mxu0  ;;  %v284_v58 = vpop.f32.mrb[12].mxu1 }
 0x11a   :  { %v4030_v56 = vadd.f32 %v211_v61, %v77_v33  ;;  %v213_v1 = vpop.f32.mrb[13].mxu0  ;;  %v4033_v4 = vadd.f32 %v284_v58, %v3966_v7  ;;  %v286_v60 = vpop.f32.mrb[13].mxu1 }
 0x11b   :  { %v4035_v54 = vadd.f32 %v213_v1, %v81_v62  ;;  %v215_v59 = vpop.f32.mrb[14].mxu0  ;;  %v4038_v57 = vadd.f32 %v286_v60, %v3974_v26  ;;  %v288_v15 = vpop.f32.mrb[14].mxu1  ;;  %v182_v1 = vadd.f32 %v3968_v8, %v77_v33  ;;  %v255_v60 = vadd.f32 %v3970_v0, %v3966_v7 }
 0x11c   :  { %5706 = vst [vmem:[#allocation86_spill] sm:$0xff] %v4030_v56  ;;  %5707 = vst [vmem:[#allocation87_spill] sm:$0xff] %v4033_v4  ;;  %v4040_v6 = vadd.f32 %v215_v59, %v77_v33  ;;  %v217_v2 = vpop.f32.mrb[15].mxu0  ;;  %v4043_v5 = vadd.f32 %v288_v15, %v3966_v7  ;;  %v290_v61 = vpop.f32.mrb[15].mxu1  ;;  %v257_v59 = vadd.f32 %v256_v63, %v3974_v26 }
 0x11d   :  { %5708 = vst [vmem:[#allocation88_spill] sm:$0xff] %v4035_v54  ;;  %5709 = vst [vmem:[#allocation89_spill] sm:$0xff] %v4038_v57  ;;  %v4045_v56 = vadd.f32 %v217_v2, %v81_v62  ;;  %v4048_v58 = vadd.f32 %v290_v61, %v3974_v26  ;;  %v184_v54 = vadd.f32 %v183_v3, %v81_v62 }
 0x11e   :  { %5710 = vst [vmem:[#allocation90_spill] sm:$0xff] %v4040_v6  ;;  %5711 = vst [vmem:[#allocation91_spill] sm:$0xff] %v4043_v5 }
 0x11f   :  { %5712 = vst [vmem:[#allocation92_spill] sm:$0xff] %v4045_v56  ;;  %5713 = vst [vmem:[#allocation93_spill] sm:$0xff] %v4048_v58 }
 0x121   :  { %v577_v57 = vpop.f32.mrb[16].mxu0 }
 0x122   :  { %v625_v6 = vadd.f32 %v577_v57, %v182_v1  ;;  %v618_v4 = vpop.f32.mrb[16].mxu1  ;;  %v579_v55 = vpop.f32.mrb[17].mxu0  ;;  %v5745_v1 = vld [vmem:[#allocation40_spill] sm:$0xff] }
 0x123   :  { %v627_v15 = vadd.f32 %v618_v4, %v255_v60  ;;  %v626_v5 = vadd.f32 %v579_v55, %v184_v54  ;;  %v620_v53 = vpop.f32.mrb[17].mxu1  ;;  %v581_v2 = vpop.f32.mrb[18].mxu0  ;;  %v5746_v60 = vld [vmem:[#allocation41_spill] sm:$0xff] }
 0x124   :  { %v2773_v56 = vmul.f32 -1.442695, %v625_v6  ;;  %v628_v52 = vadd.f32 %v620_v53, %v257_v59  ;;  %v582_v61 = vpop.f32.mrb[19].mxu0  ;;  %v622_v58 = vpop.f32.mrb[18].mxu1  ;;  %v5747_v59 = vld [vmem:[#allocation42_spill] sm:$0xff]  ;;  %v5749_v2 = vld [vmem:[#allocation44_spill] sm:$0xff] }
 0x125   :  { %v2774_v51 = vmul.f32 -1.442695, %v626_v5  ;;  %v623_v33 = vpop.f32.mrb[19].mxu1  ;;  %v2775_v62 = vmul.f32 -1.442695, %v627_v15  ;;  %v5748_v15 = vld [vmem:[#allocation43_spill] sm:$0xff] }
 0x126   :  { %3047 = vpow2.f32 %v2773_v56  ;;  %v5750_v61 = vld [vmem:[#allocation45_spill] sm:$0xff]  ;;  %v5751_v33 = vld [vmem:[#allocation46_spill] sm:$0xff] }
 0x127   :  { %3049 = vpow2.f32 %v2774_v51 }
 0x128   :  { %3051 = vpow2.f32 %v2775_v62  ;;  %v5752_v62 = vld [vmem:[#allocation47_spill] sm:$0xff] }
 0x129   :  { %3053 = vtanh.f32 %v628_v52  ;;  %v5714_v52 = vmov 0  }
 0x130   :  { %v3048_v3 = vpop.eup %3047 }
 0x131   :  { %v638_v7 = vadd.f32 1.0, %v3048_v3  ;;  %v3050_v63 = vpop.eup %3049  ;;  %v5753_v3 = vld [vmem:[#allocation48_spill] sm:$0xff] }
 0x132   :  { %v639_v26 = vadd.f32 1.0, %v3050_v63  ;;  %v3052_v54 = vpop.eup %3051  ;;  %v5755_v63 = vld [vmem:[#allocation50_spill] sm:$0xff] }
 0x133   :  { %3055 = vrcp.f32 %v638_v7  ;;  %v3054_v8 = vpop.eup %3053  ;;  %v640_v55 = vadd.f32 1.0, %v3052_v54  ;;  %v5754_v7 = vld [vmem:[#allocation49_spill] sm:$0xff]  ;;  %v5757_v54 = vld [vmem:[#allocation52_spill] sm:$0xff] }
 0x134   :  { %3057 = vrcp.f32 %v639_v26  ;;  %v5756_v26 = vld [vmem:[#allocation51_spill] sm:$0xff] }
 0x135   :  { %3059 = vrcp.f32 %v640_v55  ;;  %v5762_v55 = vld [vmem:[#allocation57_spill] sm:$0xff] }
 0x13d   :  { %v3056_v0 = vpop.eup %3055 }
 0x13e   :  { %v649_v6 = vmul.f32 %v3056_v0, %v3054_v8  ;;  %v3058_v53 = vpop.eup %3057  ;;  %v5758_v8 = vld [vmem:[#allocation53_spill] sm:$0xff]  ;;  %v5759_v0 = vld [vmem:[#allocation54_spill] sm:$0xff] }
 0x13f   :  { %v648_v4 = vmul.f32 0.0, %v3058_v53  ;;  %v3060_v51 = vpop.eup %3059  ;;  %v5761_v53 = vld [vmem:[#allocation56_spill] sm:$0xff] }
 0x141   :  { %v4054_v5 = vadd.f32 %v649_v6, %v648_v4  ;;  %v5760_v6 = vld [vmem:[#allocation55_spill] sm:$0xff]  ;;  %v5763_v4 = vld [vmem:[#allocation58_spill] sm:$0xff] }
 0x143   :  { %3061 = vtanh.f32 %v4054_v5 }
 0x14d   :  { %v3062_v56 = vpop.eup %3061 }
 0x14e   :  { %v652_v57 = vmul.f32 %v3062_v56, %v3060_v51  ;;  %v5764_v51 = vld [vmem:[#allocation59_spill] sm:$0xff]  ;;  %v5765_v56 = vld [vmem:[#allocation60_spill] sm:$0xff] }
 0x150   :  { %v653_v58 = vpack.c.bf16 %v652_v57, %v652_v57  ;;  %v5766_v57 = vld [vmem:[#allocation61_spill] sm:$0xff] }
 0x152   :  { %1072 = vmatmul.mubr.bf16.vlgmr.msra.gmra.mrb[20].mxu0 %v653_v58  ;;  %1113 = vmatmul.mubr.bf16.vlgmr.msra.gmra.mrb[20].mxu1 %v653_v58 }
 0x153   :  { %1150 = vmatpush1.bf16.msra.mxu0 %v3642_v9  ;;  %1191 = vmatpush1.bf16.msra.mxu1 %v3645_v10  ;;  %v5715_v9 = vld [vmem:[#allocation10_spill] sm:$0xff]  ;;  %v5716_v10 = vld [vmem:[#allocation11_spill] sm:$0xff] }
 0x154   :  { %1151 = vmatprep.subr.bf16.mxu0 %v3649_v11  ;;  %1192 = vmatprep.subr.bf16.mxu1 %v3653_v12  ;;  %v5717_v11 = vld [vmem:[#allocation12_spill] sm:$0xff]  ;;  %v5718_v12 = vld [vmem:[#allocation13_spill] sm:$0xff] }
 0x155   :  { %1181 = vmatprep.mubr.bf16.mxu0 %v5714_v52  ;;  %1222 = vmatprep.mubr.bf16.mxu1 %v5714_v52 }
 0x157   :  { %1152 = vmatpush1.bf16.msra.mxu0 %v3655_v13  ;;  %1193 = vmatpush1.bf16.msra.mxu1 %v3657_v14  ;;  %v5719_v13 = vld [vmem:[#allocation14_spill] sm:$0xff]  ;;  %v5720_v14 = vld [vmem:[#allocation15_spill] sm:$0xff] }
 0x158   :  { %1153 = vmatprep.subr.bf16.mxu0 %v3666_v16  ;;  %1194 = vmatprep.subr.bf16.mxu1 %v3669_v17  ;;  %v5721_v16 = vld [vmem:[#allocation16_spill] sm:$0xff]  ;;  %v5722_v17 = vld [vmem:[#allocation17_spill] sm:$0xff] }
 0x15b   :  { %1154 = vmatpush1.bf16.msra.mxu0 %v3672_v18  ;;  %1195 = vmatpush1.bf16.msra.mxu1 %v3674_v19  ;;  %v5723_v18 = vld [vmem:[#allocation18_spill] sm:$0xff]  ;;  %v5724_v19 = vld [vmem:[#allocation19_spill] sm:$0xff] }
 0x15c   :  { %1155 = vmatprep.subr.bf16.mxu0 %v3678_v20  ;;  %1196 = vmatprep.subr.bf16.mxu1 %v3681_v21  ;;  %v5725_v20 = vld [vmem:[#allocation20_spill] sm:$0xff]  ;;  %v5726_v21 = vld [vmem:[#allocation21_spill] sm:$0xff] }
 0x15f   :  { %1156 = vmatpush1.bf16.msra.mxu0 %v3685_v22  ;;  %1197 = vmatpush1.bf16.msra.mxu1 %v3688_v23  ;;  %v5727_v22 = vld [vmem:[#allocation22_spill] sm:$0xff]  ;;  %v5728_v23 = vld [vmem:[#allocation23_spill] sm:$0xff] }
 0x160   :  { %1157 = vmatprep.subr.bf16.mxu0 %v3693_v24  ;;  %1198 = vmatprep.subr.bf16.mxu1 %v3697_v25  ;;  %v5729_v24 = vld [vmem:[#allocation24_spill] sm:$0xff]  ;;  %v5730_v25 = vld [vmem:[#allocation25_spill] sm:$0xff] }
 0x163   :  { %1158 = vmatpush1.bf16.msra.mxu0 %v3703_v27  ;;  %1199 = vmatpush1.bf16.msra.mxu1 %v3707_v28  ;;  %v5731_v27 = vld [vmem:[#allocation26_spill] sm:$0xff]  ;;  %v5732_v28 = vld [vmem:[#allocation27_spill] sm:$0xff] }
 0x164   :  { %1159 = vmatprep.subr.bf16.mxu0 %v3709_v29  ;;  %1200 = vmatprep.subr.bf16.mxu1 %v3712_v30  ;;  %v5733_v29 = vld [vmem:[#allocation28_spill] sm:$0xff]  ;;  %v5734_v30 = vld [vmem:[#allocation29_spill] sm:$0xff] }
 0x167   :  { %1160 = vmatpush1.bf16.msra.mxu0 %v3717_v31  ;;  %1201 = vmatpush1.bf16.msra.mxu1 %v3719_v32  ;;  %v5735_v31 = vld [vmem:[#allocation30_spill] sm:$0xff]  ;;  %v5736_v32 = vld [vmem:[#allocation31_spill] sm:$0xff] }
 0x168   :  { %1161 = vmatprep.subr.bf16.mxu0 %v3727_v34  ;;  %1202 = vmatprep.subr.bf16.mxu1 %v3731_v35  ;;  %v5737_v34 = vld [vmem:[#allocation32_spill] sm:$0xff]  ;;  %v5738_v35 = vld [vmem:[#allocation33_spill] sm:$0xff] }
 0x16b   :  { %1162 = vmatpush1.bf16.msra.mxu0 %v3733_v36  ;;  %1203 = vmatpush1.bf16.msra.mxu1 %v3735_v37  ;;  %v5739_v36 = vld [vmem:[#allocation34_spill] sm:$0xff]  ;;  %v5740_v37 = vld [vmem:[#allocation35_spill] sm:$0xff] }
 0x16c   :  { %1163 = vmatprep.subr.bf16.mxu0 %v3737_v38  ;;  %1204 = vmatprep.subr.bf16.mxu1 %v3740_v39  ;;  %v5741_v38 = vld [vmem:[#allocation36_spill] sm:$0xff]  ;;  %v5742_v39 = vld [vmem:[#allocation37_spill] sm:$0xff] }
 0x16f   :  { %1164 = vmatpush1.bf16.msra.mxu0 %v3745_v40  ;;  %1205 = vmatpush1.bf16.msra.mxu1 %v3749_v41  ;;  %v5743_v40 = vld [vmem:[#allocation38_spill] sm:$0xff]  ;;  %v5744_v41 = vld [vmem:[#allocation39_spill] sm:$0xff] }
 0x170   :  { %1261 = vmatprep.subr.bf16.mxu0 %v3761_v42  ;;  %1302 = vmatprep.subr.bf16.mxu1 %v3763_v43 }
 0x172   :  { %1182 = vmatmul.mubr.bf16.vlgmr.msra.gmra.mrb[24].mxu0 %v653_v58  ;;  %1223 = vmatmul.mubr.bf16.vlgmr.msra.gmra.mrb[24].mxu1 %v653_v58  ;;  %v5767_v58 = vld [vmem:[#allocation62_spill] sm:$0xff] }
 0x173   :  { %1262 = vmatpush1.bf16.msra.mxu0 %v3765_v44  ;;  %1303 = vmatpush1.bf16.msra.mxu1 %v3767_v45 }
 0x174   :  { %1263 = vmatprep.subr.bf16.mxu0 %v3773_v46  ;;  %1304 = vmatprep.subr.bf16.mxu1 %v3775_v47 }
 0x177   :  { %1264 = vmatpush1.bf16.msra.mxu0 %v3777_v48  ;;  %1305 = vmatpush1.bf16.msra.mxu1 %v3779_v49 }
 0x178   :  { %1265 = vmatprep.subr.bf16.mxu0 %v3785_v50  ;;  %1306 = vmatprep.subr.bf16.mxu1 %v5715_v9 }
 0x17b   :  { %1266 = vmatpush1.bf16.msra.mxu0 %v5716_v10  ;;  %1307 = vmatpush1.bf16.msra.mxu1 %v5717_v11 }
 0x17c   :  { %1267 = vmatprep.subr.bf16.mxu0 %v5718_v12  ;;  %1308 = vmatprep.subr.bf16.mxu1 %v5719_v13 }
 0x17f   :  { %1268 = vmatpush1.bf16.msra.mxu0 %v5720_v14  ;;  %1309 = vmatpush1.bf16.msra.mxu1 %v5721_v16 }
 0x180   :  { %1269 = vmatprep.subr.bf16.mxu0 %v5722_v17  ;;  %1310 = vmatprep.subr.bf16.mxu1 %v5723_v18 }
 0x183   :  { %1270 = vmatpush1.bf16.msra.mxu0 %v5724_v19  ;;  %1311 = vmatpush1.bf16.msra.mxu1 %v5725_v20 }
 0x184   :  { %1271 = vmatprep.subr.bf16.mxu0 %v5726_v21  ;;  %1312 = vmatprep.subr.bf16.mxu1 %v5727_v22 }
 0x187   :  { %1272 = vmatpush1.bf16.msra.mxu0 %v5728_v23  ;;  %1313 = vmatpush1.bf16.msra.mxu1 %v5729_v24 }
 0x188   :  { %1273 = vmatprep.subr.bf16.mxu0 %v5730_v25  ;;  %1314 = vmatprep.subr.bf16.mxu1 %v5731_v27 }
 0x18b   :  { %1274 = vmatpush1.bf16.msra.mxu0 %v5732_v28  ;;  %1315 = vmatpush1.bf16.msra.mxu1 %v5733_v29 }
 0x18c   :  { %1275 = vmatprep.subr.bf16.mxu0 %v5734_v30  ;;  %1316 = vmatprep.subr.bf16.mxu1 %v5735_v31 }
 0x18f   :  { %1276 = vmatpush1.bf16.msra.mxu0 %v5736_v32  ;;  %1317 = vmatpush1.bf16.msra.mxu1 %v5737_v34 }
 0x190   :  { %1277 = vmatprep.subr.bf16.mxu0 %v5738_v35  ;;  %1318 = vmatprep.subr.bf16.mxu1 %v5739_v36 }
 0x193   :  { %1278 = vmatpush1.bf16.msra.mxu0 %v5740_v37  ;;  %1319 = vmatpush1.bf16.msra.mxu1 %v5741_v38 }
 0x194   :  { %1279 = vmatprep.subr.bf16.mxu0 %v5742_v39  ;;  %1320 = vmatprep.subr.bf16.mxu1 %v5743_v40 }
 0x197   :  { %1280 = vmatpush1.bf16.msra.mxu0 %v5744_v41  ;;  %1321 = vmatpush1.bf16.msra.mxu1 %v5745_v1 }
 0x198   :  { %1281 = vmatprep.subr.bf16.mxu0 %v5746_v60  ;;  %1322 = vmatprep.subr.bf16.mxu1 %v5747_v59 }
 0x19b   :  { %1282 = vmatpush1.bf16.msra.mxu0 %v5748_v15  ;;  %1323 = vmatpush1.bf16.msra.mxu1 %v5749_v2 }
 0x19c   :  { %1283 = vmatprep.subr.bf16.mxu0 %v5750_v61  ;;  %1324 = vmatprep.subr.bf16.mxu1 %v5751_v33 }
 0x19f   :  { %1284 = vmatpush1.bf16.msra.mxu0 %v5752_v62  ;;  %1325 = vmatpush1.bf16.msra.mxu1 %v5753_v3 }
 0x1a0   :  { %1285 = vmatprep.subr.bf16.mxu0 %v5754_v7  ;;  %1326 = vmatprep.subr.bf16.mxu1 %v5755_v63 }
 0x1a3   :  { %1286 = vmatpush1.bf16.msra.mxu0 %v5756_v26  ;;  %1327 = vmatpush1.bf16.msra.mxu1 %v5757_v54  ;;  %v5768_v54 = vld [vmem:[#allocation63_spill] sm:$0xff] }
 0x1a4   :  { %1287 = vmatprep.subr.bf16.mxu0 %v5758_v8  ;;  %1328 = vmatprep.subr.bf16.mxu1 %v5759_v0  ;;  %v5769_v8 = vld [vmem:[#allocation64_spill] sm:$0xff] }
 0x1a5   :  { %v4153_v0 = vld [vmem:[#allocation4 + $0x4] ss:$16 sps:$4 sm:$0xff]  }
 0x1a6   :  { %5770 = vst [vmem:[#allocation10_spill] sm:$0xff] %v4153_v0 }
 0x1a7   :  { %1288 = vmatpush1.bf16.msra.mxu0 %v5760_v6  ;;  %1329 = vmatpush1.bf16.msra.mxu1 %v5761_v53  ;;  %v4156_v53 = vld [vmem:[#allocation4 + $0xc] ss:$16 sps:$4 sm:$0xff]  }
 0x1a8   :  { %1289 = vmatprep.subr.bf16.mxu0 %v5762_v55  ;;  %1330 = vmatprep.subr.bf16.mxu1 %v5763_v4  ;;  %5771 = vst [vmem:[#allocation11_spill] sm:$0xff] %v4156_v53 }
 0x1ab   :  { %1290 = vmatpush1.bf16.msra.mxu0 %v5764_v51  ;;  %1331 = vmatpush1.bf16.msra.mxu1 %v5765_v56  ;;  %v325_v56 = vld [vmem:[%s5280_s5] sm:$0xf] }
 0x1ac   :  { %1291 = vmatprep.subr.bf16.mxu0 %v5766_v57  ;;  %1332 = vmatprep.subr.bf16.mxu1 %v5767_v58  ;;  %v5772_v51 = vld [vmem:[#allocation65_spill] sm:$0xff] }
 0x1ad   :  { %v5773_v57 = vsub.s32 0, %v5772_v51 }
 0x1af   :  { %1292 = vmatpush1.bf16.msra.mxu0 %v5768_v54  ;;  %1333 = vmatpush1.bf16.msra.mxu1 %v5769_v8  ;;  %v4164_v4 = vrot.slane %v325_v56, %v5773_v57  ;;  %v5775_v54 = vsub.s32 1, %v5772_v51  ;;  %v5777_v57 = vsub.s32 2, %v5772_v51 }
 0x1b0   :  { %1371 = vmatprep.subr.bf16.mxu0 %v4153_v0  ;;  %1412 = vmatprep.subr.bf16.mxu1 %v4156_v53 }
 0x1b1   :  { %5774 = vst [vmem:[#allocation12_spill] sm:$0xff] %v4164_v4  ;;  %v4168_v58 = vrot.slane %v325_v56, %v5775_v54  ;;  %v4174_v2 = vrot.slane %v325_v56, %v5777_v57  ;;  %v5779_v54 = vsub.s32 3, %v5772_v51 }
 0x1b3   :  { %5776 = vst [vmem:[#allocation13_spill] sm:$0xff] %v4168_v58  ;;  %5778 = vst [vmem:[#allocation14_spill] sm:$0xff] %v4174_v2  ;;  %v4178_v15 = vrot.slane %v325_v56, %v5779_v54 }
 0x1b5   :  { %5780 = vst [vmem:[#allocation15_spill] sm:$0xff] %v4178_v15 }
 0x225   :  { %v1073_v8 = vpop.f32.mrb[20].mxu0  ;;  %v1114_v55 = vpop.f32.mrb[20].mxu1 }
 0x226   :  { %v1074_v0 = vadd.f32 %v1073_v8, %v4164_v4  ;;  %v1075_v6 = vpop.f32.mrb[21].mxu0  ;;  %v1116_v26 = vpop.f32.mrb[21].mxu1  ;;  %v1115_v8 = vadd.f32 %v1114_v55, %v4174_v2 }
 0x227   :  { %v1076_v53 = vadd.f32 %v1075_v6, %v4168_v58  ;;  %v1077_v63 = vpop.f32.mrb[22].mxu0  ;;  %v1118_v7 = vpop.f32.mrb[22].mxu1  ;;  %v1117_v6 = vadd.f32 %v1116_v26, %v4178_v15  ;;  %v5781_v26 = vld [vmem:[#allocation66_spill] sm:$0xff] }
 0x228   :  { %v2840_v3 = vmul.f32 -1.442695, %v1074_v0  ;;  %v1078_v62 = vpop.f32.mrb[23].mxu0  ;;  %v1119_v33 = vpop.f32.mrb[23].mxu1  ;;  %v2842_v63 = vmul.f32 -1.442695, %v1115_v8 }
 0x229   :  { %v2841_v61 = vmul.f32 -1.442695, %v1076_v53 }
 0x22a   :  { %3063 = vpow2.f32 %v2840_v3 }
 0x22b   :  { %3065 = vpow2.f32 %v2841_v61 }
 0x22c   :  { %3067 = vtanh.f32 %v1117_v6 }
 0x22d   :  { %3069 = vpow2.f32 %v2842_v63 }
 0x234   :  { %v3064_v7 = vpop.eup %3063 }
 0x235   :  { %v1130_v0 = vadd.f32 1.0, %v3064_v7  ;;  %v3066_v33 = vpop.eup %3065  ;;  %v5782_v7 = vld [vmem:[#allocation67_spill] sm:$0xff] }
 0x236   :  { %v1131_v62 = vadd.f32 1.0, %v3066_v33  ;;  %v3068_v3 = vpop.eup %3067 }
 0x237   :  { %3071 = vrcp.f32 %v1130_v0  ;;  %v3070_v53 = vpop.eup %3069  ;;  %v5783_v0 = vld [vmem:[#allocation68_spill] sm:$0xff] }
 0x238   :  { %3073 = vrcp.f32 %v1131_v62  ;;  %v1132_v56 = vadd.f32 1.0, %v3070_v53  ;;  %v5784_v62 = vld [vmem:[#allocation69_spill] sm:$0xff] }
 0x23a   :  { %3075 = vrcp.f32 %v1132_v56 }
 0x241   :  { %v3072_v61 = vpop.eup %3071 }
 0x242   :  { %v1141_v57 = vmul.f32 %v3072_v61, %v3068_v3  ;;  %v3074_v51 = vpop.eup %3073 }
 0x243   :  { %v1140_v54 = vmul.f32 0.0, %v3074_v51 }
 0x245   :  { %v1183_v58 = vpop.f32.mrb[24].mxu0  ;;  %v1224_v55 = vpop.f32.mrb[24].mxu1  ;;  %v4182_v2 = vadd.f32 %v1141_v57, %v1140_v54 }
 0x246   :  { %v1231_v8 = vadd.f32 %v1183_v58, %v5781_v26  ;;  %v1233_v6 = vadd.f32 %v1224_v55, %v5782_v7  ;;  %v1185_v15 = vpop.f32.mrb[25].mxu0  ;;  %v1226_v63 = vpop.f32.mrb[25].mxu1 }
 0x247   :  { %v1232_v33 = vadd.f32 %v1185_v15, %v5783_v0  ;;  %v1234_v4 = vadd.f32 %v1226_v63, %v5784_v62  ;;  %v1187_v59 = vpop.f32.mrb[26].mxu0  ;;  %v1228_v3 = vpop.f32.mrb[26].mxu1  ;;  %3077 = vtanh.f32 %v4182_v2 }
 0x248   :  { %v2843_v61 = vmul.f32 -1.442695, %v1231_v8  ;;  %v1188_v53 = vpop.f32.mrb[27].mxu0  ;;  %v1229_v51 = vpop.f32.mrb[27].mxu1  ;;  %v2845_v55 = vmul.f32 -1.442695, %v1233_v6 }
 0x249   :  { %v2844_v57 = vmul.f32 -1.442695, %v1232_v33  ;;  %v3076_v58 = vpop.eup %3075 }
 0x24a   :  { %3079 = vpow2.f32 %v2843_v61 }
 0x24b   :  { %3081 = vpow2.f32 %v2844_v57 }
 0x24c   :  { %3083 = vtanh.f32 %v1234_v4 }
 0x24d   :  { %3085 = vpow2.f32 %v2845_v55  ;;  %v4200_v55 = vld [vmem:[#allocation4 + $0x8] ss:$16 sps:$4 sm:$0xff]  }
 0x251   :  { %v3078_v54 = vpop.eup %3077 }
 0x252   :  { %v1144_v26 = vmul.f32 %v3078_v54, %v3076_v58  ;;  %v4197_v54 = vld [vmem:[#allocation4] ss:$16 sps:$4 sm:$0xff]  }
 0x254   :  { %v3080_v7 = vpop.eup %3079  ;;  %v1260_v15 = vpack.c.bf16 %v1144_v26, %v1144_v26  ;;  %v4206_v26 = vld [vmem:[#allocation4 + $0x2c] ss:$16 sps:$4 sm:$0xff]  }
 0x255   :  { %v1244_v56 = vadd.f32 1.0, %v3080_v7  ;;  %v3082_v0 = vpop.eup %3081  ;;  %v4211_v7 = vld [vmem:[#allocation4 + $0x20] ss:$16 sps:$4 sm:$0xff]  }
 0x256   :  { %v1245_v59 = vadd.f32 1.0, %v3082_v0  ;;  %1293 = vmatprep.mubr.bf16.mxu0 %v1260_v15  ;;  %1334 = vmatprep.mubr.bf16.mxu1 %v1260_v15  ;;  %v3084_v8 = vpop.eup %3083  ;;  %v4217_v15 = vld [vmem:[#allocation4 + $0x44] ss:$16 sps:$4 sm:$0xff]   ;;  %v4220_v0 = vld [vmem:[#allocation4 + $0x4c] ss:$16 sps:$4 sm:$0xff]  }
 0x257   :  { %3087 = vrcp.f32 %v1244_v56  ;;  %v3086_v63 = vpop.eup %3085  ;;  %v4214_v56 = vld [vmem:[#allocation4 + $0x28] ss:$16 sps:$4 sm:$0xff]  }
 0x258   :  { %3089 = vrcp.f32 %v1245_v59  ;;  %v1246_v61 = vadd.f32 1.0, %v3086_v63  ;;  %v4223_v59 = vld [vmem:[#allocation4 + $0x40] ss:$16 sps:$4 sm:$0xff]   ;;  %v4229_v63 = vld [vmem:[#allocation4 + $0x64] ss:$16 sps:$4 sm:$0xff]  }
 0x25a   :  { %3091 = vrcp.f32 %v1246_v61  ;;  %v4241_v61 = vld [vmem:[#allocation4 + $0x84] ss:$16 sps:$4 sm:$0xff]  }
 0x25b   :  { %5786 = vst [vmem:[#allocation17_spill] sm:$0xff] %v4241_v61 }
 0x261   :  { %v3088_v33 = vpop.eup %3087 }
 0x262   :  { %v1255_v62 = vmul.f32 %v3088_v33, %v3084_v8  ;;  %v3090_v3 = vpop.eup %3089  ;;  %v4226_v8 = vld [vmem:[#allocation4 + $0x48] ss:$16 sps:$4 sm:$0xff]   ;;  %v4232_v33 = vld [vmem:[#allocation4 + $0x6c] ss:$16 sps:$4 sm:$0xff]  }
 0x263   :  { %v1254_v6 = vmul.f32 %v3090_v3, %v4054_v5  ;;  %v4203_v5 = vld [vmem:[#allocation4 + $0x24] ss:$16 sps:$4 sm:$0xff]   ;;  %v4238_v3 = vld [vmem:[#allocation4 + $0x68] ss:$16 sps:$4 sm:$0xff]  }
 0x264   :  { %v3092_v4 = vpop.eup %3091  ;;  %5785 = vst [vmem:[#allocation16_spill] sm:$0xff] %v4238_v3 }
 0x265   :  { %v4190_v53 = vadd.f32 %v1255_v62, %v1254_v6  ;;  %v4235_v62 = vld [vmem:[#allocation4 + $0x60] ss:$16 sps:$4 sm:$0xff]   ;;  %v4244_v6 = vld [vmem:[#allocation4 + $0x8c] ss:$16 sps:$4 sm:$0xff]  }
 0x266   :  { %5787 = vst [vmem:[#allocation18_spill] sm:$0xff] %v4244_v6 }
 0x267   :  { %3093 = vtanh.f32 %v4190_v53 }
 0x271   :  { %v3094_v51 = vpop.eup %3093 }
 0x272   :  { %v1258_v57 = vmul.f32 %v3094_v51, %v3092_v4  ;;  %v4247_v4 = vld [vmem:[#allocation4 + $0x80] ss:$16 sps:$4 sm:$0xff]   ;;  %v4250_v51 = vld [vmem:[#allocation4 + $0x88] ss:$16 sps:$4 sm:$0xff]  }
 0x273   :  { %5788 = vst [vmem:[#allocation19_spill] sm:$0xff] %v4247_v4  ;;  %5789 = vst [vmem:[#allocation20_spill] sm:$0xff] %v4250_v51 }
 0x274   :  { %v4193_v58 = vpack.c.bf16 %v1258_v57, %v1258_v57  ;;  %v4253_v57 = vld [vmem:[#allocation4 + $0xa4] ss:$16 sps:$4 sm:$0xff]  }
 0x275   :  { %5790 = vst [vmem:[#allocation21_spill] sm:$0xff] %v4253_v57 }
 0x276   :  { %1294 = vmatmul.mubr.bf16.vlgmr.msra.gmra.mrb[28].mxu0 %v4193_v58  ;;  %1335 = vmatmul.mubr.bf16.vlgmr.msra.gmra.mrb[28].mxu1 %v4193_v58 }
 0x277   :  { %1372 = vmatpush1.bf16.msra.mxu0 %v4197_v54  ;;  %1413 = vmatpush1.bf16.msra.mxu1 %v4200_v55 }
 0x278   :  { %1373 = vmatprep.subr.bf16.mxu0 %v4203_v5  ;;  %1414 = vmatprep.subr.bf16.mxu1 %v4206_v26 }
 0x279   :  { %1403 = vmatprep.mubr.bf16.mxu0 %v5714_v52  ;;  %1444 = vmatprep.mubr.bf16.mxu1 %v5714_v52 }
 0x27b   :  { %1374 = vmatpush1.bf16.msra.mxu0 %v4211_v7  ;;  %1415 = vmatpush1.bf16.msra.mxu1 %v4214_v56 }
 0x27c   :  { %1375 = vmatprep.subr.bf16.mxu0 %v4217_v15  ;;  %1416 = vmatprep.subr.bf16.mxu1 %v4220_v0 }
 0x27f   :  { %1376 = vmatpush1.bf16.msra.mxu0 %v4223_v59  ;;  %1417 = vmatpush1.bf16.msra.mxu1 %v4226_v8 }
 0x280   :  { %1377 = vmatprep.subr.bf16.mxu0 %v4229_v63  ;;  %1418 = vmatprep.subr.bf16.mxu1 %v4232_v33 }
 0x283   :  { %1378 = vmatpush1.bf16.msra.mxu0 %v4235_v62  ;;  %1419 = vmatpush1.bf16.msra.mxu1 %v4238_v3  ;;  %v4256_v3 = vld [vmem:[#allocation4 + $0xac] ss:$16 sps:$4 sm:$0xff]  }
 0x284   :  { %1379 = vmatprep.subr.bf16.mxu0 %v4241_v61  ;;  %1420 = vmatprep.subr.bf16.mxu1 %v4244_v6  ;;  %5791 = vst [vmem:[#allocation22_spill] sm:$0xff] %v4256_v3  ;;  %v4259_v61 = vld [vmem:[#allocation4 + $0xa0] ss:$16 sps:$4 sm:$0xff]   ;;  %v4262_v6 = vld [vmem:[#allocation4 + $0xa8] ss:$16 sps:$4 sm:$0xff]  }
 0x285   :  { %5792 = vst [vmem:[#allocation23_spill] sm:$0xff] %v4259_v61  ;;  %5793 = vst [vmem:[#allocation24_spill] sm:$0xff] %v4262_v6 }
 0x287   :  { %1380 = vmatpush1.bf16.msra.mxu0 %v4247_v4  ;;  %1421 = vmatpush1.bf16.msra.mxu1 %v4250_v51  ;;  %v4265_v4 = vld [vmem:[#allocation4 + $0xc4] ss:$16 sps:$4 sm:$0xff]   ;;  %v4268_v51 = vld [vmem:[#allocation4 + $0xcc] ss:$16 sps:$4 sm:$0xff]  }
 0x288   :  { %1381 = vmatprep.subr.bf16.mxu0 %v4253_v57  ;;  %1422 = vmatprep.subr.bf16.mxu1 %v4256_v3  ;;  %5794 = vst [vmem:[#allocation25_spill] sm:$0xff] %v4265_v4  ;;  %5795 = vst [vmem:[#allocation26_spill] sm:$0xff] %v4268_v51  ;;  %v4271_v57 = vld [vmem:[#allocation4 + $0xc0] ss:$16 sps:$4 sm:$0xff]   ;;  %v4274_v3 = vld [vmem:[#allocation4 + $0xc8] ss:$16 sps:$4 sm:$0xff]  }
 0x28b   :  { %1382 = vmatpush1.bf16.msra.mxu0 %v4259_v61  ;;  %1423 = vmatpush1.bf16.msra.mxu1 %v4262_v6  ;;  %v4277_v61 = vld [vmem:[#allocation4 + $0xe4] ss:$16 sps:$4 sm:$0xff]   ;;  %v4280_v6 = vld [vmem:[#allocation4 + $0xec] ss:$16 sps:$4 sm:$0xff]  }
 0x28c   :  { %1383 = vmatprep.subr.bf16.mxu0 %v4265_v4  ;;  %1424 = vmatprep.subr.bf16.mxu1 %v4268_v51  ;;  %v4283_v4 = vld [vmem:[#allocation4 + $0xe0] ss:$16 sps:$4 sm:$0xff]   ;;  %v4286_v51 = vld [vmem:[#allocation4 + $0xe8] ss:$16 sps:$4 sm:$0xff]  }
 0x28f   :  { %1384 = vmatpush1.bf16.msra.mxu0 %v4271_v57  ;;  %1425 = vmatpush1.bf16.msra.mxu1 %v4274_v3 }
 0x290   :  { %1385 = vmatprep.subr.bf16.mxu0 %v4277_v61  ;;  %1426 = vmatprep.subr.bf16.mxu1 %v4280_v6 }
 0x293   :  { %1386 = vmatpush1.bf16.msra.mxu0 %v4283_v4  ;;  %1427 = vmatpush1.bf16.msra.mxu1 %v4286_v51 }
 0x294   :  { %1483 = vmatprep.subr.bf16.mxu0 %v3761_v42  ;;  %1524 = vmatprep.subr.bf16.mxu1 %v3763_v43  ;;  %v5796_v42 = vld [vmem:[#allocation42_spill] sm:$0xff]  ;;  %v5797_v43 = vld [vmem:[#allocation43_spill] sm:$0xff] }
 0x296   :  { %1404 = vmatmul.mubr.bf16.vlgmr.msra.gmra.mrb[32].mxu0 %v4193_v58  ;;  %1445 = vmatmul.mubr.bf16.vlgmr.msra.gmra.mrb[32].mxu1 %v4193_v58  ;;  %v5824_v58 = vld [vmem:[#allocation15_spill] sm:$0xff] }
 0x297   :  { %1484 = vmatpush1.bf16.msra.mxu0 %v3765_v44  ;;  %1525 = vmatpush1.bf16.msra.mxu1 %v3767_v45  ;;  %v5798_v44 = vld [vmem:[#allocation44_spill] sm:$0xff]  ;;  %v5799_v45 = vld [vmem:[#allocation45_spill] sm:$0xff] }
 0x298   :  { %1485 = vmatprep.subr.bf16.mxu0 %v3773_v46  ;;  %1526 = vmatprep.subr.bf16.mxu1 %v3775_v47  ;;  %v5800_v46 = vld [vmem:[#allocation46_spill] sm:$0xff]  ;;  %v5801_v47 = vld [vmem:[#allocation47_spill] sm:$0xff] }
 0x29b   :  { %1486 = vmatpush1.bf16.msra.mxu0 %v3777_v48  ;;  %1527 = vmatpush1.bf16.msra.mxu1 %v3779_v49  ;;  %v5802_v48 = vld [vmem:[#allocation48_spill] sm:$0xff]  ;;  %v5803_v49 = vld [vmem:[#allocation49_spill] sm:$0xff] }
 0x29c   :  { %1487 = vmatprep.subr.bf16.mxu0 %v3785_v50  ;;  %1528 = vmatprep.subr.bf16.mxu1 %v5715_v9  ;;  %v5804_v50 = vld [vmem:[#allocation50_spill] sm:$0xff]  ;;  %v5805_v9 = vld [vmem:[#allocation51_spill] sm:$0xff] }
 0x29f   :  { %1488 = vmatpush1.bf16.msra.mxu0 %v5716_v10  ;;  %1529 = vmatpush1.bf16.msra.mxu1 %v5717_v11  ;;  %v5806_v10 = vld [vmem:[#allocation52_spill] sm:$0xff]  ;;  %v5807_v11 = vld [vmem:[#allocation53_spill] sm:$0xff] }
 0x2a0   :  { %1489 = vmatprep.subr.bf16.mxu0 %v5718_v12  ;;  %1530 = vmatprep.subr.bf16.mxu1 %v5719_v13  ;;  %v5808_v12 = vld [vmem:[#allocation54_spill] sm:$0xff]  ;;  %v5809_v13 = vld [vmem:[#allocation55_spill] sm:$0xff] }
 0x2a3   :  { %1490 = vmatpush1.bf16.msra.mxu0 %v5720_v14  ;;  %1531 = vmatpush1.bf16.msra.mxu1 %v5721_v16  ;;  %v5810_v14 = vld [vmem:[#allocation56_spill] sm:$0xff]  ;;  %v5811_v16 = vld [vmem:[#allocation57_spill] sm:$0xff] }
 0x2a4   :  { %1491 = vmatprep.subr.bf16.mxu0 %v5722_v17  ;;  %1532 = vmatprep.subr.bf16.mxu1 %v5723_v18  ;;  %v5812_v17 = vld [vmem:[#allocation58_spill] sm:$0xff]  ;;  %v5813_v18 = vld [vmem:[#allocation59_spill] sm:$0xff] }
 0x2a7   :  { %1492 = vmatpush1.bf16.msra.mxu0 %v5724_v19  ;;  %1533 = vmatpush1.bf16.msra.mxu1 %v5725_v20  ;;  %v5814_v19 = vld [vmem:[#allocation60_spill] sm:$0xff]  ;;  %v5815_v20 = vld [vmem:[#allocation61_spill] sm:$0xff] }
 0x2a8   :  { %1493 = vmatprep.subr.bf16.mxu0 %v5726_v21  ;;  %1534 = vmatprep.subr.bf16.mxu1 %v5727_v22  ;;  %v5816_v21 = vld [vmem:[#allocation62_spill] sm:$0xff]  ;;  %v5817_v22 = vld [vmem:[#allocation63_spill] sm:$0xff] }
 0x2ab   :  { %1494 = vmatpush1.bf16.msra.mxu0 %v5728_v23  ;;  %1535 = vmatpush1.bf16.msra.mxu1 %v5729_v24  ;;  %v5818_v23 = vld [vmem:[#allocation64_spill] sm:$0xff]  ;;  %v5819_v24 = vld [vmem:[#allocation10_spill] sm:$0xff] }
 0x2ac   :  { %1495 = vmatprep.subr.bf16.mxu0 %v5730_v25  ;;  %1536 = vmatprep.subr.bf16.mxu1 %v5731_v27  ;;  %v5820_v25 = vld [vmem:[#allocation11_spill] sm:$0xff] }
 0x2af   :  { %1496 = vmatpush1.bf16.msra.mxu0 %v5732_v28  ;;  %1537 = vmatpush1.bf16.msra.mxu1 %v5733_v29  ;;  %v5821_v29 = vld [vmem:[#allocation12_spill] sm:$0xff] }
 0x2b0   :  { %1497 = vmatprep.subr.bf16.mxu0 %v5734_v30  ;;  %1538 = vmatprep.subr.bf16.mxu1 %v5735_v31 }
 0x2b3   :  { %1498 = vmatpush1.bf16.msra.mxu0 %v5736_v32  ;;  %1539 = vmatpush1.bf16.msra.mxu1 %v5737_v34  ;;  %v5822_v34 = vld [vmem:[#allocation13_spill] sm:$0xff] }
 0x2b4   :  { %1499 = vmatprep.subr.bf16.mxu0 %v5738_v35  ;;  %1540 = vmatprep.subr.bf16.mxu1 %v5739_v36 }
 0x2b7   :  { %1500 = vmatpush1.bf16.msra.mxu0 %v5740_v37  ;;  %1541 = vmatpush1.bf16.msra.mxu1 %v5741_v38 }
 0x2b8   :  { %1501 = vmatprep.subr.bf16.mxu0 %v5742_v39  ;;  %1542 = vmatprep.subr.bf16.mxu1 %v5743_v40 }
 0x2bb   :  { %1502 = vmatpush1.bf16.msra.mxu0 %v5744_v41  ;;  %1543 = vmatpush1.bf16.msra.mxu1 %v5745_v1  ;;  %v5823_v1 = vld [vmem:[#allocation14_spill] sm:$0xff] }
 0x2bc   :  { %1503 = vmatprep.subr.bf16.mxu0 %v5746_v60  ;;  %1544 = vmatprep.subr.bf16.mxu1 %v5796_v42 }
 0x2bf   :  { %1504 = vmatpush1.bf16.msra.mxu0 %v5797_v43  ;;  %1545 = vmatpush1.bf16.msra.mxu1 %v5798_v44 }
 0x2c0   :  { %1505 = vmatprep.subr.bf16.mxu0 %v5799_v45  ;;  %1546 = vmatprep.subr.bf16.mxu1 %v5800_v46 }
 0x2c3   :  { %1506 = vmatpush1.bf16.msra.mxu0 %v5801_v47  ;;  %1547 = vmatpush1.bf16.msra.mxu1 %v5802_v48 }
 0x2c4   :  { %1507 = vmatprep.subr.bf16.mxu0 %v5803_v49  ;;  %1548 = vmatprep.subr.bf16.mxu1 %v5804_v50 }
 0x2c7   :  { %1508 = vmatpush1.bf16.msra.mxu0 %v5805_v9  ;;  %1549 = vmatpush1.bf16.msra.mxu1 %v5806_v10 }
 0x2c8   :  { %1509 = vmatprep.subr.bf16.mxu0 %v5807_v11  ;;  %1550 = vmatprep.subr.bf16.mxu1 %v5808_v12 }
 0x2cb   :  { %1510 = vmatpush1.bf16.msra.mxu0 %v5809_v13  ;;  %1551 = vmatpush1.bf16.msra.mxu1 %v5810_v14 }
 0x2cc   :  { %1511 = vmatprep.subr.bf16.mxu0 %v5811_v16  ;;  %1552 = vmatprep.subr.bf16.mxu1 %v5812_v17  ;;  %v5825_v17 = vld [vmem:[#allocation70_spill] sm:$0xff] }
 0x2cf   :  { %1512 = vmatpush1.bf16.msra.mxu0 %v5813_v18  ;;  %1553 = vmatpush1.bf16.msra.mxu1 %v5814_v19  ;;  %v5826_v19 = vld [vmem:[#allocation71_spill] sm:$0xff] }
 0x2d0   :  { %1513 = vmatprep.subr.bf16.mxu0 %v5815_v20  ;;  %1554 = vmatprep.subr.bf16.mxu1 %v5816_v21 }
 0x2d3   :  { %1514 = vmatpush1.bf16.msra.mxu0 %v5817_v22  ;;  %1555 = vmatpush1.bf16.msra.mxu1 %v5818_v23  ;;  %v5827_v23 = vld [vmem:[#allocation72_spill] sm:$0xff] }
 0x2d4   :  { %1593 = vmatprep.subr.bf16.mxu0 %v5819_v24  ;;  %1634 = vmatprep.subr.bf16.mxu1 %v5820_v25 }
 0x349   :  { %v1295_v27 = vpop.f32.mrb[28].mxu0  ;;  %v1336_v28 = vpop.f32.mrb[28].mxu1 }
 0x34a   :  { %v1296_v30 = vadd.f32 %v1295_v27, %v5821_v29  ;;  %v1297_v31 = vpop.f32.mrb[29].mxu0  ;;  %v1338_v32 = vpop.f32.mrb[29].mxu1  ;;  %v1337_v60 = vadd.f32 %v1336_v28, %v5823_v1  ;;  %v5828_v28 = vld [vmem:[#allocation73_spill] sm:$0xff] }
 0x34b   :  { %v1298_v35 = vadd.f32 %v1297_v31, %v5822_v34  ;;  %v1299_v36 = vpop.f32.mrb[30].mxu0  ;;  %v1340_v37 = vpop.f32.mrb[30].mxu1  ;;  %v1339_v42 = vadd.f32 %v1338_v32, %v5824_v58 }
 0x34c   :  { %v2846_v38 = vmul.f32 -1.442695, %v1296_v30  ;;  %v1300_v39 = vpop.f32.mrb[31].mxu0  ;;  %v1341_v40 = vpop.f32.mrb[31].mxu1  ;;  %v2848_v43 = vmul.f32 -1.442695, %v1337_v60 }
 0x34d   :  { %v2847_v41 = vmul.f32 -1.442695, %v1298_v35 }
 0x34e   :  { %3095 = vpow2.f32 %v2846_v38 }
 0x34f   :  { %3097 = vpow2.f32 %v2847_v41 }
 0x350   :  { %3099 = vtanh.f32 %v1339_v42 }
 0x351   :  { %3101 = vpow2.f32 %v2848_v43 }
 0x358   :  { %v3096_v44 = vpop.eup %3095 }
 0x359   :  { %v1352_v45 = vadd.f32 1.0, %v3096_v44  ;;  %v3098_v46 = vpop.eup %3097 }
 0x35a   :  { %v1353_v47 = vadd.f32 1.0, %v3098_v46  ;;  %v3100_v48 = vpop.eup %3099 }
 0x35b   :  { %3103 = vrcp.f32 %v1352_v45  ;;  %v3102_v49 = vpop.eup %3101 }
 0x35c   :  { %3105 = vrcp.f32 %v1353_v47  ;;  %v1354_v11 = vadd.f32 1.0, %v3102_v49 }
 0x35e   :  { %3107 = vrcp.f32 %v1354_v11 }
 0x365   :  { %v3104_v50 = vpop.eup %3103 }
 0x366   :  { %v1363_v9 = vmul.f32 %v3104_v50, %v3100_v48  ;;  %v3106_v10 = vpop.eup %3105 }
 0x367   :  { %v1362_v12 = vmul.f32 %v3106_v10, %v4182_v2 }
 0x368   :  { %v3108_v38 = vpop.eup %3107 }
 0x369   :  { %v1405_v13 = vpop.f32.mrb[32].mxu0  ;;  %v1446_v14 = vpop.f32.mrb[32].mxu1  ;;  %v4362_v16 = vadd.f32 %v1363_v9, %v1362_v12 }
 0x36a   :  { %v1453_v18 = vadd.f32 %v1405_v13, %v5825_v17  ;;  %v1455_v20 = vadd.f32 %v1446_v14, %v5826_v19  ;;  %v1407_v21 = vpop.f32.mrb[33].mxu0  ;;  %v1448_v22 = vpop.f32.mrb[33].mxu1  ;;  %v5831_v19 = vld [vmem:[#allocation18_spill] sm:$0xff] }
 0x36b   :  { %v1454_v27 = vadd.f32 %v1407_v21, %v5827_v23  ;;  %v1456_v30 = vadd.f32 %v1448_v22, %v5828_v28  ;;  %v1409_v31 = vpop.f32.mrb[34].mxu0  ;;  %v1450_v32 = vpop.f32.mrb[34].mxu1  ;;  %3109 = vtanh.f32 %v4362_v16  ;;  %v5833_v21 = vld [vmem:[#allocation20_spill] sm:$0xff]  ;;  %v5834_v22 = vld [vmem:[#allocation21_spill] sm:$0xff]  ;;  %v5835_v23 = vld [vmem:[#allocation22_spill] sm:$0xff] }
 0x36c   :  { %v2849_v35 = vmul.f32 -1.442695, %v1453_v18  ;;  %v1410_v36 = vpop.f32.mrb[35].mxu0  ;;  %v1451_v2 = vpop.f32.mrb[35].mxu1  ;;  %v2851_v40 = vmul.f32 -1.442695, %v1455_v20 }
 0x36d   :  { %v2850_v37 = vmul.f32 -1.442695, %v1454_v27  ;;  %v5830_v18 = vld [vmem:[#allocation17_spill] sm:$0xff]  ;;  %v5832_v20 = vld [vmem:[#allocation19_spill] sm:$0xff]  ;;  %v5837_v28 = vld [vmem:[#allocation24_spill] sm:$0xff] }
 0x36e   :  { %3111 = vpow2.f32 %v2849_v35  ;;  %v5836_v27 = vld [vmem:[#allocation23_spill] sm:$0xff]  ;;  %v5839_v31 = vld [vmem:[#allocation26_spill] sm:$0xff] }
 0x36f   :  { %3113 = vpow2.f32 %v2850_v37  ;;  %v4405_v32 = vld [vmem:[#allocation6 + $0x4] ss:$16 sps:$4 sm:$0xff]   ;;  %v4408_v35 = vld [vmem:[#allocation6 + $0xc] ss:$16 sps:$4 sm:$0xff]   ;;  %v4411_v36 = vld [vmem:[#allocation6] ss:$16 sps:$4 sm:$0xff]  }
 0x370   :  { %3115 = vtanh.f32 %v1456_v30  ;;  %v5838_v30 = vld [vmem:[#allocation25_spill] sm:$0xff]  ;;  %v4417_v37 = vld [vmem:[#allocation6 + $0x24] ss:$16 sps:$4 sm:$0xff]  }
 0x371   :  { %3117 = vpow2.f32 %v2851_v40  ;;  %v4414_v2 = vld [vmem:[#allocation6 + $0x8] ss:$16 sps:$4 sm:$0xff]  }
 0x372   :  { %v4426_v40 = vld [vmem:[#allocation6 + $0x28] ss:$16 sps:$4 sm:$0xff]  }
 0x375   :  { %v3110_v39 = vpop.eup %3109 }
 0x376   :  { %v1366_v41 = vmul.f32 %v3110_v39, %v3108_v38  ;;  %v4420_v38 = vld [vmem:[#allocation6 + $0x2c] ss:$16 sps:$4 sm:$0xff]   ;;  %v4423_v39 = vld [vmem:[#allocation6 + $0x20] ss:$16 sps:$4 sm:$0xff]  }
 0x378   :  { %v3112_v60 = vpop.eup %3111  ;;  %v1482_v43 = vpack.c.bf16 %v1366_v41, %v1366_v41  ;;  %v4429_v41 = vld [vmem:[#allocation6 + $0x44] ss:$16 sps:$4 sm:$0xff]  }
 0x379   :  { %v1466_v42 = vadd.f32 1.0, %v3112_v60  ;;  %v3114_v44 = vpop.eup %3113  ;;  %v4432_v60 = vld [vmem:[#allocation6 + $0x4c] ss:$16 sps:$4 sm:$0xff]  }
 0x37a   :  { %v1467_v45 = vadd.f32 1.0, %v3114_v44  ;;  %1515 = vmatprep.mubr.bf16.mxu0 %v1482_v43  ;;  %1556 = vmatprep.mubr.bf16.mxu1 %v1482_v43  ;;  %v3116_v46 = vpop.eup %3115  ;;  %v4438_v43 = vld [vmem:[#allocation6 + $0x48] ss:$16 sps:$4 sm:$0xff]   ;;  %v4441_v44 = vld [vmem:[#allocation6 + $0x64] ss:$16 sps:$4 sm:$0xff]  }
 0x37b   :  { %3119 = vrcp.f32 %v1466_v42  ;;  %v3118_v47 = vpop.eup %3117  ;;  %v4435_v42 = vld [vmem:[#allocation6 + $0x40] ss:$16 sps:$4 sm:$0xff]   ;;  %5841 = vst [vmem:[#allocation28_spill] sm:$0xff] %v4438_v43  ;;  %5842 = vst [vmem:[#allocation29_spill] sm:$0xff] %v4441_v44 }
 0x37c   :  { %3121 = vrcp.f32 %v1467_v45  ;;  %v1468_v9 = vadd.f32 1.0, %v3118_v47  ;;  %5840 = vst [vmem:[#allocation27_spill] sm:$0xff] %v4435_v42  ;;  %v4444_v45 = vld [vmem:[#allocation6 + $0x6c] ss:$16 sps:$4 sm:$0xff]   ;;  %v4450_v47 = vld [vmem:[#allocation6 + $0x68] ss:$16 sps:$4 sm:$0xff]  }
 0x37d   :  { %5843 = vst [vmem:[#allocation30_spill] sm:$0xff] %v4444_v45  ;;  %5845 = vst [vmem:[#allocation32_spill] sm:$0xff] %v4450_v47 }
 0x37e   :  { %3123 = vrcp.f32 %v1468_v9  ;;  %v4462_v9 = vld [vmem:[#allocation6 + $0x88] ss:$16 sps:$4 sm:$0xff]  }
 0x37f   :  { %5849 = vst [vmem:[#allocation36_spill] sm:$0xff] %v4462_v9 }
 0x385   :  { %v3120_v48 = vpop.eup %3119 }
 0x386   :  { %v1477_v49 = vmul.f32 %v3120_v48, %v3116_v46  ;;  %v3122_v50 = vpop.eup %3121  ;;  %v4447_v46 = vld [vmem:[#allocation6 + $0x60] ss:$16 sps:$4 sm:$0xff]   ;;  %v4453_v48 = vld [vmem:[#allocation6 + $0x84] ss:$16 sps:$4 sm:$0xff]  }
 0x387   :  { %v1476_v10 = vmul.f32 %v3122_v50, %v4190_v53  ;;  %v5829_v53 = vld [vmem:[#allocation16_spill] sm:$0xff]  ;;  %5844 = vst [vmem:[#allocation31_spill] sm:$0xff] %v4447_v46  ;;  %5846 = vst [vmem:[#allocation33_spill] sm:$0xff] %v4453_v48 }
 0x388   :  { %v3124_v12 = vpop.eup %3123  ;;  %v4459_v50 = vld [vmem:[#allocation6 + $0x80] ss:$16 sps:$4 sm:$0xff]  }
 0x389   :  { %v4370_v11 = vadd.f32 %v1477_v49, %v1476_v10  ;;  %v4456_v49 = vld [vmem:[#allocation6 + $0x8c] ss:$16 sps:$4 sm:$0xff]   ;;  %5848 = vst [vmem:[#allocation35_spill] sm:$0xff] %v4459_v50  ;;  %v4465_v10 = vld [vmem:[#allocation6 + $0xa4] ss:$16 sps:$4 sm:$0xff]  }
 0x38a   :  { %5847 = vst [vmem:[#allocation34_spill] sm:$0xff] %v4456_v49  ;;  %5850 = vst [vmem:[#allocation37_spill] sm:$0xff] %v4465_v10 }
 0x38b   :  { %3125 = vtanh.f32 %v4370_v11 }
 0x395   :  { %v3126_v13 = vpop.eup %3125 }
 0x396   :  { %v1480_v14 = vmul.f32 %v3126_v13, %v3124_v12  ;;  %v4468_v12 = vld [vmem:[#allocation6 + $0xac] ss:$16 sps:$4 sm:$0xff]   ;;  %v4471_v13 = vld [vmem:[#allocation6 + $0xa0] ss:$16 sps:$4 sm:$0xff]  }
 0x397   :  { %5851 = vst [vmem:[#allocation38_spill] sm:$0xff] %v4468_v12  ;;  %5852 = vst [vmem:[#allocation39_spill] sm:$0xff] %v4471_v13 }
 0x398   :  { %v1481_v17 = vpack.c.bf16 %v1480_v14, %v1480_v14  ;;  %v4474_v14 = vld [vmem:[#allocation6 + $0xa8] ss:$16 sps:$4 sm:$0xff]  }
 0x399   :  { %5853 = vst [vmem:[#allocation40_spill] sm:$0xff] %v4474_v14 }
 0x39a   :  { %1516 = vmatmul.mubr.bf16.vlgmr.msra.gmra.mrb[36].mxu0 %v1481_v17  ;;  %1557 = vmatmul.mubr.bf16.vlgmr.msra.gmra.mrb[36].mxu1 %v1481_v17 }
 0x39b   :  { %1594 = vmatpush1.bf16.msra.mxu0 %v4197_v54  ;;  %1635 = vmatpush1.bf16.msra.mxu1 %v4200_v55 }
 0x39c   :  { %1595 = vmatprep.subr.bf16.mxu0 %v4203_v5  ;;  %1636 = vmatprep.subr.bf16.mxu1 %v4206_v26 }
 0x39d   :  { %1625 = vmatprep.mubr.bf16.mxu0 %v5714_v52  ;;  %1666 = vmatprep.mubr.bf16.mxu1 %v5714_v52 }
 0x39f   :  { %1596 = vmatpush1.bf16.msra.mxu0 %v4211_v7  ;;  %1637 = vmatpush1.bf16.msra.mxu1 %v4214_v56 }
 0x3a0   :  { %1597 = vmatprep.subr.bf16.mxu0 %v4217_v15  ;;  %1638 = vmatprep.subr.bf16.mxu1 %v4220_v0 }
 0x3a3   :  { %1598 = vmatpush1.bf16.msra.mxu0 %v4223_v59  ;;  %1639 = vmatpush1.bf16.msra.mxu1 %v4226_v8 }
 0x3a4   :  { %1599 = vmatprep.subr.bf16.mxu0 %v4229_v63  ;;  %1640 = vmatprep.subr.bf16.mxu1 %v4232_v33 }
 0x3a7   :  { %1600 = vmatpush1.bf16.msra.mxu0 %v4235_v62  ;;  %1641 = vmatpush1.bf16.msra.mxu1 %v5829_v53 }
 0x3a8   :  { %1601 = vmatprep.subr.bf16.mxu0 %v5830_v18  ;;  %1642 = vmatprep.subr.bf16.mxu1 %v5831_v19 }
 0x3ab   :  { %1602 = vmatpush1.bf16.msra.mxu0 %v5832_v20  ;;  %1643 = vmatpush1.bf16.msra.mxu1 %v5833_v21 }
 0x3ac   :  { %1603 = vmatprep.subr.bf16.mxu0 %v5834_v22  ;;  %1644 = vmatprep.subr.bf16.mxu1 %v5835_v23 }
 0x3af   :  { %1604 = vmatpush1.bf16.msra.mxu0 %v5836_v27  ;;  %1645 = vmatpush1.bf16.msra.mxu1 %v5837_v28 }
 0x3b0   :  { %1605 = vmatprep.subr.bf16.mxu0 %v5838_v30  ;;  %1646 = vmatprep.subr.bf16.mxu1 %v5839_v31 }
 0x3b3   :  { %1606 = vmatpush1.bf16.msra.mxu0 %v4271_v57  ;;  %1647 = vmatpush1.bf16.msra.mxu1 %v4274_v3 }
 0x3b4   :  { %1607 = vmatprep.subr.bf16.mxu0 %v4277_v61  ;;  %1648 = vmatprep.subr.bf16.mxu1 %v4280_v6 }
 0x3b7   :  { %1608 = vmatpush1.bf16.msra.mxu0 %v4283_v4  ;;  %1649 = vmatpush1.bf16.msra.mxu1 %v4286_v51 }
 0x3b8   :  { %1705 = vmatprep.subr.bf16.mxu0 %v4405_v32  ;;  %1746 = vmatprep.subr.bf16.mxu1 %v4408_v35 }
 0x3ba   :  { %1626 = vmatmul.mubr.bf16.vlgmr.msra.gmra.mrb[40].mxu0 %v1481_v17  ;;  %1667 = vmatmul.mubr.bf16.vlgmr.msra.gmra.mrb[40].mxu1 %v1481_v17  ;;  %v4477_v17 = vld [vmem:[#allocation6 + $0xc4] ss:$16 sps:$4 sm:$0xff]  }
 0x3bb   :  { %1706 = vmatpush1.bf16.msra.mxu0 %v4411_v36  ;;  %1747 = vmatpush1.bf16.msra.mxu1 %v4414_v2  ;;  %5854 = vst [vmem:[#allocation41_spill] sm:$0xff] %v4477_v17 }
 0x3bc   :  { %1707 = vmatprep.subr.bf16.mxu0 %v4417_v37  ;;  %1748 = vmatprep.subr.bf16.mxu1 %v4420_v38 }
 0x3bf   :  { %1708 = vmatpush1.bf16.msra.mxu0 %v4423_v39  ;;  %1749 = vmatpush1.bf16.msra.mxu1 %v4426_v40 }
 0x3c0   :  { %1709 = vmatprep.subr.bf16.mxu0 %v4429_v41  ;;  %1750 = vmatprep.subr.bf16.mxu1 %v4432_v60 }
 0x3c3   :  { %1710 = vmatpush1.bf16.msra.mxu0 %v4435_v42  ;;  %1751 = vmatpush1.bf16.msra.mxu1 %v4438_v43 }
 0x3c4   :  { %1711 = vmatprep.subr.bf16.mxu0 %v4441_v44  ;;  %1752 = vmatprep.subr.bf16.mxu1 %v4444_v45 }
 0x3c7   :  { %1712 = vmatpush1.bf16.msra.mxu0 %v4447_v46  ;;  %1753 = vmatpush1.bf16.msra.mxu1 %v4450_v47 }
 0x3c8   :  { %1713 = vmatprep.subr.bf16.mxu0 %v4453_v48  ;;  %1754 = vmatprep.subr.bf16.mxu1 %v4456_v49 }
 0x3cb   :  { %1714 = vmatpush1.bf16.msra.mxu0 %v4459_v50  ;;  %1755 = vmatpush1.bf16.msra.mxu1 %v4462_v9  ;;  %v4480_v9 = vld [vmem:[#allocation6 + $0xcc] ss:$16 sps:$4 sm:$0xff]  }
 0x3cc   :  { %1715 = vmatprep.subr.bf16.mxu0 %v4465_v10  ;;  %1756 = vmatprep.subr.bf16.mxu1 %v4468_v12  ;;  %5855 = vst [vmem:[#allocation65_spill] sm:$0xff] %v4480_v9  ;;  %v4483_v10 = vld [vmem:[#allocation6 + $0xc0] ss:$16 sps:$4 sm:$0xff]   ;;  %v4486_v12 = vld [vmem:[#allocation6 + $0xc8] ss:$16 sps:$4 sm:$0xff]  }
 0x3cd   :  { %5856 = vst [vmem:[#allocation66_spill] sm:$0xff] %v4483_v10  ;;  %5857 = vst [vmem:[#allocation67_spill] sm:$0xff] %v4486_v12 }
 0x3cf   :  { %1716 = vmatpush1.bf16.msra.mxu0 %v4471_v13  ;;  %1757 = vmatpush1.bf16.msra.mxu1 %v4474_v14  ;;  %v4489_v13 = vld [vmem:[#allocation6 + $0xe4] ss:$16 sps:$4 sm:$0xff]   ;;  %v4492_v14 = vld [vmem:[#allocation6 + $0xec] ss:$16 sps:$4 sm:$0xff]  }
 0x3d0   :  { %1717 = vmatprep.subr.bf16.mxu0 %v4477_v17  ;;  %1758 = vmatprep.subr.bf16.mxu1 %v4480_v9  ;;  %5858 = vst [vmem:[#allocation68_spill] sm:$0xff] %v4489_v13  ;;  %5859 = vst [vmem:[#allocation69_spill] sm:$0xff] %v4492_v14  ;;  %v4495_v17 = vld [vmem:[#allocation6 + $0xe0] ss:$16 sps:$4 sm:$0xff]   ;;  %v4498_v9 = vld [vmem:[#allocation6 + $0xe8] ss:$16 sps:$4 sm:$0xff]  }
 0x3d1   :  { %5860 = vst [vmem:[#allocation42_spill] sm:$0xff] %v4495_v17  ;;  %5861 = vst [vmem:[#allocation43_spill] sm:$0xff] %v4498_v9 }
 0x3d3   :  { %1718 = vmatpush1.bf16.msra.mxu0 %v4483_v10  ;;  %1759 = vmatpush1.bf16.msra.mxu1 %v4486_v12  ;;  %v4501_v10 = vld [vmem:[#allocation6 + $0x104] ss:$16 sps:$4 sm:$0xff]   ;;  %v4504_v12 = vld [vmem:[#allocation6 + $0x10c] ss:$16 sps:$4 sm:$0xff]  }
 0x3d4   :  { %1719 = vmatprep.subr.bf16.mxu0 %v4489_v13  ;;  %1760 = vmatprep.subr.bf16.mxu1 %v4492_v14  ;;  %5862 = vst [vmem:[#allocation44_spill] sm:$0xff] %v4501_v10  ;;  %5863 = vst [vmem:[#allocation45_spill] sm:$0xff] %v4504_v12  ;;  %v4507_v13 = vld [vmem:[#allocation6 + $0x100] ss:$16 sps:$4 sm:$0xff]   ;;  %v4510_v14 = vld [vmem:[#allocation6 + $0x108] ss:$16 sps:$4 sm:$0xff]  }
 0x3d5   :  { %5864 = vst [vmem:[#allocation46_spill] sm:$0xff] %v4507_v13  ;;  %5865 = vst [vmem:[#allocation47_spill] sm:$0xff] %v4510_v14 }
 0x3d7   :  { %1720 = vmatpush1.bf16.msra.mxu0 %v4495_v17  ;;  %1761 = vmatpush1.bf16.msra.mxu1 %v4498_v9  ;;  %v4513_v17 = vld [vmem:[#allocation6 + $0x124] ss:$16 sps:$4 sm:$0xff]   ;;  %v4516_v9 = vld [vmem:[#allocation6 + $0x12c] ss:$16 sps:$4 sm:$0xff]  }
 0x3d8   :  { %1721 = vmatprep.subr.bf16.mxu0 %v4501_v10  ;;  %1762 = vmatprep.subr.bf16.mxu1 %v4504_v12  ;;  %5866 = vst [vmem:[#allocation48_spill] sm:$0xff] %v4513_v17  ;;  %5867 = vst [vmem:[#allocation49_spill] sm:$0xff] %v4516_v9  ;;  %v4519_v10 = vld [vmem:[#allocation6 + $0x120] ss:$16 sps:$4 sm:$0xff]   ;;  %v4522_v12 = vld [vmem:[#allocation6 + $0x128] ss:$16 sps:$4 sm:$0xff]  }
 0x3d9   :  { %5868 = vst [vmem:[#allocation50_spill] sm:$0xff] %v4519_v10  ;;  %5869 = vst [vmem:[#allocation51_spill] sm:$0xff] %v4522_v12 }
 0x3db   :  { %1722 = vmatpush1.bf16.msra.mxu0 %v4507_v13  ;;  %1763 = vmatpush1.bf16.msra.mxu1 %v4510_v14  ;;  %v4525_v13 = vld [vmem:[#allocation6 + $0x144] ss:$16 sps:$4 sm:$0xff]   ;;  %v4528_v14 = vld [vmem:[#allocation6 + $0x14c] ss:$16 sps:$4 sm:$0xff]  }
 0x3dc   :  { %1723 = vmatprep.subr.bf16.mxu0 %v4513_v17  ;;  %1764 = vmatprep.subr.bf16.mxu1 %v4516_v9  ;;  %5870 = vst [vmem:[#allocation52_spill] sm:$0xff] %v4525_v13  ;;  %5871 = vst [vmem:[#allocation53_spill] sm:$0xff] %v4528_v14  ;;  %v4531_v17 = vld [vmem:[#allocation6 + $0x140] ss:$16 sps:$4 sm:$0xff]   ;;  %v4534_v9 = vld [vmem:[#allocation6 + $0x148] ss:$16 sps:$4 sm:$0xff]  }
 0x3dd   :  { %5872 = vst [vmem:[#allocation54_spill] sm:$0xff] %v4531_v17  ;;  %5873 = vst [vmem:[#allocation55_spill] sm:$0xff] %v4534_v9 }
 0x3df   :  { %1724 = vmatpush1.bf16.msra.mxu0 %v4519_v10  ;;  %1765 = vmatpush1.bf16.msra.mxu1 %v4522_v12  ;;  %v4537_v10 = vld [vmem:[#allocation6 + $0x164] ss:$16 sps:$4 sm:$0xff]   ;;  %v4540_v12 = vld [vmem:[#allocation6 + $0x16c] ss:$16 sps:$4 sm:$0xff]  }
 0x3e0   :  { %1725 = vmatprep.subr.bf16.mxu0 %v4525_v13  ;;  %1766 = vmatprep.subr.bf16.mxu1 %v4528_v14  ;;  %5874 = vst [vmem:[#allocation56_spill] sm:$0xff] %v4537_v10  ;;  %5875 = vst [vmem:[#allocation57_spill] sm:$0xff] %v4540_v12  ;;  %v4543_v13 = vld [vmem:[#allocation6 + $0x160] ss:$16 sps:$4 sm:$0xff]   ;;  %v4546_v14 = vld [vmem:[#allocation6 + $0x168] ss:$16 sps:$4 sm:$0xff]  }
 0x3e1   :  { %5876 = vst [vmem:[#allocation58_spill] sm:$0xff] %v4543_v13  ;;  %5877 = vst [vmem:[#allocation59_spill] sm:$0xff] %v4546_v14 }
 0x3e3   :  { %1726 = vmatpush1.bf16.msra.mxu0 %v4531_v17  ;;  %1767 = vmatpush1.bf16.msra.mxu1 %v4534_v9  ;;  %v4549_v17 = vld [vmem:[#allocation6 + $0x184] ss:$16 sps:$4 sm:$0xff]   ;;  %v4552_v9 = vld [vmem:[#allocation6 + $0x18c] ss:$16 sps:$4 sm:$0xff]  }
 0x3e4   :  { %1727 = vmatprep.subr.bf16.mxu0 %v4537_v10  ;;  %1768 = vmatprep.subr.bf16.mxu1 %v4540_v12  ;;  %5878 = vst [vmem:[#allocation60_spill] sm:$0xff] %v4549_v17  ;;  %5879 = vst [vmem:[#allocation61_spill] sm:$0xff] %v4552_v9  ;;  %v4555_v10 = vld [vmem:[#allocation6 + $0x180] ss:$16 sps:$4 sm:$0xff]   ;;  %v4558_v12 = vld [vmem:[#allocation6 + $0x188] ss:$16 sps:$4 sm:$0xff]  }
 0x3e5   :  { %5880 = vst [vmem:[#allocation62_spill] sm:$0xff] %v4555_v10  ;;  %5881 = vst [vmem:[#allocation63_spill] sm:$0xff] %v4558_v12 }
 0x3e7   :  { %1728 = vmatpush1.bf16.msra.mxu0 %v4543_v13  ;;  %1769 = vmatpush1.bf16.msra.mxu1 %v4546_v14  ;;  %v4561_v13 = vld [vmem:[#allocation6 + $0x1a4] ss:$16 sps:$4 sm:$0xff]   ;;  %v4564_v14 = vld [vmem:[#allocation6 + $0x1ac] ss:$16 sps:$4 sm:$0xff]  }
 0x3e8   :  { %1729 = vmatprep.subr.bf16.mxu0 %v4549_v17  ;;  %1770 = vmatprep.subr.bf16.mxu1 %v4552_v9  ;;  %5882 = vst [vmem:[#allocation64_spill] sm:$0xff] %v4561_v13  ;;  %5883 = vst [vmem:[#allocation10_spill] sm:$0xff] %v4564_v14  ;;  %v4567_v17 = vld [vmem:[#allocation6 + $0x1a0] ss:$16 sps:$4 sm:$0xff]   ;;  %v4570_v9 = vld [vmem:[#allocation6 + $0x1a8] ss:$16 sps:$4 sm:$0xff]  }
 0x3e9   :  { %5884 = vst [vmem:[#allocation11_spill] sm:$0xff] %v4567_v17  ;;  %5885 = vst [vmem:[#allocation70_spill] sm:$0xff] %v4570_v9 }
 0x3eb   :  { %1730 = vmatpush1.bf16.msra.mxu0 %v4555_v10  ;;  %1771 = vmatpush1.bf16.msra.mxu1 %v4558_v12  ;;  %v4573_v10 = vld [vmem:[#allocation6 + $0x1c4] ss:$16 sps:$4 sm:$0xff]   ;;  %v4576_v12 = vld [vmem:[#allocation6 + $0x1cc] ss:$16 sps:$4 sm:$0xff]  }
 0x3ec   :  { %1731 = vmatprep.subr.bf16.mxu0 %v4561_v13  ;;  %1772 = vmatprep.subr.bf16.mxu1 %v4564_v14  ;;  %5886 = vst [vmem:[#allocation71_spill] sm:$0xff] %v4573_v10  ;;  %5887 = vst [vmem:[#allocation72_spill] sm:$0xff] %v4576_v12  ;;  %v4579_v13 = vld [vmem:[#allocation6 + $0x1c0] ss:$16 sps:$4 sm:$0xff]   ;;  %v4582_v14 = vld [vmem:[#allocation6 + $0x1c8] ss:$16 sps:$4 sm:$0xff]  }
 0x3ed   :  { %5888 = vst [vmem:[#allocation73_spill] sm:$0xff] %v4579_v13  ;;  %5889 = vst [vmem:[#allocation16_spill] sm:$0xff] %v4582_v14 }
 0x3ef   :  { %1732 = vmatpush1.bf16.msra.mxu0 %v4567_v17  ;;  %1773 = vmatpush1.bf16.msra.mxu1 %v4570_v9  ;;  %v4585_v17 = vld [vmem:[#allocation6 + $0x1e4] ss:$16 sps:$4 sm:$0xff]   ;;  %v4588_v9 = vld [vmem:[#allocation6 + $0x1ec] ss:$16 sps:$4 sm:$0xff]  }
 0x3f0   :  { %1733 = vmatprep.subr.bf16.mxu0 %v4573_v10  ;;  %1774 = vmatprep.subr.bf16.mxu1 %v4576_v12  ;;  %5890 = vst [vmem:[#allocation17_spill] sm:$0xff] %v4585_v17  ;;  %5891 = vst [vmem:[#allocation18_spill] sm:$0xff] %v4588_v9  ;;  %v4591_v10 = vld [vmem:[#allocation6 + $0x1e0] ss:$16 sps:$4 sm:$0xff]   ;;  %v4594_v12 = vld [vmem:[#allocation6 + $0x1e8] ss:$16 sps:$4 sm:$0xff]  }
 0x3f1   :  { %5892 = vst [vmem:[#allocation19_spill] sm:$0xff] %v4591_v10  ;;  %5893 = vst [vmem:[#allocation20_spill] sm:$0xff] %v4594_v12 }
 0x3f3   :  { %1734 = vmatpush1.bf16.msra.mxu0 %v4579_v13  ;;  %1775 = vmatpush1.bf16.msra.mxu1 %v4582_v14 }
 0x3f4   :  { %1735 = vmatprep.subr.bf16.mxu0 %v4585_v17  ;;  %1776 = vmatprep.subr.bf16.mxu1 %v4588_v9 }
 0x3f7   :  { %1736 = vmatpush1.bf16.msra.mxu0 %v4591_v10  ;;  %1777 = vmatpush1.bf16.msra.mxu1 %v4594_v12 }
 0x3f8   :  { %1815 = vmatprep.subr.bf16.mxu0 %v5819_v24  ;;  %1856 = vmatprep.subr.bf16.mxu1 %v5820_v25 }
 0x46d   :  { %v1517_v14 = vpop.f32.mrb[36].mxu0  ;;  %v1558_v13 = vpop.f32.mrb[36].mxu1 }
 0x46e   :  { %v1518_v17 = vadd.f32 %v1517_v14, %v5821_v29  ;;  %v1519_v50 = vpop.f32.mrb[37].mxu0  ;;  %v1560_v49 = vpop.f32.mrb[37].mxu1  ;;  %v1559_v24 = vadd.f32 %v1558_v13, %v5823_v1  ;;  %v5897_v1 = vld [vmem:[#allocation77_spill] sm:$0xff] }
 0x46f   :  { %v1520_v9 = vadd.f32 %v1519_v50, %v5822_v34  ;;  %v1521_v48 = vpop.f32.mrb[38].mxu0  ;;  %v1562_v47 = vpop.f32.mrb[38].mxu1  ;;  %v1561_v25 = vadd.f32 %v1560_v49, %v5824_v58 }
 0x470   :  { %v2852_v46 = vmul.f32 -1.442695, %v1518_v17  ;;  %v1522_v10 = vpop.f32.mrb[39].mxu0  ;;  %v1563_v45 = vpop.f32.mrb[39].mxu1  ;;  %v2854_v12 = vmul.f32 -1.442695, %v1559_v24 }
 0x471   :  { %v2853_v44 = vmul.f32 -1.442695, %v1520_v9  ;;  %v5894_v24 = vld [vmem:[#allocation74_spill] sm:$0xff] }
 0x472   :  { %3127 = vpow2.f32 %v2852_v46 }
 0x473   :  { %3129 = vpow2.f32 %v2853_v44 }
 0x474   :  { %3131 = vtanh.f32 %v1561_v25  ;;  %v5895_v25 = vld [vmem:[#allocation75_spill] sm:$0xff] }
 0x475   :  { %3133 = vpow2.f32 %v2854_v12 }
 0x47c   :  { %v3128_v43 = vpop.eup %3127 }
 0x47d   :  { %v1574_v42 = vadd.f32 1.0, %v3128_v43  ;;  %v3130_v14 = vpop.eup %3129 }
 0x47e   :  { %v1575_v50 = vadd.f32 1.0, %v3130_v14  ;;  %v3132_v47 = vpop.eup %3131  ;;  %v5896_v14 = vld [vmem:[#allocation76_spill] sm:$0xff] }
 0x47f   :  { %3135 = vrcp.f32 %v1574_v42  ;;  %v3134_v48 = vpop.eup %3133 }
 0x480   :  { %3137 = vrcp.f32 %v1575_v50  ;;  %v1576_v46 = vadd.f32 1.0, %v3134_v48 }
 0x482   :  { %3139 = vrcp.f32 %v1576_v46 }
 0x489   :  { %v3136_v10 = vpop.eup %3135 }
 0x48a   :  { %v1585_v45 = vmul.f32 %v3136_v10, %v3132_v47  ;;  %v3138_v9 = vpop.eup %3137 }
 0x48b   :  { %v1584_v44 = vmul.f32 %v3138_v9, %v4362_v16 }
 0x48c   :  { %v3140_v9 = vpop.eup %3139 }
 0x48d   :  { %v1627_v13 = vpop.f32.mrb[40].mxu0  ;;  %v1668_v17 = vpop.f32.mrb[40].mxu1  ;;  %v4604_v49 = vadd.f32 %v1585_v45, %v1584_v44 }
 0x48e   :  { %v1675_v43 = vadd.f32 %v1627_v13, %v5894_v24  ;;  %v1677_v58 = vadd.f32 %v1668_v17, %v5895_v25  ;;  %v1629_v12 = vpop.f32.mrb[41].mxu0  ;;  %v1670_v42 = vpop.f32.mrb[41].mxu1 }
 0x48f   :  { %v1676_v50 = vadd.f32 %v1629_v12, %v5896_v14  ;;  %v1678_v34 = vadd.f32 %v1670_v42, %v5897_v1  ;;  %v1631_v47 = vpop.f32.mrb[42].mxu0  ;;  %v1672_v10 = vpop.f32.mrb[42].mxu1  ;;  %3141 = vtanh.f32 %v4604_v49 }
 0x490   :  { %v2855_v48 = vmul.f32 -1.442695, %v1675_v43  ;;  %v1632_v29 = vpop.f32.mrb[43].mxu0  ;;  %v1673_v16 = vpop.f32.mrb[43].mxu1  ;;  %v2857_v13 = vmul.f32 -1.442695, %v1677_v58 }
 0x491   :  { %v2856_v45 = vmul.f32 -1.442695, %v1676_v50 }
 0x492   :  { %3143 = vpow2.f32 %v2855_v48 }
 0x493   :  { %3145 = vpow2.f32 %v2856_v45 }
 0x494   :  { %3147 = vtanh.f32 %v1678_v34 }
 0x495   :  { %3149 = vpow2.f32 %v2857_v13  ;;  %v5931_v13 = vld [vmem:[#allocation55_spill] sm:$0xff] }
 0x499   :  { %v3142_v44 = vpop.eup %3141 }
 0x49a   :  { %v1588_v17 = vmul.f32 %v3142_v44, %v3140_v9  ;;  %v5929_v9 = vld [vmem:[#allocation53_spill] sm:$0xff]  ;;  %v5930_v44 = vld [vmem:[#allocation54_spill] sm:$0xff] }
 0x49c   :  { %v3144_v24 = vpop.eup %3143  ;;  %v1704_v25 = vpack.c.bf16 %v1588_v17, %v1588_v17  ;;  %v5932_v17 = vld [vmem:[#allocation56_spill] sm:$0xff] }
 0x49d   :  { %v1688_v46 = vadd.f32 1.0, %v3144_v24  ;;  %v3146_v12 = vpop.eup %3145  ;;  %v5933_v24 = vld [vmem:[#allocation57_spill] sm:$0xff] }
 0x49e   :  { %v1689_v1 = vadd.f32 1.0, %v3146_v12  ;;  %1737 = vmatprep.mubr.bf16.mxu0 %v1704_v25  ;;  %1778 = vmatprep.mubr.bf16.mxu1 %v1704_v25  ;;  %v3148_v29 = vpop.eup %3147  ;;  %v5935_v25 = vld [vmem:[#allocation59_spill] sm:$0xff]  ;;  %v5936_v12 = vld [vmem:[#allocation60_spill] sm:$0xff] }
 0x49f   :  { %3151 = vrcp.f32 %v1688_v46  ;;  %v3150_v43 = vpop.eup %3149  ;;  %v5934_v46 = vld [vmem:[#allocation58_spill] sm:$0xff] }
 0x4a0   :  { %3153 = vrcp.f32 %v1689_v1  ;;  %v1690_v47 = vadd.f32 1.0, %v3150_v43  ;;  %v5937_v1 = vld [vmem:[#allocation61_spill] sm:$0xff]  ;;  %v5939_v43 = vld [vmem:[#allocation63_spill] sm:$0xff] }
 0x4a2   :  { %3155 = vrcp.f32 %v1690_v47  ;;  %v5943_v47 = vld [vmem:[#allocation70_spill] sm:$0xff] }
 0x4a9   :  { %v3152_v42 = vpop.eup %3151 }
 0x4aa   :  { %v1699_v14 = vmul.f32 %v3152_v42, %v3148_v29  ;;  %v3154_v50 = vpop.eup %3153  ;;  %v5938_v29 = vld [vmem:[#allocation62_spill] sm:$0xff]  ;;  %v5940_v42 = vld [vmem:[#allocation64_spill] sm:$0xff] }
 0x4ab   :  { %v1698_v58 = vmul.f32 %v3154_v50, %v4370_v11  ;;  %v5917_v11 = vld [vmem:[#allocation69_spill] sm:$0xff]  ;;  %v5942_v50 = vld [vmem:[#allocation11_spill] sm:$0xff] }
 0x4ac   :  { %v3156_v34 = vpop.eup %3155 }
 0x4ad   :  { %v4612_v10 = vadd.f32 %v1699_v14, %v1698_v58  ;;  %v5941_v14 = vld [vmem:[#allocation10_spill] sm:$0xff]  ;;  %v5944_v58 = vld [vmem:[#allocation71_spill] sm:$0xff] }
 0x4af   :  { %3157 = vtanh.f32 %v4612_v10 }
 0x4b9   :  { %v3158_v48 = vpop.eup %3157 }
 0x4ba   :  { %v1702_v16 = vmul.f32 %v3158_v48, %v3156_v34  ;;  %v5945_v34 = vld [vmem:[#allocation72_spill] sm:$0xff]  ;;  %v5946_v48 = vld [vmem:[#allocation73_spill] sm:$0xff] }
 0x4bc   :  { %v1703_v45 = vpack.c.bf16 %v1702_v16, %v1702_v16  ;;  %v5947_v16 = vld [vmem:[#allocation16_spill] sm:$0xff] }
 0x4be   :  { %1738 = vmatmul.mubr.bf16.vlgmr.msra.gmra.mrb[44].mxu0 %v1703_v45  ;;  %1779 = vmatmul.mubr.bf16.vlgmr.msra.gmra.mrb[44].mxu1 %v1703_v45 }
 0x4bf   :  { %1816 = vmatpush1.bf16.msra.mxu0 %v4197_v54  ;;  %1857 = vmatpush1.bf16.msra.mxu1 %v4200_v55  ;;  %v5898_v54 = vld [vmem:[#allocation27_spill] sm:$0xff]  ;;  %v5899_v55 = vld [vmem:[#allocation28_spill] sm:$0xff] }
 0x4c0   :  { %1817 = vmatprep.subr.bf16.mxu0 %v4203_v5  ;;  %1858 = vmatprep.subr.bf16.mxu1 %v4206_v26  ;;  %v5900_v5 = vld [vmem:[#allocation29_spill] sm:$0xff]  ;;  %v5901_v26 = vld [vmem:[#allocation30_spill] sm:$0xff] }
 0x4c1   :  { %1847 = vmatprep.mubr.bf16.mxu0 %v5714_v52  ;;  %1888 = vmatprep.mubr.bf16.mxu1 %v5714_v52 }
 0x4c3   :  { %1818 = vmatpush1.bf16.msra.mxu0 %v4211_v7  ;;  %1859 = vmatpush1.bf16.msra.mxu1 %v4214_v56  ;;  %v5902_v7 = vld [vmem:[#allocation31_spill] sm:$0xff]  ;;  %v5903_v56 = vld [vmem:[#allocation32_spill] sm:$0xff] }
 0x4c4   :  { %1819 = vmatprep.subr.bf16.mxu0 %v4217_v15  ;;  %1860 = vmatprep.subr.bf16.mxu1 %v4220_v0  ;;  %v5904_v15 = vld [vmem:[#allocation33_spill] sm:$0xff]  ;;  %v5905_v0 = vld [vmem:[#allocation34_spill] sm:$0xff] }
 0x4c7   :  { %1820 = vmatpush1.bf16.msra.mxu0 %v4223_v59  ;;  %1861 = vmatpush1.bf16.msra.mxu1 %v4226_v8  ;;  %v5906_v59 = vld [vmem:[#allocation35_spill] sm:$0xff]  ;;  %v5907_v8 = vld [vmem:[#allocation36_spill] sm:$0xff] }
 0x4c8   :  { %1821 = vmatprep.subr.bf16.mxu0 %v4229_v63  ;;  %1862 = vmatprep.subr.bf16.mxu1 %v4232_v33  ;;  %v5908_v63 = vld [vmem:[#allocation37_spill] sm:$0xff]  ;;  %v5909_v33 = vld [vmem:[#allocation38_spill] sm:$0xff] }
 0x4cb   :  { %1822 = vmatpush1.bf16.msra.mxu0 %v4235_v62  ;;  %1863 = vmatpush1.bf16.msra.mxu1 %v5829_v53  ;;  %v5910_v62 = vld [vmem:[#allocation39_spill] sm:$0xff]  ;;  %v5918_v53 = vld [vmem:[#allocation42_spill] sm:$0xff] }
 0x4cc   :  { %1823 = vmatprep.subr.bf16.mxu0 %v5830_v18  ;;  %1864 = vmatprep.subr.bf16.mxu1 %v5831_v19  ;;  %v5919_v18 = vld [vmem:[#allocation43_spill] sm:$0xff]  ;;  %v5920_v19 = vld [vmem:[#allocation44_spill] sm:$0xff] }
 0x4cf   :  { %1824 = vmatpush1.bf16.msra.mxu0 %v5832_v20  ;;  %1865 = vmatpush1.bf16.msra.mxu1 %v5833_v21  ;;  %v5921_v20 = vld [vmem:[#allocation45_spill] sm:$0xff]  ;;  %v5922_v21 = vld [vmem:[#allocation46_spill] sm:$0xff] }
 0x4d0   :  { %1825 = vmatprep.subr.bf16.mxu0 %v5834_v22  ;;  %1866 = vmatprep.subr.bf16.mxu1 %v5835_v23  ;;  %v5923_v22 = vld [vmem:[#allocation47_spill] sm:$0xff]  ;;  %v5924_v23 = vld [vmem:[#allocation48_spill] sm:$0xff] }
 0x4d3   :  { %1826 = vmatpush1.bf16.msra.mxu0 %v5836_v27  ;;  %1867 = vmatpush1.bf16.msra.mxu1 %v5837_v28  ;;  %v5925_v27 = vld [vmem:[#allocation49_spill] sm:$0xff]  ;;  %v5926_v28 = vld [vmem:[#allocation50_spill] sm:$0xff] }
 0x4d4   :  { %1827 = vmatprep.subr.bf16.mxu0 %v5838_v30  ;;  %1868 = vmatprep.subr.bf16.mxu1 %v5839_v31  ;;  %v5927_v30 = vld [vmem:[#allocation51_spill] sm:$0xff]  ;;  %v5928_v31 = vld [vmem:[#allocation52_spill] sm:$0xff] }
 0x4d7   :  { %1828 = vmatpush1.bf16.msra.mxu0 %v4271_v57  ;;  %1869 = vmatpush1.bf16.msra.mxu1 %v4274_v3  ;;  %v5911_v3 = vld [vmem:[#allocation40_spill] sm:$0xff] }
 0x4d8   :  { %1829 = vmatprep.subr.bf16.mxu0 %v4277_v61  ;;  %1870 = vmatprep.subr.bf16.mxu1 %v4280_v6  ;;  %v5912_v61 = vld [vmem:[#allocation41_spill] sm:$0xff]  ;;  %v5916_v57 = vld [vmem:[#allocation68_spill] sm:$0xff] }
 0x4d9   :  { %v5913_v6 = vld [vmem:[#allocation65_spill] sm:$0xff] }
 0x4db   :  { %1830 = vmatpush1.bf16.msra.mxu0 %v4283_v4  ;;  %1871 = vmatpush1.bf16.msra.mxu1 %v4286_v51  ;;  %v5914_v4 = vld [vmem:[#allocation66_spill] sm:$0xff]  ;;  %v5915_v51 = vld [vmem:[#allocation67_spill] sm:$0xff] }
 0x4dc   :  { %1927 = vmatprep.subr.bf16.mxu0 %v4405_v32  ;;  %1968 = vmatprep.subr.bf16.mxu1 %v4408_v35 }
 0x4de   :  { %1848 = vmatmul.mubr.bf16.vlgmr.msra.gmra.mrb[48].mxu0 %v1703_v45  ;;  %1889 = vmatmul.mubr.bf16.vlgmr.msra.gmra.mrb[48].mxu1 %v1703_v45  ;;  %v5948_v45 = vld [vmem:[#allocation17_spill] sm:$0xff] }
 0x4df   :  { %1928 = vmatpush1.bf16.msra.mxu0 %v4411_v36  ;;  %1969 = vmatpush1.bf16.msra.mxu1 %v4414_v2 }
 0x4e0   :  { %1929 = vmatprep.subr.bf16.mxu0 %v4417_v37  ;;  %1970 = vmatprep.subr.bf16.mxu1 %v4420_v38 }
 0x4e3   :  { %1930 = vmatpush1.bf16.msra.mxu0 %v4423_v39  ;;  %1971 = vmatpush1.bf16.msra.mxu1 %v4426_v40 }
 0x4e4   :  { %1931 = vmatprep.subr.bf16.mxu0 %v4429_v41  ;;  %1972 = vmatprep.subr.bf16.mxu1 %v4432_v60 }
 0x4e7   :  { %1932 = vmatpush1.bf16.msra.mxu0 %v5898_v54  ;;  %1973 = vmatpush1.bf16.msra.mxu1 %v5899_v55 }
 0x4e8   :  { %1933 = vmatprep.subr.bf16.mxu0 %v5900_v5  ;;  %1974 = vmatprep.subr.bf16.mxu1 %v5901_v26 }
 0x4eb   :  { %1934 = vmatpush1.bf16.msra.mxu0 %v5902_v7  ;;  %1975 = vmatpush1.bf16.msra.mxu1 %v5903_v56 }
 0x4ec   :  { %1935 = vmatprep.subr.bf16.mxu0 %v5904_v15  ;;  %1976 = vmatprep.subr.bf16.mxu1 %v5905_v0 }
 0x4ef   :  { %1936 = vmatpush1.bf16.msra.mxu0 %v5906_v59  ;;  %1977 = vmatpush1.bf16.msra.mxu1 %v5907_v8 }
 0x4f0   :  { %1937 = vmatprep.subr.bf16.mxu0 %v5908_v63  ;;  %1978 = vmatprep.subr.bf16.mxu1 %v5909_v33 }
 0x4f3   :  { %1938 = vmatpush1.bf16.msra.mxu0 %v5910_v62  ;;  %1979 = vmatpush1.bf16.msra.mxu1 %v5911_v3 }
 0x4f4   :  { %1939 = vmatprep.subr.bf16.mxu0 %v5912_v61  ;;  %1980 = vmatprep.subr.bf16.mxu1 %v5913_v6 }
 0x4f7   :  { %1940 = vmatpush1.bf16.msra.mxu0 %v5914_v4  ;;  %1981 = vmatpush1.bf16.msra.mxu1 %v5915_v51 }
 0x4f8   :  { %1941 = vmatprep.subr.bf16.mxu0 %v5916_v57  ;;  %1982 = vmatprep.subr.bf16.mxu1 %v5917_v11 }
 0x4fb   :  { %1942 = vmatpush1.bf16.msra.mxu0 %v5918_v53  ;;  %1983 = vmatpush1.bf16.msra.mxu1 %v5919_v18 }
 0x4fc   :  { %1943 = vmatprep.subr.bf16.mxu0 %v5920_v19  ;;  %1984 = vmatprep.subr.bf16.mxu1 %v5921_v20 }
 0x4ff   :  { %1944 = vmatpush1.bf16.msra.mxu0 %v5922_v21  ;;  %1985 = vmatpush1.bf16.msra.mxu1 %v5923_v22 }
 0x500   :  { %1945 = vmatprep.subr.bf16.mxu0 %v5924_v23  ;;  %1986 = vmatprep.subr.bf16.mxu1 %v5925_v27 }
 0x503   :  { %1946 = vmatpush1.bf16.msra.mxu0 %v5926_v28  ;;  %1987 = vmatpush1.bf16.msra.mxu1 %v5927_v30 }
 0x504   :  { %1947 = vmatprep.subr.bf16.mxu0 %v5928_v31  ;;  %1988 = vmatprep.subr.bf16.mxu1 %v5929_v9 }
 0x507   :  { %1948 = vmatpush1.bf16.msra.mxu0 %v5930_v44  ;;  %1989 = vmatpush1.bf16.msra.mxu1 %v5931_v13  ;;  %v5957_v13 = vld [vmem:[#allocation15_spill] sm:$0xff] }
 0x508   :  { %1949 = vmatprep.subr.bf16.mxu0 %v5932_v17  ;;  %1990 = vmatprep.subr.bf16.mxu1 %v5933_v24 }
 0x50b   :  { %1950 = vmatpush1.bf16.msra.mxu0 %v5934_v46  ;;  %1991 = vmatpush1.bf16.msra.mxu1 %v5935_v25 }
 0x50c   :  { %1951 = vmatprep.subr.bf16.mxu0 %v5936_v12  ;;  %1992 = vmatprep.subr.bf16.mxu1 %v5937_v1  ;;  %v5955_v1 = vld [vmem:[#allocation13_spill] sm:$0xff] }
 0x50f   :  { %1952 = vmatpush1.bf16.msra.mxu0 %v5938_v29  ;;  %1993 = vmatpush1.bf16.msra.mxu1 %v5939_v43  ;;  %v5949_v29 = vld [vmem:[#allocation18_spill] sm:$0xff]  ;;  %v5950_v43 = vld [vmem:[#allocation19_spill] sm:$0xff] }
 0x510   :  { %1953 = vmatprep.subr.bf16.mxu0 %v5940_v42  ;;  %1994 = vmatprep.subr.bf16.mxu1 %v5941_v14  ;;  %v5951_v42 = vld [vmem:[#allocation20_spill] sm:$0xff] }
 0x511   :  { %v4711_v14 = vld [vmem:[#allocation4 + $0x4] ss:$16 sps:$4 sm:$0xff]  }
 0x512   :  { %5952 = vst [vmem:[#allocation21_spill] sm:$0xff] %v4711_v14 }
 0x513   :  { %1954 = vmatpush1.bf16.msra.mxu0 %v5942_v50  ;;  %1995 = vmatpush1.bf16.msra.mxu1 %v5943_v47  ;;  %v4714_v47 = vld [vmem:[#allocation4 + $0xc] ss:$16 sps:$4 sm:$0xff]  }
 0x514   :  { %1955 = vmatprep.subr.bf16.mxu0 %v5944_v58  ;;  %1996 = vmatprep.subr.bf16.mxu1 %v5945_v34  ;;  %5953 = vst [vmem:[#allocation22_spill] sm:$0xff] %v4714_v47  ;;  %v5954_v58 = vld [vmem:[#allocation12_spill] sm:$0xff] }
 0x517   :  { %1956 = vmatpush1.bf16.msra.mxu0 %v5946_v48  ;;  %1997 = vmatpush1.bf16.msra.mxu1 %v5947_v16 }
 0x518   :  { %1957 = vmatprep.subr.bf16.mxu0 %v5948_v45  ;;  %1998 = vmatprep.subr.bf16.mxu1 %v5949_v29 }
 0x51b   :  { %1958 = vmatpush1.bf16.msra.mxu0 %v5950_v43  ;;  %1999 = vmatpush1.bf16.msra.mxu1 %v5951_v42 }
 0x51c   :  { %2037 = vmatprep.subr.bf16.mxu0 %v4711_v14  ;;  %2078 = vmatprep.subr.bf16.mxu1 %v4714_v47  ;;  %v5956_v14 = vld [vmem:[#allocation14_spill] sm:$0xff] }
 0x591   :  { %v1739_v34 = vpop.f32.mrb[44].mxu0  ;;  %v1780_v48 = vpop.f32.mrb[44].mxu1 }
 0x592   :  { %v1740_v16 = vadd.f32 %v1739_v34, %v5954_v58  ;;  %v1741_v50 = vpop.f32.mrb[45].mxu0  ;;  %v1782_v45 = vpop.f32.mrb[45].mxu1  ;;  %v1781_v17 = vadd.f32 %v1780_v48, %v5956_v14  ;;  %v5961_v14 = vld [vmem:[#allocation81_spill] sm:$0xff] }
 0x593   :  { %v1742_v29 = vadd.f32 %v1741_v50, %v5955_v1  ;;  %v1743_v12 = vpop.f32.mrb[46].mxu0  ;;  %v1784_v43 = vpop.f32.mrb[46].mxu1  ;;  %v1783_v47 = vadd.f32 %v1782_v45, %v5957_v13 }
 0x594   :  { %v2858_v25 = vmul.f32 -1.442695, %v1740_v16  ;;  %v1744_v42 = vpop.f32.mrb[47].mxu0  ;;  %v1785_v46 = vpop.f32.mrb[47].mxu1  ;;  %v2860_v44 = vmul.f32 -1.442695, %v1781_v17 }
 0x595   :  { %v2859_v24 = vmul.f32 -1.442695, %v1742_v29  ;;  %v5958_v17 = vld [vmem:[#allocation78_spill] sm:$0xff] }
 0x596   :  { %3159 = vpow2.f32 %v2858_v25 }
 0x597   :  { %3161 = vpow2.f32 %v2859_v24 }
 0x598   :  { %3163 = vtanh.f32 %v1783_v47  ;;  %v5959_v47 = vld [vmem:[#allocation79_spill] sm:$0xff] }
 0x599   :  { %3165 = vpow2.f32 %v2860_v44 }
 0x5a0   :  { %v3160_v9 = vpop.eup %3159 }
 0x5a1   :  { %v1796_v31 = vadd.f32 1.0, %v3160_v9  ;;  %v3162_v34 = vpop.eup %3161 }
 0x5a2   :  { %v1797_v50 = vadd.f32 1.0, %v3162_v34  ;;  %v3164_v12 = vpop.eup %3163  ;;  %v5960_v34 = vld [vmem:[#allocation80_spill] sm:$0xff] }
 0x5a3   :  { %3167 = vrcp.f32 %v1796_v31  ;;  %v3166_v43 = vpop.eup %3165 }
 0x5a4   :  { %3169 = vrcp.f32 %v1797_v50  ;;  %v1798_v25 = vadd.f32 1.0, %v3166_v43 }
 0x5a6   :  { %3171 = vrcp.f32 %v1798_v25 }
 0x5ad   :  { %v3168_v42 = vpop.eup %3167 }
 0x5ae   :  { %v1807_v46 = vmul.f32 %v3168_v42, %v3164_v12  ;;  %v3170_v29 = vpop.eup %3169 }
 0x5af   :  { %v1806_v24 = vmul.f32 %v3170_v29, %v4604_v49 }
 0x5b0   :  { %v3172_v29 = vpop.eup %3171 }
 0x5b1   :  { %v1849_v48 = vpop.f32.mrb[48].mxu0  ;;  %v1890_v16 = vpop.f32.mrb[48].mxu1  ;;  %v4722_v45 = vadd.f32 %v1807_v46, %v1806_v24 }
 0x5b2   :  { %v1897_v9 = vadd.f32 %v1849_v48, %v5958_v17  ;;  %v1899_v13 = vadd.f32 %v1890_v16, %v5959_v47  ;;  %v1851_v44 = vpop.f32.mrb[49].mxu0  ;;  %v1892_v31 = vpop.f32.mrb[49].mxu1 }
 0x5b3   :  { %v1898_v50 = vadd.f32 %v1851_v44, %v5960_v34  ;;  %v1900_v1 = vadd.f32 %v1892_v31, %v5961_v14  ;;  %v1853_v12 = vpop.f32.mrb[50].mxu0  ;;  %v1894_v42 = vpop.f32.mrb[50].mxu1  ;;  %3173 = vtanh.f32 %v4722_v45 }
 0x5b4   :  { %v2861_v43 = vmul.f32 -1.442695, %v1897_v9  ;;  %v1854_v58 = vpop.f32.mrb[51].mxu0  ;;  %v1895_v49 = vpop.f32.mrb[51].mxu1  ;;  %v2863_v48 = vmul.f32 -1.442695, %v1899_v13 }
 0x5b5   :  { %v2862_v46 = vmul.f32 -1.442695, %v1898_v50 }
 0x5b6   :  { %3175 = vpow2.f32 %v2861_v43 }
 0x5b7   :  { %3177 = vpow2.f32 %v2862_v46 }
 0x5b8   :  { %3179 = vtanh.f32 %v1900_v1 }
 0x5b9   :  { %3181 = vpow2.f32 %v2863_v48  ;;  %v4746_v48 = vld [vmem:[#allocation4 + $0x2c] ss:$16 sps:$4 sm:$0xff]  }
 0x5bd   :  { %v3174_v24 = vpop.eup %3173 }
 0x5be   :  { %v1810_v16 = vmul.f32 %v3174_v24, %v3172_v29  ;;  %v4737_v29 = vld [vmem:[#allocation4] ss:$16 sps:$4 sm:$0xff]   ;;  %v4740_v24 = vld [vmem:[#allocation4 + $0x8] ss:$16 sps:$4 sm:$0xff]  }
 0x5c0   :  { %v3176_v17 = vpop.eup %3175  ;;  %v1926_v47 = vpack.c.bf16 %v1810_v16, %v1810_v16  ;;  %v4751_v16 = vld [vmem:[#allocation4 + $0x20] ss:$16 sps:$4 sm:$0xff]  }
 0x5c1   :  { %v1910_v25 = vadd.f32 1.0, %v3176_v17  ;;  %v3178_v44 = vpop.eup %3177  ;;  %v4754_v17 = vld [vmem:[#allocation4 + $0x28] ss:$16 sps:$4 sm:$0xff]  }
 0x5c2   :  { %v1911_v14 = vadd.f32 1.0, %v3178_v44  ;;  %1959 = vmatprep.mubr.bf16.mxu0 %v1926_v47  ;;  %2000 = vmatprep.mubr.bf16.mxu1 %v1926_v47  ;;  %v3180_v58 = vpop.eup %3179  ;;  %v4760_v47 = vld [vmem:[#allocation4 + $0x4c] ss:$16 sps:$4 sm:$0xff]   ;;  %v4763_v44 = vld [vmem:[#allocation4 + $0x40] ss:$16 sps:$4 sm:$0xff]  }
 0x5c3   :  { %3183 = vrcp.f32 %v1910_v25  ;;  %v3182_v9 = vpop.eup %3181  ;;  %v4757_v25 = vld [vmem:[#allocation4 + $0x44] ss:$16 sps:$4 sm:$0xff]  }
 0x5c4   :  { %3185 = vrcp.f32 %v1911_v14  ;;  %v1912_v12 = vadd.f32 1.0, %v3182_v9  ;;  %v4766_v14 = vld [vmem:[#allocation4 + $0x48] ss:$16 sps:$4 sm:$0xff]   ;;  %v4772_v9 = vld [vmem:[#allocation4 + $0x6c] ss:$16 sps:$4 sm:$0xff]  }
 0x5c6   :  { %3187 = vrcp.f32 %v1912_v12  ;;  %v4784_v12 = vld [vmem:[#allocation4 + $0x8c] ss:$16 sps:$4 sm:$0xff]  }
 0x5c7   :  { %5963 = vst [vmem:[#allocation24_spill] sm:$0xff] %v4784_v12 }
 0x5cd   :  { %v3184_v31 = vpop.eup %3183 }
 0x5ce   :  { %v1921_v34 = vmul.f32 %v3184_v31, %v3180_v58  ;;  %v3186_v50 = vpop.eup %3185  ;;  %v4769_v58 = vld [vmem:[#allocation4 + $0x64] ss:$16 sps:$4 sm:$0xff]   ;;  %v4775_v31 = vld [vmem:[#allocation4 + $0x60] ss:$16 sps:$4 sm:$0xff]  }
 0x5cf   :  { %v1920_v13 = vmul.f32 %v3186_v50, %v4612_v10  ;;  %v4743_v10 = vld [vmem:[#allocation4 + $0x24] ss:$16 sps:$4 sm:$0xff]  }
 0x5d0   :  { %v3188_v1 = vpop.eup %3187  ;;  %v4781_v50 = vld [vmem:[#allocation4 + $0x84] ss:$16 sps:$4 sm:$0xff]  }
 0x5d1   :  { %v4730_v42 = vadd.f32 %v1921_v34, %v1920_v13  ;;  %v4778_v34 = vld [vmem:[#allocation4 + $0x68] ss:$16 sps:$4 sm:$0xff]   ;;  %5962 = vst [vmem:[#allocation23_spill] sm:$0xff] %v4781_v50  ;;  %v4787_v13 = vld [vmem:[#allocation4 + $0x80] ss:$16 sps:$4 sm:$0xff]  }
 0x5d2   :  { %5964 = vst [vmem:[#allocation25_spill] sm:$0xff] %v4787_v13 }
 0x5d3   :  { %3189 = vtanh.f32 %v4730_v42 }
 0x5dd   :  { %v3190_v43 = vpop.eup %3189 }
 0x5de   :  { %v1924_v49 = vmul.f32 %v3190_v43, %v3188_v1  ;;  %v4790_v1 = vld [vmem:[#allocation4 + $0x88] ss:$16 sps:$4 sm:$0xff]   ;;  %v4793_v43 = vld [vmem:[#allocation4 + $0xa4] ss:$16 sps:$4 sm:$0xff]  }
 0x5df   :  { %5965 = vst [vmem:[#allocation26_spill] sm:$0xff] %v4790_v1  ;;  %5966 = vst [vmem:[#allocation74_spill] sm:$0xff] %v4793_v43 }
 0x5e0   :  { %v4733_v46 = vpack.c.bf16 %v1924_v49, %v1924_v49  ;;  %v4796_v49 = vld [vmem:[#allocation4 + $0xac] ss:$16 sps:$4 sm:$0xff]  }
 0x5e1   :  { %5967 = vst [vmem:[#allocation75_spill] sm:$0xff] %v4796_v49 }
 0x5e2   :  { %1960 = vmatmul.mubr.bf16.vlgmr.msra.gmra.mrb[52].mxu0 %v4733_v46  ;;  %2001 = vmatmul.mubr.bf16.vlgmr.msra.gmra.mrb[52].mxu1 %v4733_v46 }
 0x5e3   :  { %2038 = vmatpush1.bf16.msra.mxu0 %v4737_v29  ;;  %2079 = vmatpush1.bf16.msra.mxu1 %v4740_v24 }
 0x5e4   :  { %2039 = vmatprep.subr.bf16.mxu0 %v4743_v10  ;;  %2080 = vmatprep.subr.bf16.mxu1 %v4746_v48 }
 0x5e5   :  { %2069 = vmatprep.mubr.bf16.mxu0 %v5714_v52  ;;  %2110 = vmatprep.mubr.bf16.mxu1 %v5714_v52 }
 0x5e7   :  { %2040 = vmatpush1.bf16.msra.mxu0 %v4751_v16  ;;  %2081 = vmatpush1.bf16.msra.mxu1 %v4754_v17 }
 0x5e8   :  { %2041 = vmatprep.subr.bf16.mxu0 %v4757_v25  ;;  %2082 = vmatprep.subr.bf16.mxu1 %v4760_v47 }
 0x5eb   :  { %2042 = vmatpush1.bf16.msra.mxu0 %v4763_v44  ;;  %2083 = vmatpush1.bf16.msra.mxu1 %v4766_v14 }
 0x5ec   :  { %2043 = vmatprep.subr.bf16.mxu0 %v4769_v58  ;;  %2084 = vmatprep.subr.bf16.mxu1 %v4772_v9 }
 0x5ef   :  { %2044 = vmatpush1.bf16.msra.mxu0 %v4775_v31  ;;  %2085 = vmatpush1.bf16.msra.mxu1 %v4778_v34 }
 0x5f0   :  { %2045 = vmatprep.subr.bf16.mxu0 %v4781_v50  ;;  %2086 = vmatprep.subr.bf16.mxu1 %v4784_v12  ;;  %v4799_v50 = vld [vmem:[#allocation4 + $0xa0] ss:$16 sps:$4 sm:$0xff]   ;;  %v4802_v12 = vld [vmem:[#allocation4 + $0xa8] ss:$16 sps:$4 sm:$0xff]  }
 0x5f1   :  { %5968 = vst [vmem:[#allocation76_spill] sm:$0xff] %v4799_v50  ;;  %5969 = vst [vmem:[#allocation77_spill] sm:$0xff] %v4802_v12 }
 0x5f3   :  { %2046 = vmatpush1.bf16.msra.mxu0 %v4787_v13  ;;  %2087 = vmatpush1.bf16.msra.mxu1 %v4790_v1  ;;  %v4805_v13 = vld [vmem:[#allocation4 + $0xc4] ss:$16 sps:$4 sm:$0xff]   ;;  %v4808_v1 = vld [vmem:[#allocation4 + $0xcc] ss:$16 sps:$4 sm:$0xff]  }
 0x5f4   :  { %2047 = vmatprep.subr.bf16.mxu0 %v4793_v43  ;;  %2088 = vmatprep.subr.bf16.mxu1 %v4796_v49  ;;  %5970 = vst [vmem:[#allocation27_spill] sm:$0xff] %v4805_v13  ;;  %5971 = vst [vmem:[#allocation28_spill] sm:$0xff] %v4808_v1  ;;  %v4811_v43 = vld [vmem:[#allocation4 + $0xc0] ss:$16 sps:$4 sm:$0xff]   ;;  %v4814_v49 = vld [vmem:[#allocation4 + $0xc8] ss:$16 sps:$4 sm:$0xff]  }
 0x5f7   :  { %2048 = vmatpush1.bf16.msra.mxu0 %v4799_v50  ;;  %2089 = vmatpush1.bf16.msra.mxu1 %v4802_v12  ;;  %v4817_v50 = vld [vmem:[#allocation4 + $0xe4] ss:$16 sps:$4 sm:$0xff]   ;;  %v4820_v12 = vld [vmem:[#allocation4 + $0xec] ss:$16 sps:$4 sm:$0xff]  }
 0x5f8   :  { %2049 = vmatprep.subr.bf16.mxu0 %v4805_v13  ;;  %2090 = vmatprep.subr.bf16.mxu1 %v4808_v1  ;;  %v4823_v13 = vld [vmem:[#allocation4 + $0xe0] ss:$16 sps:$4 sm:$0xff]   ;;  %v4826_v1 = vld [vmem:[#allocation4 + $0xe8] ss:$16 sps:$4 sm:$0xff]  }
 0x5fb   :  { %2050 = vmatpush1.bf16.msra.mxu0 %v4811_v43  ;;  %2091 = vmatpush1.bf16.msra.mxu1 %v4814_v49 }
 0x5fc   :  { %2051 = vmatprep.subr.bf16.mxu0 %v4817_v50  ;;  %2092 = vmatprep.subr.bf16.mxu1 %v4820_v12 }
 0x5ff   :  { %2052 = vmatpush1.bf16.msra.mxu0 %v4823_v13  ;;  %2093 = vmatpush1.bf16.msra.mxu1 %v4826_v1 }
 0x600   :  { %2149 = vmatprep.subr.bf16.mxu0 %v4405_v32  ;;  %2190 = vmatprep.subr.bf16.mxu1 %v4408_v35  ;;  %v5972_v32 = vld [vmem:[#allocation52_spill] sm:$0xff]  ;;  %v5973_v35 = vld [vmem:[#allocation53_spill] sm:$0xff] }
 0x602   :  { %2070 = vmatmul.mubr.bf16.vlgmr.msra.gmra.mrb[56].mxu0 %v4733_v46  ;;  %2111 = vmatmul.mubr.bf16.vlgmr.msra.gmra.mrb[56].mxu1 %v4733_v46  ;;  %v6000_v46 = vld [vmem:[#allocation14_spill] sm:$0xff] }
 0x603   :  { %2150 = vmatpush1.bf16.msra.mxu0 %v4411_v36  ;;  %2191 = vmatpush1.bf16.msra.mxu1 %v4414_v2  ;;  %v5974_v36 = vld [vmem:[#allocation54_spill] sm:$0xff]  ;;  %v5975_v2 = vld [vmem:[#allocation55_spill] sm:$0xff] }
 0x604   :  { %2151 = vmatprep.subr.bf16.mxu0 %v4417_v37  ;;  %2192 = vmatprep.subr.bf16.mxu1 %v4420_v38  ;;  %v5976_v37 = vld [vmem:[#allocation56_spill] sm:$0xff]  ;;  %v5977_v38 = vld [vmem:[#allocation57_spill] sm:$0xff] }
 0x607   :  { %2152 = vmatpush1.bf16.msra.mxu0 %v4423_v39  ;;  %2193 = vmatpush1.bf16.msra.mxu1 %v4426_v40  ;;  %v5978_v39 = vld [vmem:[#allocation58_spill] sm:$0xff]  ;;  %v5979_v40 = vld [vmem:[#allocation59_spill] sm:$0xff] }
 0x608   :  { %2153 = vmatprep.subr.bf16.mxu0 %v4429_v41  ;;  %2194 = vmatprep.subr.bf16.mxu1 %v4432_v60  ;;  %v5980_v41 = vld [vmem:[#allocation60_spill] sm:$0xff]  ;;  %v5981_v60 = vld [vmem:[#allocation61_spill] sm:$0xff] }
 0x60b   :  { %2154 = vmatpush1.bf16.msra.mxu0 %v5898_v54  ;;  %2195 = vmatpush1.bf16.msra.mxu1 %v5899_v55  ;;  %v5982_v54 = vld [vmem:[#allocation62_spill] sm:$0xff]  ;;  %v5983_v55 = vld [vmem:[#allocation63_spill] sm:$0xff] }
 0x60c   :  { %2155 = vmatprep.subr.bf16.mxu0 %v5900_v5  ;;  %2196 = vmatprep.subr.bf16.mxu1 %v5901_v26  ;;  %v5984_v5 = vld [vmem:[#allocation64_spill] sm:$0xff]  ;;  %v5985_v26 = vld [vmem:[#allocation10_spill] sm:$0xff] }
 0x60f   :  { %2156 = vmatpush1.bf16.msra.mxu0 %v5902_v7  ;;  %2197 = vmatpush1.bf16.msra.mxu1 %v5903_v56  ;;  %v5986_v7 = vld [vmem:[#allocation11_spill] sm:$0xff]  ;;  %v5987_v56 = vld [vmem:[#allocation70_spill] sm:$0xff] }
 0x610   :  { %2157 = vmatprep.subr.bf16.mxu0 %v5904_v15  ;;  %2198 = vmatprep.subr.bf16.mxu1 %v5905_v0  ;;  %v5988_v15 = vld [vmem:[#allocation71_spill] sm:$0xff]  ;;  %v5989_v0 = vld [vmem:[#allocation72_spill] sm:$0xff] }
 0x613   :  { %2158 = vmatpush1.bf16.msra.mxu0 %v5906_v59  ;;  %2199 = vmatpush1.bf16.msra.mxu1 %v5907_v8  ;;  %v5990_v59 = vld [vmem:[#allocation73_spill] sm:$0xff]  ;;  %v5991_v8 = vld [vmem:[#allocation16_spill] sm:$0xff] }
 0x614   :  { %2159 = vmatprep.subr.bf16.mxu0 %v5908_v63  ;;  %2200 = vmatprep.subr.bf16.mxu1 %v5909_v33  ;;  %v5992_v63 = vld [vmem:[#allocation17_spill] sm:$0xff]  ;;  %v5993_v33 = vld [vmem:[#allocation18_spill] sm:$0xff] }
 0x617   :  { %2160 = vmatpush1.bf16.msra.mxu0 %v5910_v62  ;;  %2201 = vmatpush1.bf16.msra.mxu1 %v5911_v3  ;;  %v5994_v62 = vld [vmem:[#allocation19_spill] sm:$0xff]  ;;  %v5995_v3 = vld [vmem:[#allocation20_spill] sm:$0xff] }
 0x618   :  { %2161 = vmatprep.subr.bf16.mxu0 %v5912_v61  ;;  %2202 = vmatprep.subr.bf16.mxu1 %v5913_v6  ;;  %v5996_v61 = vld [vmem:[#allocation21_spill] sm:$0xff]  ;;  %v5997_v6 = vld [vmem:[#allocation22_spill] sm:$0xff] }
 0x61b   :  { %2162 = vmatpush1.bf16.msra.mxu0 %v5914_v4  ;;  %2203 = vmatpush1.bf16.msra.mxu1 %v5915_v51 }
 0x61c   :  { %2163 = vmatprep.subr.bf16.mxu0 %v5916_v57  ;;  %2204 = vmatprep.subr.bf16.mxu1 %v5917_v11  ;;  %v5998_v57 = vld [vmem:[#allocation12_spill] sm:$0xff] }
 0x61f   :  { %2164 = vmatpush1.bf16.msra.mxu0 %v5918_v53  ;;  %2205 = vmatpush1.bf16.msra.mxu1 %v5919_v18 }
 0x620   :  { %2165 = vmatprep.subr.bf16.mxu0 %v5920_v19  ;;  %2206 = vmatprep.subr.bf16.mxu1 %v5921_v20  ;;  %v5999_v19 = vld [vmem:[#allocation13_spill] sm:$0xff] }
 0x623   :  { %2166 = vmatpush1.bf16.msra.mxu0 %v5922_v21  ;;  %2207 = vmatpush1.bf16.msra.mxu1 %v5923_v22 }
 0x624   :  { %2167 = vmatprep.subr.bf16.mxu0 %v5924_v23  ;;  %2208 = vmatprep.subr.bf16.mxu1 %v5925_v27 }
 0x627   :  { %2168 = vmatpush1.bf16.msra.mxu0 %v5926_v28  ;;  %2209 = vmatpush1.bf16.msra.mxu1 %v5927_v30 }
 0x628   :  { %2169 = vmatprep.subr.bf16.mxu0 %v5972_v32  ;;  %2210 = vmatprep.subr.bf16.mxu1 %v5973_v35  ;;  %v6001_v35 = vld [vmem:[#allocation15_spill] sm:$0xff] }
 0x62b   :  { %2170 = vmatpush1.bf16.msra.mxu0 %v5974_v36  ;;  %2211 = vmatpush1.bf16.msra.mxu1 %v5975_v2 }
 0x62c   :  { %2171 = vmatprep.subr.bf16.mxu0 %v5976_v37  ;;  %2212 = vmatprep.subr.bf16.mxu1 %v5977_v38 }
 0x62f   :  { %2172 = vmatpush1.bf16.msra.mxu0 %v5978_v39  ;;  %2213 = vmatpush1.bf16.msra.mxu1 %v5979_v40 }
 0x630   :  { %2173 = vmatprep.subr.bf16.mxu0 %v5980_v41  ;;  %2214 = vmatprep.subr.bf16.mxu1 %v5981_v60 }
 0x633   :  { %2174 = vmatpush1.bf16.msra.mxu0 %v5982_v54  ;;  %2215 = vmatpush1.bf16.msra.mxu1 %v5983_v55 }
 0x634   :  { %2175 = vmatprep.subr.bf16.mxu0 %v5984_v5  ;;  %2216 = vmatprep.subr.bf16.mxu1 %v5985_v26 }
 0x637   :  { %2176 = vmatpush1.bf16.msra.mxu0 %v5986_v7  ;;  %2217 = vmatpush1.bf16.msra.mxu1 %v5987_v56 }
 0x638   :  { %2177 = vmatprep.subr.bf16.mxu0 %v5988_v15  ;;  %2218 = vmatprep.subr.bf16.mxu1 %v5989_v0 }
 0x63b   :  { %2178 = vmatpush1.bf16.msra.mxu0 %v5990_v59  ;;  %2219 = vmatpush1.bf16.msra.mxu1 %v5991_v8  ;;  %v6002_v59 = vld [vmem:[#allocation82_spill] sm:$0xff] }
 0x63c   :  { %2179 = vmatprep.subr.bf16.mxu0 %v5992_v63  ;;  %2220 = vmatprep.subr.bf16.mxu1 %v5993_v33  ;;  %v6003_v63 = vld [vmem:[#allocation83_spill] sm:$0xff] }
 0x63f   :  { %2180 = vmatpush1.bf16.msra.mxu0 %v5994_v62  ;;  %2221 = vmatpush1.bf16.msra.mxu1 %v5995_v3 }
 0x640   :  { %2259 = vmatprep.subr.bf16.mxu0 %v5996_v61  ;;  %2300 = vmatprep.subr.bf16.mxu1 %v5997_v6 }
 0x6b5   :  { %v1961_v4 = vpop.f32.mrb[52].mxu0  ;;  %v2002_v51 = vpop.f32.mrb[52].mxu1 }
 0x6b6   :  { %v1962_v11 = vadd.f32 %v1961_v4, %v5998_v57  ;;  %v1963_v53 = vpop.f32.mrb[53].mxu0  ;;  %v2004_v18 = vpop.f32.mrb[53].mxu1  ;;  %v2003_v32 = vadd.f32 %v2002_v51, %v6000_v46  ;;  %v6004_v4 = vld [vmem:[#allocation84_spill] sm:$0xff] }
 0x6b7   :  { %v1964_v20 = vadd.f32 %v1963_v53, %v5999_v19  ;;  %v1965_v21 = vpop.f32.mrb[54].mxu0  ;;  %v2006_v22 = vpop.f32.mrb[54].mxu1  ;;  %v2005_v36 = vadd.f32 %v2004_v18, %v6001_v35 }
 0x6b8   :  { %v2864_v23 = vmul.f32 -1.442695, %v1962_v11  ;;  %v1966_v27 = vpop.f32.mrb[55].mxu0  ;;  %v2007_v28 = vpop.f32.mrb[55].mxu1  ;;  %v2866_v2 = vmul.f32 -1.442695, %v2003_v32 }
 0x6b9   :  { %v2865_v30 = vmul.f32 -1.442695, %v1964_v20  ;;  %v6005_v11 = vld [vmem:[#allocation85_spill] sm:$0xff] }
 0x6ba   :  { %3191 = vpow2.f32 %v2864_v23 }
 0x6bb   :  { %3193 = vpow2.f32 %v2865_v30 }
 0x6bc   :  { %3195 = vtanh.f32 %v2005_v36 }
 0x6bd   :  { %3197 = vpow2.f32 %v2866_v2 }
 0x6c4   :  { %v3192_v37 = vpop.eup %3191 }
 0x6c5   :  { %v2018_v38 = vadd.f32 1.0, %v3192_v37  ;;  %v3194_v39 = vpop.eup %3193 }
 0x6c6   :  { %v2019_v40 = vadd.f32 1.0, %v3194_v39  ;;  %v3196_v41 = vpop.eup %3195 }
 0x6c7   :  { %3199 = vrcp.f32 %v2018_v38  ;;  %v3198_v60 = vpop.eup %3197 }
 0x6c8   :  { %3201 = vrcp.f32 %v2019_v40  ;;  %v2020_v26 = vadd.f32 1.0, %v3198_v60 }
 0x6ca   :  { %3203 = vrcp.f32 %v2020_v26 }
 0x6d1   :  { %v3200_v54 = vpop.eup %3199 }
 0x6d2   :  { %v2029_v55 = vmul.f32 %v3200_v54, %v3196_v41  ;;  %v3202_v5 = vpop.eup %3201 }
 0x6d3   :  { %v2028_v7 = vmul.f32 %v3202_v5, %v4722_v45 }
 0x6d4   :  { %v3204_v27 = vpop.eup %3203 }
 0x6d5   :  { %v2071_v56 = vpop.f32.mrb[56].mxu0  ;;  %v2112_v15 = vpop.f32.mrb[56].mxu1  ;;  %v4902_v0 = vadd.f32 %v2029_v55, %v2028_v7 }
 0x6d6   :  { %v2119_v8 = vadd.f32 %v2071_v56, %v6002_v59  ;;  %v2121_v33 = vadd.f32 %v2112_v15, %v6003_v63  ;;  %v2073_v62 = vpop.f32.mrb[57].mxu0  ;;  %v2114_v3 = vpop.f32.mrb[57].mxu1  ;;  %v6007_v63 = vld [vmem:[#allocation24_spill] sm:$0xff] }
 0x6d7   :  { %v2120_v51 = vadd.f32 %v2073_v62, %v6004_v4  ;;  %v2122_v53 = vadd.f32 %v2114_v3, %v6005_v11  ;;  %v2075_v18 = vpop.f32.mrb[58].mxu0  ;;  %v2116_v20 = vpop.f32.mrb[58].mxu1  ;;  %3205 = vtanh.f32 %v4902_v0  ;;  %v6009_v62 = vld [vmem:[#allocation26_spill] sm:$0xff]  ;;  %v6011_v4 = vld [vmem:[#allocation75_spill] sm:$0xff]  ;;  %v6013_v11 = vld [vmem:[#allocation77_spill] sm:$0xff] }
 0x6d8   :  { %v2867_v21 = vmul.f32 -1.442695, %v2119_v8  ;;  %v2076_v22 = vpop.f32.mrb[59].mxu0  ;;  %v2117_v45 = vpop.f32.mrb[59].mxu1  ;;  %v2869_v30 = vmul.f32 -1.442695, %v2121_v33 }
 0x6d9   :  { %v2868_v23 = vmul.f32 -1.442695, %v2120_v51  ;;  %v6008_v33 = vld [vmem:[#allocation25_spill] sm:$0xff]  ;;  %v6010_v3 = vld [vmem:[#allocation74_spill] sm:$0xff]  ;;  %v6012_v51 = vld [vmem:[#allocation76_spill] sm:$0xff] }
 0x6da   :  { %3207 = vpow2.f32 %v2867_v21  ;;  %v6015_v18 = vld [vmem:[#allocation28_spill] sm:$0xff]  ;;  %v4948_v21 = vld [vmem:[#allocation6 + $0xc] ss:$16 sps:$4 sm:$0xff]   ;;  %v4954_v45 = vld [vmem:[#allocation6 + $0x8] ss:$16 sps:$4 sm:$0xff]  }
 0x6db   :  { %3209 = vpow2.f32 %v2868_v23  ;;  %v4945_v20 = vld [vmem:[#allocation6 + $0x4] ss:$16 sps:$4 sm:$0xff]   ;;  %v4951_v22 = vld [vmem:[#allocation6] ss:$16 sps:$4 sm:$0xff]  }
 0x6dc   :  { %3211 = vtanh.f32 %v2122_v53  ;;  %v6014_v53 = vld [vmem:[#allocation27_spill] sm:$0xff]  ;;  %v4957_v23 = vld [vmem:[#allocation6 + $0x24] ss:$16 sps:$4 sm:$0xff]  }
 0x6dd   :  { %3213 = vpow2.f32 %v2869_v30  ;;  %v4966_v30 = vld [vmem:[#allocation6 + $0x28] ss:$16 sps:$4 sm:$0xff]  }
 0x6e1   :  { %v3206_v28 = vpop.eup %3205 }
 0x6e2   :  { %v2032_v32 = vmul.f32 %v3206_v28, %v3204_v27  ;;  %v4960_v27 = vld [vmem:[#allocation6 + $0x2c] ss:$16 sps:$4 sm:$0xff]   ;;  %v4963_v28 = vld [vmem:[#allocation6 + $0x20] ss:$16 sps:$4 sm:$0xff]  }
 0x6e4   :  { %v3208_v36 = vpop.eup %3207  ;;  %v2148_v37 = vpack.c.bf16 %v2032_v32, %v2032_v32  ;;  %v4969_v32 = vld [vmem:[#allocation6 + $0x44] ss:$16 sps:$4 sm:$0xff]  }
 0x6e5   :  { %v2132_v2 = vadd.f32 1.0, %v3208_v36  ;;  %v3210_v38 = vpop.eup %3209  ;;  %v4972_v36 = vld [vmem:[#allocation6 + $0x4c] ss:$16 sps:$4 sm:$0xff]  }
 0x6e6   :  { %v2133_v39 = vadd.f32 1.0, %v3210_v38  ;;  %2181 = vmatprep.mubr.bf16.mxu0 %v2148_v37  ;;  %2222 = vmatprep.mubr.bf16.mxu1 %v2148_v37  ;;  %v3212_v40 = vpop.eup %3211  ;;  %v4978_v37 = vld [vmem:[#allocation6 + $0x48] ss:$16 sps:$4 sm:$0xff]   ;;  %v4981_v38 = vld [vmem:[#allocation6 + $0x64] ss:$16 sps:$4 sm:$0xff]  }
 0x6e7   :  { %3215 = vrcp.f32 %v2132_v2  ;;  %v3214_v41 = vpop.eup %3213  ;;  %v4975_v2 = vld [vmem:[#allocation6 + $0x40] ss:$16 sps:$4 sm:$0xff]   ;;  %6017 = vst [vmem:[#allocation30_spill] sm:$0xff] %v4978_v37  ;;  %6018 = vst [vmem:[#allocation31_spill] sm:$0xff] %v4981_v38 }
 0x6e8   :  { %3217 = vrcp.f32 %v2133_v39  ;;  %v2134_v5 = vadd.f32 1.0, %v3214_v41  ;;  %6016 = vst [vmem:[#allocation29_spill] sm:$0xff] %v4975_v2  ;;  %v4984_v39 = vld [vmem:[#allocation6 + $0x6c] ss:$16 sps:$4 sm:$0xff]   ;;  %v4990_v41 = vld [vmem:[#allocation6 + $0x68] ss:$16 sps:$4 sm:$0xff]  }
 0x6e9   :  { %6019 = vst [vmem:[#allocation32_spill] sm:$0xff] %v4984_v39  ;;  %6021 = vst [vmem:[#allocation34_spill] sm:$0xff] %v4990_v41 }
 0x6ea   :  { %3219 = vrcp.f32 %v2134_v5  ;;  %v5002_v5 = vld [vmem:[#allocation6 + $0x88] ss:$16 sps:$4 sm:$0xff]  }
 0x6eb   :  { %6025 = vst [vmem:[#allocation38_spill] sm:$0xff] %v5002_v5 }
 0x6f1   :  { %v3216_v60 = vpop.eup %3215 }
 0x6f2   :  { %v2143_v54 = vmul.f32 %v3216_v60, %v3212_v40  ;;  %v3218_v55 = vpop.eup %3217  ;;  %v4987_v40 = vld [vmem:[#allocation6 + $0x60] ss:$16 sps:$4 sm:$0xff]   ;;  %v4993_v60 = vld [vmem:[#allocation6 + $0x84] ss:$16 sps:$4 sm:$0xff]  }
 0x6f3   :  { %v2142_v26 = vmul.f32 %v3218_v55, %v4730_v42  ;;  %v6006_v42 = vld [vmem:[#allocation23_spill] sm:$0xff]  ;;  %6020 = vst [vmem:[#allocation33_spill] sm:$0xff] %v4987_v40  ;;  %6022 = vst [vmem:[#allocation35_spill] sm:$0xff] %v4993_v60  ;;  %v4999_v55 = vld [vmem:[#allocation6 + $0x80] ss:$16 sps:$4 sm:$0xff]  }
 0x6f4   :  { %v3220_v56 = vpop.eup %3219  ;;  %6024 = vst [vmem:[#allocation37_spill] sm:$0xff] %v4999_v55 }
 0x6f5   :  { %v4910_v7 = vadd.f32 %v2143_v54, %v2142_v26  ;;  %v4996_v54 = vld [vmem:[#allocation6 + $0x8c] ss:$16 sps:$4 sm:$0xff]   ;;  %v5005_v26 = vld [vmem:[#allocation6 + $0xa4] ss:$16 sps:$4 sm:$0xff]  }
 0x6f6   :  { %6023 = vst [vmem:[#allocation36_spill] sm:$0xff] %v4996_v54  ;;  %6026 = vst [vmem:[#allocation39_spill] sm:$0xff] %v5005_v26 }
 0x6f7   :  { %3221 = vtanh.f32 %v4910_v7 }
 0x701   :  { %v3222_v15 = vpop.eup %3221 }
 0x702   :  { %v2146_v59 = vmul.f32 %v3222_v15, %v3220_v56  ;;  %v5008_v56 = vld [vmem:[#allocation6 + $0xac] ss:$16 sps:$4 sm:$0xff]   ;;  %v5011_v15 = vld [vmem:[#allocation6 + $0xa0] ss:$16 sps:$4 sm:$0xff]  }
 0x703   :  { %6027 = vst [vmem:[#allocation40_spill] sm:$0xff] %v5008_v56  ;;  %6028 = vst [vmem:[#allocation41_spill] sm:$0xff] %v5011_v15 }
 0x704   :  { %v2147_v8 = vpack.c.bf16 %v2146_v59, %v2146_v59  ;;  %v5014_v59 = vld [vmem:[#allocation6 + $0xa8] ss:$16 sps:$4 sm:$0xff]  }
 0x705   :  { %6029 = vst [vmem:[#allocation65_spill] sm:$0xff] %v5014_v59 }
 0x706   :  { %2182 = vmatmul.mubr.bf16.vlgmr.msra.gmra.mrb[60].mxu0 %v2147_v8  ;;  %2223 = vmatmul.mubr.bf16.vlgmr.msra.gmra.mrb[60].mxu1 %v2147_v8 }
 0x707   :  { %2260 = vmatpush1.bf16.msra.mxu0 %v4737_v29  ;;  %2301 = vmatpush1.bf16.msra.mxu1 %v4740_v24 }
 0x708   :  { %2261 = vmatprep.subr.bf16.mxu0 %v4743_v10  ;;  %2302 = vmatprep.subr.bf16.mxu1 %v4746_v48 }
 0x709   :  { %2291 = vmatprep.mubr.bf16.mxu0 %v5714_v52  ;;  %2332 = vmatprep.mubr.bf16.mxu1 %v5714_v52 }
 0x70b   :  { %2262 = vmatpush1.bf16.msra.mxu0 %v4751_v16  ;;  %2303 = vmatpush1.bf16.msra.mxu1 %v4754_v17 }
 0x70c   :  { %2263 = vmatprep.subr.bf16.mxu0 %v4757_v25  ;;  %2304 = vmatprep.subr.bf16.mxu1 %v4760_v47 }
 0x70f   :  { %2264 = vmatpush1.bf16.msra.mxu0 %v4763_v44  ;;  %2305 = vmatpush1.bf16.msra.mxu1 %v4766_v14 }
 0x710   :  { %2265 = vmatprep.subr.bf16.mxu0 %v4769_v58  ;;  %2306 = vmatprep.subr.bf16.mxu1 %v4772_v9 }
 0x713   :  { %2266 = vmatpush1.bf16.msra.mxu0 %v4775_v31  ;;  %2307 = vmatpush1.bf16.msra.mxu1 %v4778_v34 }
 0x714   :  { %2267 = vmatprep.subr.bf16.mxu0 %v6006_v42  ;;  %2308 = vmatprep.subr.bf16.mxu1 %v6007_v63 }
 0x717   :  { %2268 = vmatpush1.bf16.msra.mxu0 %v6008_v33  ;;  %2309 = vmatpush1.bf16.msra.mxu1 %v6009_v62 }
 0x718   :  { %2269 = vmatprep.subr.bf16.mxu0 %v6010_v3  ;;  %2310 = vmatprep.subr.bf16.mxu1 %v6011_v4 }
 0x71b   :  { %2270 = vmatpush1.bf16.msra.mxu0 %v6012_v51  ;;  %2311 = vmatpush1.bf16.msra.mxu1 %v6013_v11 }
 0x71c   :  { %2271 = vmatprep.subr.bf16.mxu0 %v6014_v53  ;;  %2312 = vmatprep.subr.bf16.mxu1 %v6015_v18 }
 0x71f   :  { %2272 = vmatpush1.bf16.msra.mxu0 %v4811_v43  ;;  %2313 = vmatpush1.bf16.msra.mxu1 %v4814_v49 }
 0x720   :  { %2273 = vmatprep.subr.bf16.mxu0 %v4817_v50  ;;  %2314 = vmatprep.subr.bf16.mxu1 %v4820_v12 }
 0x723   :  { %2274 = vmatpush1.bf16.msra.mxu0 %v4823_v13  ;;  %2315 = vmatpush1.bf16.msra.mxu1 %v4826_v1 }
 0x724   :  { %2371 = vmatprep.subr.bf16.mxu0 %v4945_v20  ;;  %2412 = vmatprep.subr.bf16.mxu1 %v4948_v21 }
 0x726   :  { %2292 = vmatmul.mubr.bf16.vlgmr.msra.gmra.mrb[64].mxu0 %v2147_v8  ;;  %2333 = vmatmul.mubr.bf16.vlgmr.msra.gmra.mrb[64].mxu1 %v2147_v8  ;;  %v5017_v8 = vld [vmem:[#allocation6 + $0xc4] ss:$16 sps:$4 sm:$0xff]  }
 0x727   :  { %2372 = vmatpush1.bf16.msra.mxu0 %v4951_v22  ;;  %2413 = vmatpush1.bf16.msra.mxu1 %v4954_v45  ;;  %6030 = vst [vmem:[#allocation66_spill] sm:$0xff] %v5017_v8 }
 0x728   :  { %2373 = vmatprep.subr.bf16.mxu0 %v4957_v23  ;;  %2414 = vmatprep.subr.bf16.mxu1 %v4960_v27 }
 0x72b   :  { %2374 = vmatpush1.bf16.msra.mxu0 %v4963_v28  ;;  %2415 = vmatpush1.bf16.msra.mxu1 %v4966_v30 }
 0x72c   :  { %2375 = vmatprep.subr.bf16.mxu0 %v4969_v32  ;;  %2416 = vmatprep.subr.bf16.mxu1 %v4972_v36 }
 0x72f   :  { %2376 = vmatpush1.bf16.msra.mxu0 %v4975_v2  ;;  %2417 = vmatpush1.bf16.msra.mxu1 %v4978_v37 }
 0x730   :  { %2377 = vmatprep.subr.bf16.mxu0 %v4981_v38  ;;  %2418 = vmatprep.subr.bf16.mxu1 %v4984_v39 }
 0x733   :  { %2378 = vmatpush1.bf16.msra.mxu0 %v4987_v40  ;;  %2419 = vmatpush1.bf16.msra.mxu1 %v4990_v41 }
 0x734   :  { %2379 = vmatprep.subr.bf16.mxu0 %v4993_v60  ;;  %2420 = vmatprep.subr.bf16.mxu1 %v4996_v54 }
 0x737   :  { %2380 = vmatpush1.bf16.msra.mxu0 %v4999_v55  ;;  %2421 = vmatpush1.bf16.msra.mxu1 %v5002_v5  ;;  %v5020_v5 = vld [vmem:[#allocation6 + $0xcc] ss:$16 sps:$4 sm:$0xff]  }
 0x738   :  { %2381 = vmatprep.subr.bf16.mxu0 %v5005_v26  ;;  %2422 = vmatprep.subr.bf16.mxu1 %v5008_v56  ;;  %6031 = vst [vmem:[#allocation67_spill] sm:$0xff] %v5020_v5  ;;  %v5023_v26 = vld [vmem:[#allocation6 + $0xc0] ss:$16 sps:$4 sm:$0xff]   ;;  %v5026_v56 = vld [vmem:[#allocation6 + $0xc8] ss:$16 sps:$4 sm:$0xff]  }
 0x739   :  { %6032 = vst [vmem:[#allocation68_spill] sm:$0xff] %v5023_v26  ;;  %6033 = vst [vmem:[#allocation69_spill] sm:$0xff] %v5026_v56 }
 0x73b   :  { %2382 = vmatpush1.bf16.msra.mxu0 %v5011_v15  ;;  %2423 = vmatpush1.bf16.msra.mxu1 %v5014_v59  ;;  %v5029_v15 = vld [vmem:[#allocation6 + $0xe4] ss:$16 sps:$4 sm:$0xff]   ;;  %v5032_v59 = vld [vmem:[#allocation6 + $0xec] ss:$16 sps:$4 sm:$0xff]  }
 0x73c   :  { %2383 = vmatprep.subr.bf16.mxu0 %v5017_v8  ;;  %2424 = vmatprep.subr.bf16.mxu1 %v5020_v5  ;;  %6034 = vst [vmem:[#allocation42_spill] sm:$0xff] %v5029_v15  ;;  %6035 = vst [vmem:[#allocation43_spill] sm:$0xff] %v5032_v59  ;;  %v5035_v8 = vld [vmem:[#allocation6 + $0xe0] ss:$16 sps:$4 sm:$0xff]   ;;  %v5038_v5 = vld [vmem:[#allocation6 + $0xe8] ss:$16 sps:$4 sm:$0xff]  }
 0x73d   :  { %6036 = vst [vmem:[#allocation44_spill] sm:$0xff] %v5035_v8  ;;  %6037 = vst [vmem:[#allocation45_spill] sm:$0xff] %v5038_v5 }
 0x73f   :  { %2384 = vmatpush1.bf16.msra.mxu0 %v5023_v26  ;;  %2425 = vmatpush1.bf16.msra.mxu1 %v5026_v56  ;;  %v5041_v26 = vld [vmem:[#allocation6 + $0x104] ss:$16 sps:$4 sm:$0xff]   ;;  %v5044_v56 = vld [vmem:[#allocation6 + $0x10c] ss:$16 sps:$4 sm:$0xff]  }
 0x740   :  { %2385 = vmatprep.subr.bf16.mxu0 %v5029_v15  ;;  %2426 = vmatprep.subr.bf16.mxu1 %v5032_v59  ;;  %6038 = vst [vmem:[#allocation46_spill] sm:$0xff] %v5041_v26  ;;  %6039 = vst [vmem:[#allocation47_spill] sm:$0xff] %v5044_v56  ;;  %v5047_v15 = vld [vmem:[#allocation6 + $0x100] ss:$16 sps:$4 sm:$0xff]   ;;  %v5050_v59 = vld [vmem:[#allocation6 + $0x108] ss:$16 sps:$4 sm:$0xff]  }
 0x741   :  { %6040 = vst [vmem:[#allocation48_spill] sm:$0xff] %v5047_v15  ;;  %6041 = vst [vmem:[#allocation49_spill] sm:$0xff] %v5050_v59 }
 0x743   :  { %2386 = vmatpush1.bf16.msra.mxu0 %v5035_v8  ;;  %2427 = vmatpush1.bf16.msra.mxu1 %v5038_v5  ;;  %v5053_v8 = vld [vmem:[#allocation6 + $0x124] ss:$16 sps:$4 sm:$0xff]   ;;  %v5056_v5 = vld [vmem:[#allocation6 + $0x12c] ss:$16 sps:$4 sm:$0xff]  }
 0x744   :  { %2387 = vmatprep.subr.bf16.mxu0 %v5041_v26  ;;  %2428 = vmatprep.subr.bf16.mxu1 %v5044_v56  ;;  %6042 = vst [vmem:[#allocation50_spill] sm:$0xff] %v5053_v8  ;;  %6043 = vst [vmem:[#allocation51_spill] sm:$0xff] %v5056_v5  ;;  %v5059_v26 = vld [vmem:[#allocation6 + $0x120] ss:$16 sps:$4 sm:$0xff]   ;;  %v5062_v56 = vld [vmem:[#allocation6 + $0x128] ss:$16 sps:$4 sm:$0xff]  }
 0x745   :  { %6044 = vst [vmem:[#allocation78_spill] sm:$0xff] %v5059_v26  ;;  %6045 = vst [vmem:[#allocation79_spill] sm:$0xff] %v5062_v56 }
 0x747   :  { %2388 = vmatpush1.bf16.msra.mxu0 %v5047_v15  ;;  %2429 = vmatpush1.bf16.msra.mxu1 %v5050_v59  ;;  %v5065_v15 = vld [vmem:[#allocation6 + $0x144] ss:$16 sps:$4 sm:$0xff]   ;;  %v5068_v59 = vld [vmem:[#allocation6 + $0x14c] ss:$16 sps:$4 sm:$0xff]  }
 0x748   :  { %2389 = vmatprep.subr.bf16.mxu0 %v5053_v8  ;;  %2430 = vmatprep.subr.bf16.mxu1 %v5056_v5  ;;  %6046 = vst [vmem:[#allocation80_spill] sm:$0xff] %v5065_v15  ;;  %6047 = vst [vmem:[#allocation81_spill] sm:$0xff] %v5068_v59  ;;  %v5071_v8 = vld [vmem:[#allocation6 + $0x140] ss:$16 sps:$4 sm:$0xff]   ;;  %v5074_v5 = vld [vmem:[#allocation6 + $0x148] ss:$16 sps:$4 sm:$0xff]  }
 0x749   :  { %6048 = vst [vmem:[#allocation52_spill] sm:$0xff] %v5071_v8  ;;  %6049 = vst [vmem:[#allocation53_spill] sm:$0xff] %v5074_v5 }
 0x74b   :  { %2390 = vmatpush1.bf16.msra.mxu0 %v5059_v26  ;;  %2431 = vmatpush1.bf16.msra.mxu1 %v5062_v56  ;;  %v5077_v26 = vld [vmem:[#allocation6 + $0x164] ss:$16 sps:$4 sm:$0xff]   ;;  %v5080_v56 = vld [vmem:[#allocation6 + $0x16c] ss:$16 sps:$4 sm:$0xff]  }
 0x74c   :  { %2391 = vmatprep.subr.bf16.mxu0 %v5065_v15  ;;  %2432 = vmatprep.subr.bf16.mxu1 %v5068_v59  ;;  %6050 = vst [vmem:[#allocation54_spill] sm:$0xff] %v5077_v26  ;;  %6051 = vst [vmem:[#allocation55_spill] sm:$0xff] %v5080_v56  ;;  %v5083_v15 = vld [vmem:[#allocation6 + $0x160] ss:$16 sps:$4 sm:$0xff]   ;;  %v5086_v59 = vld [vmem:[#allocation6 + $0x168] ss:$16 sps:$4 sm:$0xff]  }
 0x74d   :  { %6052 = vst [vmem:[#allocation56_spill] sm:$0xff] %v5083_v15  ;;  %6053 = vst [vmem:[#allocation57_spill] sm:$0xff] %v5086_v59 }
 0x74f   :  { %2392 = vmatpush1.bf16.msra.mxu0 %v5071_v8  ;;  %2433 = vmatpush1.bf16.msra.mxu1 %v5074_v5  ;;  %v5089_v8 = vld [vmem:[#allocation6 + $0x184] ss:$16 sps:$4 sm:$0xff]   ;;  %v5092_v5 = vld [vmem:[#allocation6 + $0x18c] ss:$16 sps:$4 sm:$0xff]  }
 0x750   :  { %2393 = vmatprep.subr.bf16.mxu0 %v5077_v26  ;;  %2434 = vmatprep.subr.bf16.mxu1 %v5080_v56  ;;  %6054 = vst [vmem:[#allocation58_spill] sm:$0xff] %v5089_v8  ;;  %6055 = vst [vmem:[#allocation59_spill] sm:$0xff] %v5092_v5  ;;  %v5095_v26 = vld [vmem:[#allocation6 + $0x180] ss:$16 sps:$4 sm:$0xff]   ;;  %v5098_v56 = vld [vmem:[#allocation6 + $0x188] ss:$16 sps:$4 sm:$0xff]  }
 0x751   :  { %6056 = vst [vmem:[#allocation60_spill] sm:$0xff] %v5095_v26  ;;  %6057 = vst [vmem:[#allocation61_spill] sm:$0xff] %v5098_v56 }
 0x753   :  { %2394 = vmatpush1.bf16.msra.mxu0 %v5083_v15  ;;  %2435 = vmatpush1.bf16.msra.mxu1 %v5086_v59  ;;  %v5101_v15 = vld [vmem:[#allocation6 + $0x1a4] ss:$16 sps:$4 sm:$0xff]   ;;  %v5104_v59 = vld [vmem:[#allocation6 + $0x1ac] ss:$16 sps:$4 sm:$0xff]  }
 0x754   :  { %2395 = vmatprep.subr.bf16.mxu0 %v5089_v8  ;;  %2436 = vmatprep.subr.bf16.mxu1 %v5092_v5  ;;  %6058 = vst [vmem:[#allocation62_spill] sm:$0xff] %v5101_v15  ;;  %6059 = vst [vmem:[#allocation63_spill] sm:$0xff] %v5104_v59  ;;  %v5107_v8 = vld [vmem:[#allocation6 + $0x1a0] ss:$16 sps:$4 sm:$0xff]   ;;  %v5110_v5 = vld [vmem:[#allocation6 + $0x1a8] ss:$16 sps:$4 sm:$0xff]  }
 0x755   :  { %6060 = vst [vmem:[#allocation64_spill] sm:$0xff] %v5107_v8  ;;  %6061 = vst [vmem:[#allocation10_spill] sm:$0xff] %v5110_v5 }
 0x757   :  { %2396 = vmatpush1.bf16.msra.mxu0 %v5095_v26  ;;  %2437 = vmatpush1.bf16.msra.mxu1 %v5098_v56  ;;  %v5113_v26 = vld [vmem:[#allocation6 + $0x1c4] ss:$16 sps:$4 sm:$0xff]   ;;  %v5116_v56 = vld [vmem:[#allocation6 + $0x1cc] ss:$16 sps:$4 sm:$0xff]  }
 0x758   :  { %2397 = vmatprep.subr.bf16.mxu0 %v5101_v15  ;;  %2438 = vmatprep.subr.bf16.mxu1 %v5104_v59  ;;  %6062 = vst [vmem:[#allocation11_spill] sm:$0xff] %v5113_v26  ;;  %6063 = vst [vmem:[#allocation70_spill] sm:$0xff] %v5116_v56  ;;  %v5119_v15 = vld [vmem:[#allocation6 + $0x1c0] ss:$16 sps:$4 sm:$0xff]   ;;  %v5122_v59 = vld [vmem:[#allocation6 + $0x1c8] ss:$16 sps:$4 sm:$0xff]  }
 0x759   :  { %6064 = vst [vmem:[#allocation71_spill] sm:$0xff] %v5119_v15  ;;  %6065 = vst [vmem:[#allocation72_spill] sm:$0xff] %v5122_v59 }
 0x75b   :  { %2398 = vmatpush1.bf16.msra.mxu0 %v5107_v8  ;;  %2439 = vmatpush1.bf16.msra.mxu1 %v5110_v5  ;;  %v5125_v8 = vld [vmem:[#allocation6 + $0x1e4] ss:$16 sps:$4 sm:$0xff]   ;;  %v5128_v5 = vld [vmem:[#allocation6 + $0x1ec] ss:$16 sps:$4 sm:$0xff]  }
 0x75c   :  { %2399 = vmatprep.subr.bf16.mxu0 %v5113_v26  ;;  %2440 = vmatprep.subr.bf16.mxu1 %v5116_v56  ;;  %6066 = vst [vmem:[#allocation73_spill] sm:$0xff] %v5125_v8  ;;  %6067 = vst [vmem:[#allocation16_spill] sm:$0xff] %v5128_v5  ;;  %v5131_v26 = vld [vmem:[#allocation6 + $0x1e0] ss:$16 sps:$4 sm:$0xff]   ;;  %v5134_v56 = vld [vmem:[#allocation6 + $0x1e8] ss:$16 sps:$4 sm:$0xff]  }
 0x75d   :  { %6068 = vst [vmem:[#allocation17_spill] sm:$0xff] %v5131_v26  ;;  %6069 = vst [vmem:[#allocation18_spill] sm:$0xff] %v5134_v56 }
 0x75f   :  { %2400 = vmatpush1.bf16.msra.mxu0 %v5119_v15  ;;  %2441 = vmatpush1.bf16.msra.mxu1 %v5122_v59 }
 0x760   :  { %2401 = vmatprep.subr.bf16.mxu0 %v5125_v8  ;;  %2442 = vmatprep.subr.bf16.mxu1 %v5128_v5 }
 0x763   :  { %2402 = vmatpush1.bf16.msra.mxu0 %v5131_v26  ;;  %2443 = vmatpush1.bf16.msra.mxu1 %v5134_v56 }
 0x764   :  { %2481 = vmatprep.subr.bf16.mxu0 %v5996_v61  ;;  %2522 = vmatprep.subr.bf16.mxu1 %v5997_v6 }
 0x7d9   :  { %v2183_v59 = vpop.f32.mrb[60].mxu0  ;;  %v2224_v15 = vpop.f32.mrb[60].mxu1 }
 0x7da   :  { %v2184_v8 = vadd.f32 %v2183_v59, %v5998_v57  ;;  %v2185_v55 = vpop.f32.mrb[61].mxu0  ;;  %v2226_v54 = vpop.f32.mrb[61].mxu1  ;;  %v2225_v61 = vadd.f32 %v2224_v15, %v6000_v46  ;;  %v6073_v46 = vld [vmem:[#allocation89_spill] sm:$0xff] }
 0x7db   :  { %v2186_v5 = vadd.f32 %v2185_v55, %v5999_v19  ;;  %v2187_v60 = vpop.f32.mrb[62].mxu0  ;;  %v2228_v41 = vpop.f32.mrb[62].mxu1  ;;  %v2227_v6 = vadd.f32 %v2226_v54, %v6001_v35 }
 0x7dc   :  { %v2870_v40 = vmul.f32 -1.442695, %v2184_v8  ;;  %v2188_v26 = vpop.f32.mrb[63].mxu0  ;;  %v2229_v39 = vpop.f32.mrb[63].mxu1  ;;  %v2872_v56 = vmul.f32 -1.442695, %v2225_v61 }
 0x7dd   :  { %v2871_v38 = vmul.f32 -1.442695, %v2186_v5  ;;  %v6070_v61 = vld [vmem:[#allocation86_spill] sm:$0xff] }
 0x7de   :  { %3223 = vpow2.f32 %v2870_v40 }
 0x7df   :  { %3225 = vpow2.f32 %v2871_v38 }
 0x7e0   :  { %3227 = vtanh.f32 %v2227_v6  ;;  %v6071_v6 = vld [vmem:[#allocation87_spill] sm:$0xff] }
 0x7e1   :  { %3229 = vpow2.f32 %v2872_v56 }
 0x7e8   :  { %v3224_v37 = vpop.eup %3223 }
 0x7e9   :  { %v2240_v2 = vadd.f32 1.0, %v3224_v37  ;;  %v3226_v59 = vpop.eup %3225 }
 0x7ea   :  { %v2241_v55 = vadd.f32 1.0, %v3226_v59  ;;  %v3228_v41 = vpop.eup %3227  ;;  %v6072_v59 = vld [vmem:[#allocation88_spill] sm:$0xff] }
 0x7eb   :  { %3231 = vrcp.f32 %v2240_v2  ;;  %v3230_v60 = vpop.eup %3229 }
 0x7ec   :  { %3233 = vrcp.f32 %v2241_v55  ;;  %v2242_v40 = vadd.f32 1.0, %v3230_v60 }
 0x7ee   :  { %3235 = vrcp.f32 %v2242_v40 }
 0x7f5   :  { %v3232_v26 = vpop.eup %3231 }
 0x7f6   :  { %v2251_v39 = vmul.f32 %v3232_v26, %v3228_v41  ;;  %v3234_v5 = vpop.eup %3233 }
 0x7f7   :  { %v2250_v38 = vmul.f32 %v3234_v5, %v4902_v0 }
 0x7f8   :  { %v3236_v5 = vpop.eup %3235 }
 0x7f9   :  { %v2293_v15 = vpop.f32.mrb[64].mxu0  ;;  %v2334_v8 = vpop.f32.mrb[64].mxu1  ;;  %v5144_v54 = vadd.f32 %v2251_v39, %v2250_v38 }
 0x7fa   :  { %v2341_v37 = vadd.f32 %v2293_v15, %v6070_v61  ;;  %v2343_v35 = vadd.f32 %v2334_v8, %v6071_v6  ;;  %v2295_v56 = vpop.f32.mrb[65].mxu0  ;;  %v2336_v2 = vpop.f32.mrb[65].mxu1 }
 0x7fb   :  { %v2342_v55 = vadd.f32 %v2295_v56, %v6072_v59  ;;  %v2344_v19 = vadd.f32 %v2336_v2, %v6073_v46  ;;  %v2297_v41 = vpop.f32.mrb[66].mxu0  ;;  %v2338_v26 = vpop.f32.mrb[66].mxu1  ;;  %3237 = vtanh.f32 %v5144_v54 }
 0x7fc   :  { %v2873_v60 = vmul.f32 -1.442695, %v2341_v37  ;;  %v2298_v57 = vpop.f32.mrb[67].mxu0  ;;  %v2339_v0 = vpop.f32.mrb[67].mxu1  ;;  %v2875_v15 = vmul.f32 -1.442695, %v2343_v35 }
 0x7fd   :  { %v2874_v39 = vmul.f32 -1.442695, %v2342_v55 }
 0x7fe   :  { %3239 = vpow2.f32 %v2873_v60 }
 0x7ff   :  { %3241 = vpow2.f32 %v2874_v39 }
 0x800   :  { %3243 = vtanh.f32 %v2344_v19 }
 0x801   :  { %3245 = vpow2.f32 %v2875_v15  ;;  %v6118_v15 = vld [vmem:[#allocation64_spill] sm:$0xff] }
 0x805   :  { %v3238_v38 = vpop.eup %3237 }
 0x806   :  { %v2254_v8 = vmul.f32 %v3238_v38, %v3236_v5  ;;  %v6116_v5 = vld [vmem:[#allocation62_spill] sm:$0xff]  ;;  %v6117_v38 = vld [vmem:[#allocation63_spill] sm:$0xff] }
 0x808   :  { %v3240_v61 = vpop.eup %3239  ;;  %v2370_v6 = vpack.c.bf16 %v2254_v8, %v2254_v8  ;;  %v6119_v8 = vld [vmem:[#allocation10_spill] sm:$0xff] }
 0x809   :  { %v2354_v40 = vadd.f32 1.0, %v3240_v61  ;;  %v3242_v56 = vpop.eup %3241  ;;  %v6120_v61 = vld [vmem:[#allocation11_spill] sm:$0xff] }
 0x80a   :  { %v2355_v46 = vadd.f32 1.0, %v3242_v56  ;;  %2403 = vmatprep.mubr.bf16.mxu0 %v2370_v6  ;;  %2444 = vmatprep.mubr.bf16.mxu1 %v2370_v6  ;;  %v3244_v57 = vpop.eup %3243  ;;  %v6122_v6 = vld [vmem:[#allocation71_spill] sm:$0xff]  ;;  %v6123_v56 = vld [vmem:[#allocation72_spill] sm:$0xff] }
 0x80b   :  { %3247 = vrcp.f32 %v2354_v40  ;;  %v3246_v37 = vpop.eup %3245  ;;  %v6121_v40 = vld [vmem:[#allocation70_spill] sm:$0xff] }
 0x80c   :  { %3249 = vrcp.f32 %v2355_v46  ;;  %v2356_v41 = vadd.f32 1.0, %v3246_v37  ;;  %v6124_v46 = vld [vmem:[#allocation73_spill] sm:$0xff] }
 0x80d   :  { %v6126_v37 = vld [vmem:[#allocation17_spill] sm:$0xff] }
 0x80e   :  { %3251 = vrcp.f32 %v2356_v41  ;;  %v6128_v41 = vld [vmem:[#allocation12_spill] sm:$0xff] }
 0x815   :  { %v3248_v2 = vpop.eup %3247 }
 0x816   :  { %v2365_v59 = vmul.f32 %v3248_v2, %v3244_v57  ;;  %v3250_v55 = vpop.eup %3249  ;;  %v6125_v57 = vld [vmem:[#allocation16_spill] sm:$0xff]  ;;  %v6127_v2 = vld [vmem:[#allocation18_spill] sm:$0xff] }
 0x817   :  { %v2364_v35 = vmul.f32 %v3250_v55, %v4910_v7  ;;  %v6095_v7 = vld [vmem:[#allocation45_spill] sm:$0xff] }
 0x818   :  { %v3252_v19 = vpop.eup %3251 }
 0x819   :  { %v5152_v26 = vadd.f32 %v2365_v59, %v2364_v35 }
 0x81b   :  { %3253 = vtanh.f32 %v5152_v26 }
 0x825   :  { %v3254_v60 = vpop.eup %3253 }
 0x826   :  { %v2368_v0 = vmul.f32 %v3254_v60, %v3252_v19 }
 0x828   :  { %v2369_v39 = vpack.c.bf16 %v2368_v0, %v2368_v0  ;;  %v6129_v0 = vld [vmem:[#allocation13_spill] sm:$0xff] }
 0x82a   :  { %2404 = vmatmul.mubr.bf16.vlgmr.msra.gmra.mrb[68].mxu0 %v2369_v39  ;;  %2445 = vmatmul.mubr.bf16.vlgmr.msra.gmra.mrb[68].mxu1 %v2369_v39 }
 0x82b   :  { %2482 = vmatpush1.bf16.msra.mxu0 %v4737_v29  ;;  %2523 = vmatpush1.bf16.msra.mxu1 %v4740_v24  ;;  %v6075_v29 = vld [vmem:[#allocation30_spill] sm:$0xff]  ;;  %v6076_v24 = vld [vmem:[#allocation31_spill] sm:$0xff] }
 0x82c   :  { %2483 = vmatprep.subr.bf16.mxu0 %v4743_v10  ;;  %2524 = vmatprep.subr.bf16.mxu1 %v4746_v48  ;;  %v6077_v10 = vld [vmem:[#allocation32_spill] sm:$0xff]  ;;  %v6078_v48 = vld [vmem:[#allocation33_spill] sm:$0xff] }
 0x82d   :  { %2513 = vmatprep.mubr.bf16.mxu0 %v5714_v52  ;;  %2554 = vmatprep.mubr.bf16.mxu1 %v5714_v52  ;;  %v6074_v52 = vld [vmem:[#allocation29_spill] sm:$0xff] }
 0x82f   :  { %2484 = vmatpush1.bf16.msra.mxu0 %v4751_v16  ;;  %2525 = vmatpush1.bf16.msra.mxu1 %v4754_v17  ;;  %v6079_v16 = vld [vmem:[#allocation34_spill] sm:$0xff]  ;;  %v6080_v17 = vld [vmem:[#allocation35_spill] sm:$0xff] }
 0x830   :  { %2485 = vmatprep.subr.bf16.mxu0 %v4757_v25  ;;  %2526 = vmatprep.subr.bf16.mxu1 %v4760_v47  ;;  %v6081_v25 = vld [vmem:[#allocation36_spill] sm:$0xff]  ;;  %v6082_v47 = vld [vmem:[#allocation37_spill] sm:$0xff] }
 0x833   :  { %2486 = vmatpush1.bf16.msra.mxu0 %v4763_v44  ;;  %2527 = vmatpush1.bf16.msra.mxu1 %v4766_v14  ;;  %v6083_v44 = vld [vmem:[#allocation38_spill] sm:$0xff]  ;;  %v6084_v14 = vld [vmem:[#allocation39_spill] sm:$0xff] }
 0x834   :  { %2487 = vmatprep.subr.bf16.mxu0 %v4769_v58  ;;  %2528 = vmatprep.subr.bf16.mxu1 %v4772_v9  ;;  %v6085_v58 = vld [vmem:[#allocation40_spill] sm:$0xff]  ;;  %v6086_v9 = vld [vmem:[#allocation41_spill] sm:$0xff] }
 0x837   :  { %2488 = vmatpush1.bf16.msra.mxu0 %v4775_v31  ;;  %2529 = vmatpush1.bf16.msra.mxu1 %v4778_v34  ;;  %v6087_v31 = vld [vmem:[#allocation65_spill] sm:$0xff]  ;;  %v6088_v34 = vld [vmem:[#allocation66_spill] sm:$0xff] }
 0x838   :  { %2489 = vmatprep.subr.bf16.mxu0 %v6006_v42  ;;  %2530 = vmatprep.subr.bf16.mxu1 %v6007_v63  ;;  %v6096_v42 = vld [vmem:[#allocation46_spill] sm:$0xff]  ;;  %v6097_v63 = vld [vmem:[#allocation47_spill] sm:$0xff] }
 0x83b   :  { %2490 = vmatpush1.bf16.msra.mxu0 %v6008_v33  ;;  %2531 = vmatpush1.bf16.msra.mxu1 %v6009_v62  ;;  %v6098_v33 = vld [vmem:[#allocation48_spill] sm:$0xff]  ;;  %v6099_v62 = vld [vmem:[#allocation49_spill] sm:$0xff] }
 0x83c   :  { %2491 = vmatprep.subr.bf16.mxu0 %v6010_v3  ;;  %2532 = vmatprep.subr.bf16.mxu1 %v6011_v4  ;;  %v6100_v3 = vld [vmem:[#allocation50_spill] sm:$0xff]  ;;  %v6101_v4 = vld [vmem:[#allocation51_spill] sm:$0xff] }
 0x83f   :  { %2492 = vmatpush1.bf16.msra.mxu0 %v6012_v51  ;;  %2533 = vmatpush1.bf16.msra.mxu1 %v6013_v11  ;;  %v6102_v51 = vld [vmem:[#allocation78_spill] sm:$0xff]  ;;  %v6103_v11 = vld [vmem:[#allocation79_spill] sm:$0xff] }
 0x840   :  { %2493 = vmatprep.subr.bf16.mxu0 %v6014_v53  ;;  %2534 = vmatprep.subr.bf16.mxu1 %v6015_v18  ;;  %v6104_v53 = vld [vmem:[#allocation80_spill] sm:$0xff]  ;;  %v6105_v18 = vld [vmem:[#allocation81_spill] sm:$0xff] }
 0x843   :  { %2494 = vmatpush1.bf16.msra.mxu0 %v4811_v43  ;;  %2535 = vmatpush1.bf16.msra.mxu1 %v4814_v49  ;;  %v6093_v43 = vld [vmem:[#allocation43_spill] sm:$0xff]  ;;  %v6094_v49 = vld [vmem:[#allocation44_spill] sm:$0xff] }
 0x844   :  { %2495 = vmatprep.subr.bf16.mxu0 %v4817_v50  ;;  %2536 = vmatprep.subr.bf16.mxu1 %v4820_v12  ;;  %v6089_v50 = vld [vmem:[#allocation67_spill] sm:$0xff]  ;;  %v6090_v12 = vld [vmem:[#allocation68_spill] sm:$0xff] }
 0x847   :  { %2496 = vmatpush1.bf16.msra.mxu0 %v4823_v13  ;;  %2537 = vmatpush1.bf16.msra.mxu1 %v4826_v1  ;;  %v6091_v13 = vld [vmem:[#allocation69_spill] sm:$0xff]  ;;  %v6092_v1 = vld [vmem:[#allocation42_spill] sm:$0xff] }
 0x848   :  { %2593 = vmatprep.subr.bf16.mxu0 %v4945_v20  ;;  %2634 = vmatprep.subr.bf16.mxu1 %v4948_v21  ;;  %v6106_v20 = vld [vmem:[#allocation52_spill] sm:$0xff]  ;;  %v6107_v21 = vld [vmem:[#allocation53_spill] sm:$0xff] }
 0x84a   :  { %2514 = vmatmul.mubr.bf16.vlgmr.msra.gmra.mrb[72].mxu0 %v2369_v39  ;;  %2555 = vmatmul.mubr.bf16.vlgmr.msra.gmra.mrb[72].mxu1 %v2369_v39 }
 0x84b   :  { %2594 = vmatpush1.bf16.msra.mxu0 %v4951_v22  ;;  %2635 = vmatpush1.bf16.msra.mxu1 %v4954_v45  ;;  %v6108_v22 = vld [vmem:[#allocation54_spill] sm:$0xff]  ;;  %v6109_v45 = vld [vmem:[#allocation55_spill] sm:$0xff] }
 0x84c   :  { %2595 = vmatprep.subr.bf16.mxu0 %v4957_v23  ;;  %2636 = vmatprep.subr.bf16.mxu1 %v4960_v27  ;;  %v6110_v23 = vld [vmem:[#allocation56_spill] sm:$0xff]  ;;  %v6111_v27 = vld [vmem:[#allocation57_spill] sm:$0xff] }
 0x84f   :  { %2596 = vmatpush1.bf16.msra.mxu0 %v4963_v28  ;;  %2637 = vmatpush1.bf16.msra.mxu1 %v4966_v30  ;;  %v6112_v28 = vld [vmem:[#allocation58_spill] sm:$0xff]  ;;  %v6113_v30 = vld [vmem:[#allocation59_spill] sm:$0xff] }
 0x850   :  { %2597 = vmatprep.subr.bf16.mxu0 %v4969_v32  ;;  %2638 = vmatprep.subr.bf16.mxu1 %v4972_v36  ;;  %v6114_v32 = vld [vmem:[#allocation60_spill] sm:$0xff]  ;;  %v6115_v36 = vld [vmem:[#allocation61_spill] sm:$0xff] }
 0x853   :  { %2598 = vmatpush1.bf16.msra.mxu0 %v6074_v52  ;;  %2639 = vmatpush1.bf16.msra.mxu1 %v6075_v29 }
 0x854   :  { %2599 = vmatprep.subr.bf16.mxu0 %v6076_v24  ;;  %2640 = vmatprep.subr.bf16.mxu1 %v6077_v10 }
 0x857   :  { %2600 = vmatpush1.bf16.msra.mxu0 %v6078_v48  ;;  %2641 = vmatpush1.bf16.msra.mxu1 %v6079_v16 }
 0x858   :  { %2601 = vmatprep.subr.bf16.mxu0 %v6080_v17  ;;  %2642 = vmatprep.subr.bf16.mxu1 %v6081_v25  ;;  %v6130_v17 = vld [vmem:[#allocation14_spill] sm:$0xff] }
 0x85b   :  { %2602 = vmatpush1.bf16.msra.mxu0 %v6082_v47  ;;  %2643 = vmatpush1.bf16.msra.mxu1 %v6083_v44  ;;  %v6131_v47 = vld [vmem:[#allocation15_spill] sm:$0xff] }
 0x85c   :  { %2603 = vmatprep.subr.bf16.mxu0 %v6084_v14  ;;  %2644 = vmatprep.subr.bf16.mxu1 %v6085_v58 }
 0x85f   :  { %2604 = vmatpush1.bf16.msra.mxu0 %v6086_v9  ;;  %2645 = vmatpush1.bf16.msra.mxu1 %v6087_v31 }
 0x860   :  { %2605 = vmatprep.subr.bf16.mxu0 %v6088_v34  ;;  %2646 = vmatprep.subr.bf16.mxu1 %v6089_v50 }
 0x863   :  { %2606 = vmatpush1.bf16.msra.mxu0 %v6090_v12  ;;  %2647 = vmatpush1.bf16.msra.mxu1 %v6091_v13 }
 0x864   :  { %2607 = vmatprep.subr.bf16.mxu0 %v6092_v1  ;;  %2648 = vmatprep.subr.bf16.mxu1 %v6093_v43 }
 0x867   :  { %2608 = vmatpush1.bf16.msra.mxu0 %v6094_v49  ;;  %2649 = vmatpush1.bf16.msra.mxu1 %v6095_v7 }
 0x868   :  { %2609 = vmatprep.subr.bf16.mxu0 %v6096_v42  ;;  %2650 = vmatprep.subr.bf16.mxu1 %v6097_v63 }
 0x86b   :  { %2610 = vmatpush1.bf16.msra.mxu0 %v6098_v33  ;;  %2651 = vmatpush1.bf16.msra.mxu1 %v6099_v62  ;;  %v6132_v62 = vld [vmem:[#allocation90_spill] sm:$0xff] }
 0x86c   :  { %2611 = vmatprep.subr.bf16.mxu0 %v6100_v3  ;;  %2652 = vmatprep.subr.bf16.mxu1 %v6101_v4  ;;  %v6133_v4 = vld [vmem:[#allocation91_spill] sm:$0xff] }
 0x86f   :  { %2612 = vmatpush1.bf16.msra.mxu0 %v6102_v51  ;;  %2653 = vmatpush1.bf16.msra.mxu1 %v6103_v11 }
 0x870   :  { %2613 = vmatprep.subr.bf16.mxu0 %v6104_v53  ;;  %2654 = vmatprep.subr.bf16.mxu1 %v6105_v18  ;;  %v6134_v18 = vld [vmem:[#allocation92_spill] sm:$0xff] }
 0x873   :  { %2614 = vmatpush1.bf16.msra.mxu0 %v6106_v20  ;;  %2655 = vmatpush1.bf16.msra.mxu1 %v6107_v21  ;;  %v6135_v21 = vld [vmem:[#allocation93_spill] sm:$0xff] }
 0x874   :  { %2615 = vmatprep.subr.bf16.mxu0 %v6108_v22  ;;  %2656 = vmatprep.subr.bf16.mxu1 %v6109_v45 }
 0x877   :  { %2616 = vmatpush1.bf16.msra.mxu0 %v6110_v23  ;;  %2657 = vmatpush1.bf16.msra.mxu1 %v6111_v27 }
 0x878   :  { %2617 = vmatprep.subr.bf16.mxu0 %v6112_v28  ;;  %2658 = vmatprep.subr.bf16.mxu1 %v6113_v30 }
 0x87b   :  { %2618 = vmatpush1.bf16.msra.mxu0 %v6114_v32  ;;  %2659 = vmatpush1.bf16.msra.mxu1 %v6115_v36 }
 0x87c   :  { %2619 = vmatprep.subr.bf16.mxu0 %v6116_v5  ;;  %2660 = vmatprep.subr.bf16.mxu1 %v6117_v38 }
 0x87f   :  { %2620 = vmatpush1.bf16.msra.mxu0 %v6118_v15  ;;  %2661 = vmatpush1.bf16.msra.mxu1 %v6119_v8 }
 0x880   :  { %2621 = vmatprep.subr.bf16.mxu0 %v6120_v61  ;;  %2662 = vmatprep.subr.bf16.mxu1 %v6121_v40 }
 0x883   :  { %2622 = vmatpush1.bf16.msra.mxu0 %v6122_v6  ;;  %2663 = vmatpush1.bf16.msra.mxu1 %v6123_v56 }
 0x884   :  { %2623 = vmatprep.subr.bf16.mxu0 %v6124_v46  ;;  %2664 = vmatprep.subr.bf16.mxu1 %v6125_v57 }
 0x887   :  { %2624 = vmatpush1.bf16.msra.mxu0 %v6126_v37  ;;  %2665 = vmatpush1.bf16.msra.mxu1 %v6127_v2 }
 0x8fd   :  { %v2405_v59 = vpop.f32.mrb[68].mxu0  ;;  %v2446_v55 = vpop.f32.mrb[68].mxu1 }
 0x8fe   :  { %v2406_v35 = vadd.f32 %v2405_v59, %v6128_v41  ;;  %v2407_v19 = vpop.f32.mrb[69].mxu0  ;;  %v2448_v60 = vpop.f32.mrb[69].mxu1  ;;  %v2447_v25 = vadd.f32 %v2446_v55, %v6130_v17 }
 0x8ff   :  { %v2408_v39 = vadd.f32 %v2407_v19, %v6129_v0  ;;  %v2409_v52 = vpop.f32.mrb[70].mxu0  ;;  %v2450_v29 = vpop.f32.mrb[70].mxu1  ;;  %v2449_v44 = vadd.f32 %v2448_v60, %v6131_v47 }
 0x900   :  { %v2876_v24 = vmul.f32 -1.442695, %v2406_v35  ;;  %v2410_v10 = vpop.f32.mrb[71].mxu0  ;;  %v2451_v48 = vpop.f32.mrb[71].mxu1  ;;  %v2878_v14 = vmul.f32 -1.442695, %v2447_v25 }
 0x901   :  { %v2877_v16 = vmul.f32 -1.442695, %v2408_v39 }
 0x902   :  { %3255 = vpow2.f32 %v2876_v24 }
 0x903   :  { %3257 = vpow2.f32 %v2877_v16 }
 0x904   :  { %3259 = vtanh.f32 %v2449_v44 }
 0x905   :  { %3261 = vpow2.f32 %v2878_v14 }
 0x90c   :  { %v3256_v58 = vpop.eup %3255 }
 0x90d   :  { %v2462_v9 = vadd.f32 1.0, %v3256_v58  ;;  %v3258_v31 = vpop.eup %3257 }
 0x90e   :  { %v2463_v34 = vadd.f32 1.0, %v3258_v31  ;;  %v3260_v50 = vpop.eup %3259 }
 0x90f   :  { %3263 = vrcp.f32 %v2462_v9  ;;  %v3262_v12 = vpop.eup %3261 }
 0x910   :  { %3265 = vrcp.f32 %v2463_v34  ;;  %v2464_v49 = vadd.f32 1.0, %v3262_v12 }
 0x912   :  { %3267 = vrcp.f32 %v2464_v49 }
 0x919   :  { %v3264_v13 = vpop.eup %3263 }
 0x91a   :  { %v2473_v1 = vmul.f32 %v3264_v13, %v3260_v50  ;;  %v3266_v43 = vpop.eup %3265 }
 0x91b   :  { %v2472_v7 = vmul.f32 %v3266_v43, %v5144_v54 }
 0x91c   :  { %v3268_v32 = vpop.eup %3267 }
 0x91d   :  { %v2515_v42 = vpop.f32.mrb[72].mxu0  ;;  %v2556_v63 = vpop.f32.mrb[72].mxu1  ;;  %v5256_v33 = vadd.f32 %v2473_v1, %v2472_v7 }
 0x91e   :  { %v2563_v3 = vadd.f32 %v2515_v42, %v6132_v62  ;;  %v2565_v51 = vadd.f32 %v2556_v63, %v6133_v4  ;;  %v2517_v11 = vpop.f32.mrb[73].mxu0  ;;  %v2558_v53 = vpop.f32.mrb[73].mxu1 }
 0x91f   :  { %v2564_v20 = vadd.f32 %v2517_v11, %v6134_v18  ;;  %v2566_v22 = vadd.f32 %v2558_v53, %v6135_v21  ;;  %v2519_v45 = vpop.f32.mrb[74].mxu0  ;;  %v2560_v23 = vpop.f32.mrb[74].mxu1  ;;  %3269 = vtanh.f32 %v5256_v33  ;;  %v2886_v18 = vld [vmem:[#allocation3] ss:$0 sm:$0xff] }
 0x920   :  { %v2879_v27 = vmul.f32 -1.442695, %v2563_v3  ;;  %v2520_v28 = vpop.f32.mrb[75].mxu0  ;;  %v2561_v54 = vpop.f32.mrb[75].mxu1  ;;  %v2881_v5 = vmul.f32 -1.442695, %v2565_v51 }
 0x921   :  { %v2880_v30 = vmul.f32 -1.442695, %v2564_v20  ;;  %v2885_v51 = vld [vmem:[%s5281_s6] ss:$0 sm:$0xff] }
 0x922   :  { %3271 = vpow2.f32 %v2879_v27 }
 0x923   :  { %3273 = vpow2.f32 %v2880_v30 }
 0x924   :  { %3275 = vtanh.f32 %v2566_v22 }
 0x925   :  { %3277 = vpow2.f32 %v2881_v5 }
 0x929   :  { %v3270_v36 = vpop.eup %3269 }
 0x92a   :  { %v2476_v38 = vmul.f32 %v3270_v36, %v3268_v32 }
 0x92c   :  { %v3272_v15 = vpop.eup %3271  ;;  %v2592_v61 = vpack.c.bf16 %v2476_v38, %v2476_v38 }
 0x92d   :  { %v2576_v8 = vadd.f32 1.0, %v3272_v15  ;;  %v3274_v40 = vpop.eup %3273 }
 0x92e   :  { %v2577_v6 = vadd.f32 1.0, %v3274_v40  ;;  %2625 = vmatprep.mubr.bf16.mxu0 %v2592_v61  ;;  %2666 = vmatprep.mubr.bf16.mxu1 %v2592_v61  ;;  %v3276_v56 = vpop.eup %3275 }
 0x92f   :  { %3279 = vrcp.f32 %v2576_v8  ;;  %v3278_v46 = vpop.eup %3277 }
 0x930   :  { %3281 = vrcp.f32 %v2577_v6  ;;  %v2578_v59 = vadd.f32 1.0, %v3278_v46 }
 0x932   :  { %3283 = vrcp.f32 %v2578_v59 }
 0x939   :  { %v3280_v57 = vpop.eup %3279 }
 0x93a   :  { %v2587_v37 = vmul.f32 %v3280_v57, %v3276_v56  ;;  %v3282_v2 = vpop.eup %3281 }
 0x93b   :  { %v2586_v55 = vmul.f32 %v3282_v2, %v5152_v26 }
 0x93c   :  { %v3284_v19 = vpop.eup %3283 }
 0x93d   :  { %v2588_v35 = vadd.f32 %v2587_v37, %v2586_v55 }
 0x93f   :  { %3285 = vtanh.f32 %v2588_v35 }
 0x949   :  { %v3286_v60 = vpop.eup %3285 }
 0x94a   :  { %v2590_v39 = vmul.f32 %v3286_v60, %v3284_v19 }
 0x94c   :  { %v2591_v52 = vpack.c.bf16 %v2590_v39, %v2590_v39 }
 0x94e   :  { %2626 = vmatmul.mubr.bf16.vlgmr.msra.gmra.mrb[76].mxu0 %v2591_v52  ;;  %2667 = vmatmul.mubr.bf16.vlgmr.msra.gmra.mrb[76].mxu1 %v2591_v52 }
 0xa21   :  { %v2627_v29 = vpop.f32.mrb[76].mxu0  ;;  %v2668_v24 = vpop.f32.mrb[76].mxu1 }
 0xa22   :  { %v2628_v10 = vadd.f32 %v2627_v29, %v6128_v41  ;;  %v2629_v48 = vpop.f32.mrb[77].mxu0  ;;  %v2670_v16 = vpop.f32.mrb[77].mxu1  ;;  %v2669_v34 = vadd.f32 %v2668_v24, %v6130_v17 }
 0xa23   :  { %v2630_v25 = vadd.f32 %v2629_v48, %v6129_v0  ;;  %v2631_v44 = vpop.f32.mrb[78].mxu0  ;;  %v2672_v14 = vpop.f32.mrb[78].mxu1  ;;  %v2671_v50 = vadd.f32 %v2670_v16, %v6131_v47 }
 0xa24   :  { %v2882_v26 = vmul.f32 -1.442695, %v2628_v10  ;;  %v2632_v58 = vpop.f32.mrb[79].mxu0  ;;  %v2673_v9 = vpop.f32.mrb[79].mxu1  ;;  %v2884_v12 = vmul.f32 -1.442695, %v2669_v34 }
 0xa25   :  { %v2883_v31 = vmul.f32 -1.442695, %v2630_v25 }
 0xa26   :  { %3287 = vpow2.f32 %v2882_v26 }
 0xa27   :  { %3289 = vpow2.f32 %v2883_v31 }
 0xa28   :  { %3291 = vtanh.f32 %v2671_v50 }
 0xa29   :  { %3293 = vpow2.f32 %v2884_v12 }
 0xa30   :  { %v3288_v13 = vpop.eup %3287 }
 0xa31   :  { %v2684_v1 = vadd.f32 1.0, %v3288_v13  ;;  %v3290_v41 = vpop.eup %3289 }
 0xa32   :  { %v2685_v0 = vadd.f32 1.0, %v3290_v41  ;;  %v3292_v43 = vpop.eup %3291 }
 0xa33   :  { %3295 = vrcp.f32 %v2684_v1  ;;  %v3294_v49 = vpop.eup %3293 }
 0xa34   :  { %3297 = vrcp.f32 %v2685_v0  ;;  %v2686_v62 = vadd.f32 1.0, %v3294_v49 }
 0xa36   :  { %3299 = vrcp.f32 %v2686_v62 }
 0xa3d   :  { %v3296_v7 = vpop.eup %3295 }
 0xa3e   :  { %v2695_v42 = vmul.f32 %v3296_v7, %v3292_v43  ;;  %v3298_v63 = vpop.eup %3297 }
 0xa3f   :  { %v2694_v3 = vmul.f32 %v3298_v63, %v5256_v33 }
 0xa40   :  { %v3300_v47 = vpop.eup %3299 }
 0xa41   :  { %v2696_v17 = vadd.f32 %v2695_v42, %v2694_v3 }
 0xa43   :  { %3301 = vtanh.f32 %v2696_v17 }
 0xa4d   :  { %v3302_v4 = vpop.eup %3301 }
 0xa4e   :  { %v2698_v11 = vmul.f32 %v3302_v4, %v3300_v47 }
 0xa50   :  { %v2706_v53 = vmul.f32 %v2885_v51, %v2698_v11 }
 0xa52   :  { %2707 = vadd.xlane.f32.xlu0 %v2706_v53 }
 0xadf   :  { %v2708_v20 = vpop.xlane.xlu0 %2707 }
 0xae0   :  { %v2716_v21 = vadd.f32 %v2886_v18, %v2708_v20 }
 0xae2   :  { %2718 = vst.msk [vmem:[%s5283_s8] sm:$0xff] %vm2717_vm1, %v2716_v21 }
 0xae3   :  { %2723 = vsyncpa [#allocation5], 1 }
 0xae4   :  { %2724 = vsyncpa [#allocation7], 1 }

</bundles_post_ra>
